<compile_context>
chip_gen: v5e
topology: v5e:2x2
jax: 0.10.0
libtpu: 0.0.40
codegen_flags: <defaults>
</compile_context>

<pallas_src>
import jax
import jax.numpy as jnp
import numpy as np
from jax import lax
from jax.experimental import pallas as pl
from jax.experimental.pallas import tpu as pltpu


# ----------------------------------------------------------------------------
# Shape / budget helpers.
# ----------------------------------------------------------------------------
def _round_up(n, m):
    return ((n + m - 1) // m) * m


def _row_tile(rows, cap=512):
    """Row tile for the hoisted GEMMs (rows is a multiple of 8 by construction)."""
    for tm in (512, 256, 128, 64, 32, 16, 8):
        if tm <= cap and rows % tm == 0:
            return tm
    return rows  # unreachable in practice (rows % 8 == 0)


def _time_block(T, cap=16):
    """Timesteps per grid step of the recurrence kernel (kept small so the
    inner loop can be fully unrolled and the xproj slab fits v7x VMEM)."""
    for tb in range(min(T, cap), 0, -1):
        if T % tb == 0:
            return tb
    return 1


def _vmem_limit(nbytes):
    """Scoped-VMEM budget: need + headroom, clamped to v7x's 64 MiB physical."""
    return int(min(max(nbytes + (8 << 20), 32 << 20), 64 << 20))


# ----------------------------------------------------------------------------
# Hoisted input projection:  (T*B, D) @ (D, 3H) + bias3  as a row-tiled GEMM.
# Runs outside the serial time loop with a "parallel" grid; bf16 in / bf16 out
# with f32 accumulation.
# ----------------------------------------------------------------------------
def _matmul_bias_kernel(x_ref, w_ref, b_ref, o_ref):
    acc = jnp.dot(x_ref[...], w_ref[...], preferred_element_type=jnp.float32)
    o_ref[...] = (acc + b_ref[...]).astype(o_ref.dtype)


def input_projection(x2, w3, b3):
    """x2: (rows, D) bf16, w3: (D, 3H) bf16, b3: (1, 3H) f32 -> (rows, 3H) bf16."""
    rows, K = x2.shape
    N = w3.shape[1]
    tm = _row_tile(rows)
    vmem_need = 2 * (tm * K * 2 + K * N * 2 + N * 4 + tm * N * 2)
    return pl.pallas_call(
        _matmul_bias_kernel,
        out_shape=jax.ShapeDtypeStruct((rows, N), jnp.bfloat16),
        grid=(rows // tm,),
        in_specs=[
            pl.BlockSpec((tm, K), lambda i: (i, 0)),
            # Constant index maps -> weights/bias are DMA'd only once.
            pl.BlockSpec((K, N), lambda i: (0, 0)),
            pl.BlockSpec((1, N), lambda i: (0, 0)),
        ],
        out_specs=pl.BlockSpec((tm, N), lambda i: (i, 0)),
        compiler_params=pltpu.CompilerParams(
            dimension_semantics=("parallel",),
            vmem_limit_bytes=_vmem_limit(vmem_need),
        ),
    )(x2, w3, b3)


# ----------------------------------------------------------------------------
# GRU recurrence kernel: grid over (batch blocks, time blocks); only the fused
# (H, 3H) hidden matmul and the gate math remain on the serial path.  The
# hidden state persists across time blocks in a VMEM scratch.  For the last
# layer, h is staged per block and the tanh -> Linear -> tanh head runs as one
# batched matmul per time block (not per timestep).
# ----------------------------------------------------------------------------
def _make_gru_kernel(t_blk, hidden, batch, fuse_head):
    def kernel(xproj_ref, whh_ref, bhn_ref, *rest):
        if fuse_head:
            wd_ref, bd_ref, out_ref, h_scr, hblk_scr = rest
        else:
            out_ref, h_scr = rest

        @pl.when(pl.program_id(1) == 0)
        def _():
            h_scr[...] = jnp.zeros_like(h_scr)

        whh = whh_ref[...]                               # (H, 3H) bf16, r|z|n
        # Hoist the b_hn broadcast out of the (unrolled) time loop.
        bhn_b = jnp.broadcast_to(bhn_ref[...], (batch, hidden))  # (B, H) f32

        def step(tt, h):
            # xp already contains x@W_ih + b_ih (+ b_hh for the r/z gates).
            xp = xproj_ref[tt].astype(jnp.float32)                      # (B, 3H)
            # Per-step MXU row utilization scales as batch/128 (v5e) or /256.
            hh = jnp.dot(h.astype(jnp.bfloat16), whh,
                         preferred_element_type=jnp.float32)            # (B, 3H)
            r = jax.nn.sigmoid(xp[:, :hidden] + hh[:, :hidden])
            z = jax.nn.sigmoid(xp[:, hidden:2 * hidden] + hh[:, hidden:2 * hidden])
            n = jnp.tanh(xp[:, 2 * hidden:] + r * (hh[:, 2 * hidden:] + bhn_b))
            h_new = (1.0 - z) * n + z * h
            if fuse_head:
                # Stage tanh(h) in VMEM; the head matmul runs once per block.
                hblk_scr[tt] = jnp.tanh(h_new).astype(jnp.bfloat16)
            else:
                out_ref[tt] = h_new.astype(out_ref.dtype)
            return h_new

        h_final = lax.fori_loop(0, t_blk, step, h_scr[...], unroll=True)
        h_scr[...] = h_final

        if fuse_head:
            # One MXU-friendly (t_blk*B, H) @ (H, Dout) push off the serial path.
            hb = hblk_scr[...].reshape(t_blk * batch, hidden)
            y = jnp.dot(hb, wd_ref[...], preferred_element_type=jnp.float32)
            y = jnp.tanh(y + bd_ref[...])
            out_ref[...] = y.reshape(t_blk, batch, -1).astype(out_ref.dtype)

    return kernel


def gru_layer(xproj, w_hh3, b_hn, w_d=None, b_d=None, *, t_blk=None):
    """xproj: (T, B, 3H) time-major bf16 precomputed input projections.

    Returns (T, B, H) bf16 hidden states, or (T, B, D_out) f32 predictions when
    the dense head (w_d, b_d) is fused in (last layer).
    """
    T, Bp, H3 = xproj.shape
    Hp = H3 // 3
    fuse_head = w_d is not None
    if t_blk is None:
        t_blk = _time_block(T)
    d_out = w_d.shape[1] if fuse_head else Hp
    out_dtype = jnp.float32 if fuse_head else jnp.bfloat16

    # Megacore batch sharding (v7x): only when each half stays (8,·)-tiled.
    nb = 2 if Bp % 16 == 0 else 1
    Bb = Bp // nb

    in_specs = [
        pl.BlockSpec((t_blk, Bb, H3), lambda b, t: (t, b, 0)),
        # Constant index maps -> weights are DMA'd once.
        pl.BlockSpec((Hp, H3), lambda b, t: (0, 0)),
        pl.BlockSpec((1, Hp), lambda b, t: (0, 0)),
    ]
    args = [xproj, w_hh3, b_hn]
    if fuse_head:
        in_specs += [
            pl.BlockSpec((Hp, d_out), lambda b, t: (0, 0)),
            pl.BlockSpec((1, d_out), lambda b, t: (0, 0)),
        ]
        args += [w_d, b_d]

    scratch = [pltpu.VMEM((Bb, Hp), jnp.float32)]
    if fuse_head:
        scratch.append(pltpu.VMEM((t_blk, Bb, Hp), jnp.bfloat16))

    vmem_need = (
        2 * t_blk * Bb * H3 * 2          # xproj slab (bf16, double-buffered)
        + 2 * Hp * H3 * 2                # fused W_hh (bf16)
        + 2 * Hp * 4                     # b_hn
        + 2 * t_blk * Bb * d_out * jnp.dtype(out_dtype).itemsize
        + Bb * Hp * 4                    # h scratch
        + t_blk * Bb * Hp * 2            # staged h block (bf16)
    )
    if fuse_head:
        vmem_need += 2 * Hp * d_out * 2 + 2 * d_out * 4

    return pl.pallas_call(
        _make_gru_kernel(t_blk, Hp, Bb, fuse_head),
        out_shape=jax.ShapeDtypeStruct((T, Bp, d_out), out_dtype),
        grid=(nb, T // t_blk),
        in_specs=in_specs,
        out_specs=pl.BlockSpec((t_blk, Bb, d_out), lambda b, t: (t, b, 0)),
        scratch_shapes=scratch,
        compiler_params=pltpu.CompilerParams(
            dimension_semantics=("parallel", "arbitrary"),  # time is serial
            vmem_limit_bytes=_vmem_limit(vmem_need),
        ),
    )(*args)


# ----------------------------------------------------------------------------
# Full model forward (batch-first in / batch-first out, PyTorch layout).
# ----------------------------------------------------------------------------
@jax.jit
def gru_dense_forward(x, layer_params, w_d_p, b_d_p):
    """x: (B, T, in_dim) f32.  Returns (B, T, in_dim) f32.

    layer_params[l] = (w_ih3 (D,3Hp) bf16, w_hh3 (Hp,3Hp) bf16,
                       b3 (1,3Hp) f32, b_hn (1,Hp) f32); all gate blocks padded
    to Hp=128-multiple.  w_d_p: (Hp, Dp) bf16, b_d_p: (1, Dp) f32.
    """
    B, T, in_dim = x.shape
    Bp = _round_up(B, 8)                              # (8,128) sublane tiling
    x_pad = jnp.zeros((Bp, T, in_dim), jnp.float32).at[:B].set(x)
    cur = jnp.transpose(x_pad, (1, 0, 2)).astype(jnp.bfloat16)   # time-major
    n_layers = len(layer_params)
    for l, (w_ih3, w_hh3, b3, b_hn) in enumerate(layer_params):
        d_in = cur.shape[-1]
        # Hoisted input projection for all timesteps at once (big GEMM).
        proj = input_projection(cur.reshape(T * Bp, d_in), w_ih3, b3)
        proj = proj.reshape(T, Bp, -1)
        last = l == n_layers - 1
        cur = gru_layer(
            proj, w_hh3, b_hn,
            w_d=w_d_p if last else None,
            b_d=b_d_p if last else None,
        )
    out = jnp.transpose(cur, (1, 0, 2))               # back to batch-first
    return out[:B, :, :in_dim]                        # strip batch/lane padding


# ----------------------------------------------------------------------------
# Parameter init (PyTorch-style U(-1/sqrt(H), 1/sqrt(H))) + fused/padded prep.
# ----------------------------------------------------------------------------
def init_params(key, in_dim, hidden_dim, num_layers):
    scale = 1.0 / np.sqrt(hidden_dim)
    raw_layers = []
    for l in range(num_layers):
        d_in = in_dim if l == 0 else hidden_dim
        key, k1, k2, k3, k4 = jax.random.split(key, 5)
        w_ih = jax.random.uniform(k1, (3, d_in, hidden_dim), jnp.float32, -scale, scale)
        w_hh = jax.random.uniform(k2, (3, hidden_dim, hidden_dim), jnp.float32, -scale, scale)
        b_ih = jax.random.uniform(k3, (3, hidden_dim), jnp.float32, -scale, scale)
        b_hh = jax.random.uniform(k4, (3, hidden_dim), jnp.float32, -scale, scale)
        raw_layers.append((w_ih, w_hh, b_ih, b_hh))
    key, k5, k6 = jax.random.split(key, 3)
    w_d = jax.random.uniform(k5, (hidden_dim, in_dim), jnp.float32, -scale, scale)
    b_d = jax.random.uniform(k6, (in_dim,), jnp.float32, -scale, scale)
    return raw_layers, w_d, b_d


def prepare_params(raw_layers, w_d, b_d):
    """Fuse per-gate weights, zero-pad each gate block H->Hp (128-multiple),
    pre-sum the r/z biases, pad the head to 128 lanes, and cast MXU operands
    to bf16.  Zero padding is numerically exact: padded hidden columns stay 0."""
    H = raw_layers[0][1].shape[-1]
    Hp = _round_up(H, 128)
    fused = []
    for l, (w_ih, w_hh, b_ih, b_hh) in enumerate(raw_layers):
        d_in = w_ih.shape[1]
        d_in_p = d_in if l == 0 else Hp   # layer>0 input is the padded hidden

        def pad_gate_w(w, rows_p):        # (3, rows, H) -> (3, rows_p, Hp)
            out = jnp.zeros((3, rows_p, Hp), jnp.float32)
            return out.at[:, :w.shape[1], :H].set(w)

        w_ih_p = pad_gate_w(w_ih, d_in_p)
        w_hh_p = pad_gate_w(w_hh, Hp)
        b_ih_p = jnp.zeros((3, Hp), jnp.float32).at[:, :H].set(b_ih)
        b_hh_p = jnp.zeros((3, Hp), jnp.float32).at[:, :H].set(b_hh)

        w_ih3 = jnp.concatenate([w_ih_p[0], w_ih_p[1], w_ih_p[2]], axis=1)
        w_hh3 = jnp.concatenate([w_hh_p[0], w_hh_p[1], w_hh_p[2]], axis=1)
        b3 = jnp.concatenate(
            [b_ih_p[0] + b_hh_p[0],       # r: b_ir + b_hr
             b_ih_p[1] + b_hh_p[1],       # z: b_iz + b_hz
             b_ih_p[2]],                  # n: b_in only (b_hn stays separate)
            axis=0).reshape(1, -1)
        b_hn = b_hh_p[2].reshape(1, -1)
        fused.append((w_ih3.astype(jnp.bfloat16), w_hh3.astype(jnp.bfloat16),
                      b3, b_hn))

    in_dim = w_d.shape[1]
    Dp = _round_up(in_dim, 128)           # lane-dense head output, sliced later
    w_d_p = jnp.zeros((Hp, Dp), jnp.float32).at[:H, :in_dim].set(w_d)
    b_d_p = jnp.zeros((1, Dp), jnp.float32).at[0, :in_dim].set(b_d)
    return fused, w_d_p.astype(jnp.bfloat16), b_d_p


# ----------------------------------------------------------------------------
# Pure-JAX reference (original per-gate parameterization, f32).
# ----------------------------------------------------------------------------
def gru_dense_ref(x, raw_layers, w_d, b_d):
    cur = x
    for (w_ih, w_hh, b_ih, b_hh) in raw_layers:
        B, T, _ = cur.shape
        H = w_hh.shape[-1]
        h = jnp.zeros((B, H), jnp.float32)
        outs = []
        for t in range(T):
            xt = cur[:, t, :]
            i_r = xt @ w_ih[0] + b_ih[0]
            i_z = xt @ w_ih[1] + b_ih[1]
            i_n = xt @ w_ih[2] + b_ih[2]
            h_r = h @ w_hh[0] + b_hh[0]
            h_z = h @ w_hh[1] + b_hh[1]
            h_n = h @ w_hh[2] + b_hh[2]
            r = jax.nn.sigmoid(i_r + h_r)
            z = jax.nn.sigmoid(i_z + h_z)
            n = jnp.tanh(i_n + r * h_n)
            h = (1.0 - z) * n + z * h
            outs.append(h)
        cur = jnp.stack(outs, axis=1)
    return jnp.tanh(jnp.tanh(cur) @ w_d + b_d.reshape(1, 1, -1))


if __name__ == "__main__":
    B, T, IN_DIM, HIDDEN, NUM_LAYERS = 2, 8, 4, 32, 2

    key = jax.random.PRNGKey(0)
    key, kx = jax.random.split(key)
    x = jax.random.normal(kx, (B, T, IN_DIM), jnp.float32)

    raw_layers, w_d, b_d = init_params(key, IN_DIM, HIDDEN, NUM_LAYERS)
    layer_params, w_d_p, b_d_p = prepare_params(raw_layers, w_d, b_d)

    pred = gru_dense_forward(x, layer_params, w_d_p, b_d_p)
    pred = jax.block_until_ready(pred)
    assert pred.shape == (B, T, IN_DIM)

    ref = gru_dense_ref(x, raw_layers, w_d, b_d)
    # bf16 MXU operands (per perf review) -> loosened tolerance vs f32 reference.
    np.testing.assert_allclose(np.asarray(pred), np.asarray(ref),
                               rtol=3e-2, atol=3e-2)

    print("KERNEL_OK")
</pallas_src>

<mosaic_0001>
module attributes {stable_mosaic.version = 11 : i64} {
  func.func @_matmul_bias_kernel(%arg0: i32, %arg1: memref<64x4xbf16, #tpu.memory_space<vmem>>, %arg2: memref<4x384xbf16, #tpu.memory_space<vmem>>, %arg3: memref<1x384xf32, #tpu.memory_space<vmem>>, %arg4: memref<64x384xbf16, #tpu.memory_space<vmem>>) attributes {dimension_semantics = [#tpu.dimension_semantics<parallel>], iteration_bounds = array<i64: 1>, scalar_prefetch = 0 : i64, scratch_operands = 0 : i64, tpu.core_type = #tpu.core_type<tc>, window_params = [{transform_indices = @transform_0, window_bounds = array<i64: 64, 4>}, {pipeline_mode = #tpu.pipeline_mode<synchronous>, transform_indices = @transform_1, window_bounds = array<i64: 4, 384>}, {pipeline_mode = #tpu.pipeline_mode<synchronous>, transform_indices = @transform_2, window_bounds = array<i64: 1, 384>}, {transform_indices = @transform_3, window_bounds = array<i64: 64, 384>}]} {
    %c0 = arith.constant 0 : index
    %c0_0 = arith.constant 0 : index
    %0 = vector.load %arg1[%c0, %c0_0] : memref<64x4xbf16, #tpu.memory_space<vmem>>, vector<64x4xbf16>
    %c0_1 = arith.constant 0 : index
    %c0_2 = arith.constant 0 : index
    %1 = vector.load %arg2[%c0_1, %c0_2] : memref<4x384xbf16, #tpu.memory_space<vmem>>, vector<4x384xbf16>
    %cst = arith.constant dense<0.000000e+00> : vector<64x384xf32>
    %2 = tpu.matmul %0, %1, %cst {dimension_numbers = #tpu.dot_dimension_numbers<[1], [0], [0], [1], [0, 0, 1, 1], [], []>} : vector<64x4xbf16>, vector<4x384xbf16>, vector<64x384xf32> -> vector<64x384xf32>
    %c0_3 = arith.constant 0 : index
    %c0_4 = arith.constant 0 : index
    %3 = vector.load %arg3[%c0_3, %c0_4] : memref<1x384xf32, #tpu.memory_space<vmem>>, vector<1x384xf32>
    %4 = vector.broadcast %3 : vector<1x384xf32> to vector<64x384xf32>
    %5 = arith.addf %2, %4 : vector<64x384xf32>
    %6 = arith.truncf %5 : vector<64x384xf32> to vector<64x384xbf16>
    %c0_5 = arith.constant 0 : index
    %c0_6 = arith.constant 0 : index
    %7 = vector.load %arg4[%c0_5, %c0_6] : memref<64x384xbf16, #tpu.memory_space<vmem>>, vector<64x384xbf16>
    tpu.vector_store %arg4[%c0_5, %c0_6], %6 {strides = array<i32>} : memref<64x384xbf16, #tpu.memory_space<vmem>>, vector<64x384xbf16>,
    return
  }
  func.func @transform_0(%arg0: i32) -> (i32, i32) {
    %c0_i32 = arith.constant 0 : i32
    %c0_i32_0 = arith.constant 0 : i32
    return %arg0, %c0_i32 : i32, i32
  }
  func.func @transform_1(%arg0: i32) -> (i32, i32) {
    %c0_i32 = arith.constant 0 : i32
    %c0_i32_0 = arith.constant 0 : i32
    %c0_i32_1 = arith.constant 0 : i32
    return %c0_i32, %c0_i32_0 : i32, i32
  }
  func.func @transform_2(%arg0: i32) -> (i32, i32) {
    %c0_i32 = arith.constant 0 : i32
    %c0_i32_0 = arith.constant 0 : i32
    %c0_i32_1 = arith.constant 0 : i32
    return %c0_i32, %c0_i32_0 : i32, i32
  }
  func.func @transform_3(%arg0: i32) -> (i32, i32) {
    %c0_i32 = arith.constant 0 : i32
    %c0_i32_0 = arith.constant 0 : i32
    return %arg0, %c0_i32 : i32, i32
  }
}

module attributes {stable_mosaic.version = 11 : i64} {
  func.func @_matmul_bias_kernel(%arg0: i32, %arg1: memref<64x128xbf16, #tpu.memory_space<vmem>>, %arg2: memref<128x384xbf16, #tpu.memory_space<vmem>>, %arg3: memref<1x384xf32, #tpu.memory_space<vmem>>, %arg4: memref<64x384xbf16, #tpu.memory_space<vmem>>) attributes {dimension_semantics = [#tpu.dimension_semantics<parallel>], iteration_bounds = array<i64: 1>, scalar_prefetch = 0 : i64, scratch_operands = 0 : i64, tpu.core_type = #tpu.core_type<tc>, window_params = [{transform_indices = @transform_0, window_bounds = array<i64: 64, 128>}, {pipeline_mode = #tpu.pipeline_mode<synchronous>, transform_indices = @transform_1, window_bounds = array<i64: 128, 384>}, {pipeline_mode = #tpu.pipeline_mode<synchronous>, transform_indices = @transform_2, window_bounds = array<i64: 1, 384>}, {transform_indices = @transform_3, window_bounds = array<i64: 64, 384>}]} {
    %c0 = arith.constant 0 : index
    %c0_0 = arith.constant 0 : index
    %0 = vector.load %arg1[%c0, %c0_0] : memref<64x128xbf16, #tpu.memory_space<vmem>>, vector<64x128xbf16>
    %c0_1 = arith.constant 0 : index
    %c0_2 = arith.constant 0 : index
    %1 = vector.load %arg2[%c0_1, %c0_2] : memref<128x384xbf16, #tpu.memory_space<vmem>>, vector<128x384xbf16>
    %cst = arith.constant dense<0.000000e+00> : vector<64x384xf32>
    %2 = tpu.matmul %0, %1, %cst {dimension_numbers = #tpu.dot_dimension_numbers<[1], [0], [0], [1], [0, 0, 1, 1], [], []>} : vector<64x128xbf16>, vector<128x384xbf16>, vector<64x384xf32> -> vector<64x384xf32>
    %c0_3 = arith.constant 0 : index
    %c0_4 = arith.constant 0 : index
    %3 = vector.load %arg3[%c0_3, %c0_4] : memref<1x384xf32, #tpu.memory_space<vmem>>, vector<1x384xf32>
    %4 = vector.broadcast %3 : vector<1x384xf32> to vector<64x384xf32>
    %5 = arith.addf %2, %4 : vector<64x384xf32>
    %6 = arith.truncf %5 : vector<64x384xf32> to vector<64x384xbf16>
    %c0_5 = arith.constant 0 : index
    %c0_6 = arith.constant 0 : index
    %7 = vector.load %arg4[%c0_5, %c0_6] : memref<64x384xbf16, #tpu.memory_space<vmem>>, vector<64x384xbf16>
    tpu.vector_store %arg4[%c0_5, %c0_6], %6 {strides = array<i32>} : memref<64x384xbf16, #tpu.memory_space<vmem>>, vector<64x384xbf16>,
    return
  }
  func.func @transform_0(%arg0: i32) -> (i32, i32) {
    %c0_i32 = arith.constant 0 : i32
    %c0_i32_0 = arith.constant 0 : i32
    return %arg0, %c0_i32 : i32, i32
  }
  func.func @transform_1(%arg0: i32) -> (i32, i32) {
    %c0_i32 = arith.constant 0 : i32
    %c0_i32_0 = arith.constant 0 : i32
    %c0_i32_1 = arith.constant 0 : i32
    return %c0_i32, %c0_i32_0 : i32, i32
  }
  func.func @transform_2(%arg0: i32) -> (i32, i32) {
    %c0_i32 = arith.constant 0 : i32
    %c0_i32_0 = arith.constant 0 : i32
    %c0_i32_1 = arith.constant 0 : i32
    return %c0_i32, %c0_i32_0 : i32, i32
  }
  func.func @transform_3(%arg0: i32) -> (i32, i32) {
    %c0_i32 = arith.constant 0 : i32
    %c0_i32_0 = arith.constant 0 : i32
    return %arg0, %c0_i32 : i32, i32
  }
}

module attributes {stable_mosaic.version = 11 : i64} {
  func.func @kernel(%arg0: i32, %arg1: i32, %arg2: memref<8x8x384xbf16, #tpu.memory_space<vmem>>, %arg3: memref<128x384xbf16, #tpu.memory_space<vmem>>, %arg4: memref<1x128xf32, #tpu.memory_space<vmem>>, %arg5: memref<8x8x128xbf16, #tpu.memory_space<vmem>>, %arg6: memref<8x128xf32, #tpu.memory_space<vmem>>) attributes {dimension_semantics = [#tpu.dimension_semantics<parallel>, #tpu.dimension_semantics<arbitrary>], iteration_bounds = array<i64: 1, 1>, scalar_prefetch = 0 : i64, scratch_operands = 1 : i64, tpu.core_type = #tpu.core_type<tc>, window_params = [{transform_indices = @transform_0, window_bounds = array<i64: 8, 8, 384>}, {pipeline_mode = #tpu.pipeline_mode<synchronous>, transform_indices = @transform_1, window_bounds = array<i64: 128, 384>}, {pipeline_mode = #tpu.pipeline_mode<synchronous>, transform_indices = @transform_2, window_bounds = array<i64: 1, 128>}, {transform_indices = @transform_3, window_bounds = array<i64: 8, 8, 128>}]} {
    %c0_i32 = arith.constant 0 : i32
    %0 = arith.cmpi eq, %arg1, %c0_i32 : i32
    %1 = arith.extui %0 : i1 to i32
    %c0_i32_0 = arith.constant 0 : i32
    %2 = arith.cmpi ne, %1, %c0_i32_0 : i32
    scf.if %2 {
      %cst_72 = arith.constant 0.000000e+00 : f32
      %313 = vector.broadcast %cst_72 : f32 to vector<8x128xf32>
      %c0_73 = arith.constant 0 : index
      %c0_74 = arith.constant 0 : index
      %314 = vector.load %arg6[%c0_73, %c0_74] : memref<8x128xf32, #tpu.memory_space<vmem>>, vector<8x128xf32>
      tpu.vector_store %arg6[%c0_73, %c0_74], %313 {strides = array<i32>} : memref<8x128xf32, #tpu.memory_space<vmem>>, vector<8x128xf32>,
    } else {
    }
    %c0 = arith.constant 0 : index
    %c0_1 = arith.constant 0 : index
    %3 = vector.load %arg3[%c0, %c0_1] : memref<128x384xbf16, #tpu.memory_space<vmem>>, vector<128x384xbf16>
    %c0_2 = arith.constant 0 : index
    %c0_3 = arith.constant 0 : index
    %4 = vector.load %arg4[%c0_2, %c0_3] : memref<1x128xf32, #tpu.memory_space<vmem>>, vector<1x128xf32>
    %5 = vector.shape_cast %4 : vector<1x128xf32> to vector<1x128xf32>
    %6 = vector.broadcast %5 : vector<1x128xf32> to vector<8x128xf32>
    %c0_4 = arith.constant 0 : index
    %c0_5 = arith.constant 0 : index
    %7 = vector.load %arg6[%c0_4, %c0_5] : memref<8x128xf32, #tpu.memory_space<vmem>>, vector<8x128xf32>
    %c0_i32_6 = arith.constant 0 : i32
    %8 = arith.index_cast %c0_i32_6 : i32 to index
    %c0_7 = arith.constant 0 : index
    %c0_8 = arith.constant 0 : index
    %9 = vector.load %arg2[%8, %c0_7, %c0_8] : memref<8x8x384xbf16, #tpu.memory_space<vmem>>, vector<1x8x384xbf16>
    %10 = vector.shape_cast %9 : vector<1x8x384xbf16> to vector<8x384xbf16>
    %11 = arith.extf %10 : vector<8x384xbf16> to vector<8x384xf32>
    %12 = arith.truncf %7 : vector<8x128xf32> to vector<8x128xbf16>
    %cst = arith.constant dense<0.000000e+00> : vector<8x384xf32>
    %13 = tpu.matmul %12, %3, %cst {dimension_numbers = #tpu.dot_dimension_numbers<[1], [0], [0], [1], [0, 0, 1, 1], [], []>} : vector<8x128xbf16>, vector<128x384xbf16>, vector<8x384xf32> -> vector<8x384xf32>
    %14 = vector.extract_strided_slice %11 {offsets = [0, 0], sizes = [8, 128], strides = [1, 1]} : vector<8x384xf32> to vector<8x128xf32>
    %15 = vector.extract_strided_slice %13 {offsets = [0, 0], sizes = [8, 128], strides = [1, 1]} : vector<8x384xf32> to vector<8x128xf32>
    %16 = arith.addf %14, %15 : vector<8x128xf32>
    %17 = arith.negf %16 : vector<8x128xf32>
    %18 = math.exp %17 : vector<8x128xf32>
    %cst_9 = arith.constant 1.000000e+00 : f32
    %19 = vector.broadcast %cst_9 : f32 to vector<8x128xf32>
    %20 = arith.addf %19, %18 : vector<8x128xf32>
    %21 = arith.divf %19, %20 : vector<8x128xf32>
    %22 = vector.extract_strided_slice %11 {offsets = [0, 128], sizes = [8, 128], strides = [1, 1]} : vector<8x384xf32> to vector<8x128xf32>
    %23 = vector.extract_strided_slice %13 {offsets = [0, 128], sizes = [8, 128], strides = [1, 1]} : vector<8x384xf32> to vector<8x128xf32>
    %24 = arith.addf %22, %23 : vector<8x128xf32>
    %25 = arith.negf %24 : vector<8x128xf32>
    %26 = math.exp %25 : vector<8x128xf32>
    %cst_10 = arith.constant 1.000000e+00 : f32
    %27 = vector.broadcast %cst_10 : f32 to vector<8x128xf32>
    %28 = arith.addf %27, %26 : vector<8x128xf32>
    %29 = arith.divf %27, %28 : vector<8x128xf32>
    %30 = vector.extract_strided_slice %11 {offsets = [0, 256], sizes = [8, 128], strides = [1, 1]} : vector<8x384xf32> to vector<8x128xf32>
    %31 = vector.extract_strided_slice %13 {offsets = [0, 256], sizes = [8, 128], strides = [1, 1]} : vector<8x384xf32> to vector<8x128xf32>
    %32 = arith.addf %31, %6 : vector<8x128xf32>
    %33 = arith.mulf %21, %32 : vector<8x128xf32>
    %34 = arith.addf %30, %33 : vector<8x128xf32>
    %35 = math.tanh %34 : vector<8x128xf32>
    %cst_11 = arith.constant 1.000000e+00 : f32
    %36 = vector.broadcast %cst_11 : f32 to vector<8x128xf32>
    %37 = arith.subf %36, %29 : vector<8x128xf32>
    %38 = arith.mulf %37, %35 : vector<8x128xf32>
    %39 = arith.mulf %29, %7 : vector<8x128xf32>
    %40 = arith.addf %38, %39 : vector<8x128xf32>
    %41 = arith.truncf %40 : vector<8x128xf32> to vector<8x128xbf16>
    %42 = arith.index_cast %c0_i32_6 : i32 to index
    %c0_12 = arith.constant 0 : index
    %c0_13 = arith.constant 0 : index
    %43 = vector.load %arg5[%42, %c0_12, %c0_13] : memref<8x8x128xbf16, #tpu.memory_space<vmem>>, vector<1x8x128xbf16>
    %44 = vector.shape_cast %43 : vector<1x8x128xbf16> to vector<8x128xbf16>
    %45 = vector.shape_cast %41 : vector<8x128xbf16> to vector<1x8x128xbf16>
    tpu.vector_store %arg5[%42, %c0_12, %c0_13], %45 {strides = array<i32>} : memref<8x8x128xbf16, #tpu.memory_space<vmem>>, vector<1x8x128xbf16>,
    %c1_i32 = arith.constant 1 : i32
    %46 = arith.index_cast %c1_i32 : i32 to index
    %c0_14 = arith.constant 0 : index
    %c0_15 = arith.constant 0 : index
    %47 = vector.load %arg2[%46, %c0_14, %c0_15] : memref<8x8x384xbf16, #tpu.memory_space<vmem>>, vector<1x8x384xbf16>
    %48 = vector.shape_cast %47 : vector<1x8x384xbf16> to vector<8x384xbf16>
    %49 = arith.extf %48 : vector<8x384xbf16> to vector<8x384xf32>
    %50 = arith.truncf %40 : vector<8x128xf32> to vector<8x128xbf16>
    %cst_16 = arith.constant dense<0.000000e+00> : vector<8x384xf32>
    %51 = tpu.matmul %50, %3, %cst_16 {dimension_numbers = #tpu.dot_dimension_numbers<[1], [0], [0], [1], [0, 0, 1, 1], [], []>} : vector<8x128xbf16>, vector<128x384xbf16>, vector<8x384xf32> -> vector<8x384xf32>
    %52 = vector.extract_strided_slice %49 {offsets = [0, 0], sizes = [8, 128], strides = [1, 1]} : vector<8x384xf32> to vector<8x128xf32>
    %53 = vector.extract_strided_slice %51 {offsets = [0, 0], sizes = [8, 128], strides = [1, 1]} : vector<8x384xf32> to vector<8x128xf32>
    %54 = arith.addf %52, %53 : vector<8x128xf32>
    %55 = arith.negf %54 : vector<8x128xf32>
    %56 = math.exp %55 : vector<8x128xf32>
    %cst_17 = arith.constant 1.000000e+00 : f32
    %57 = vector.broadcast %cst_17 : f32 to vector<8x128xf32>
    %58 = arith.addf %57, %56 : vector<8x128xf32>
    %59 = arith.divf %57, %58 : vector<8x128xf32>
    %60 = vector.extract_strided_slice %49 {offsets = [0, 128], sizes = [8, 128], strides = [1, 1]} : vector<8x384xf32> to vector<8x128xf32>
    %61 = vector.extract_strided_slice %51 {offsets = [0, 128], sizes = [8, 128], strides = [1, 1]} : vector<8x384xf32> to vector<8x128xf32>
    %62 = arith.addf %60, %61 : vector<8x128xf32>
    %63 = arith.negf %62 : vector<8x128xf32>
    %64 = math.exp %63 : vector<8x128xf32>
    %cst_18 = arith.constant 1.000000e+00 : f32
    %65 = vector.broadcast %cst_18 : f32 to vector<8x128xf32>
    %66 = arith.addf %65, %64 : vector<8x128xf32>
    %67 = arith.divf %65, %66 : vector<8x128xf32>
    %68 = vector.extract_strided_slice %49 {offsets = [0, 256], sizes = [8, 128], strides = [1, 1]} : vector<8x384xf32> to vector<8x128xf32>
    %69 = vector.extract_strided_slice %51 {offsets = [0, 256], sizes = [8, 128], strides = [1, 1]} : vector<8x384xf32> to vector<8x128xf32>
    %70 = arith.addf %69, %6 : vector<8x128xf32>
    %71 = arith.mulf %59, %70 : vector<8x128xf32>
    %72 = arith.addf %68, %71 : vector<8x128xf32>
    %73 = math.tanh %72 : vector<8x128xf32>
    %cst_19 = arith.constant 1.000000e+00 : f32
    %74 = vector.broadcast %cst_19 : f32 to vector<8x128xf32>
    %75 = arith.subf %74, %67 : vector<8x128xf32>
    %76 = arith.mulf %75, %73 : vector<8x128xf32>
    %77 = arith.mulf %67, %40 : vector<8x128xf32>
    %78 = arith.addf %76, %77 : vector<8x128xf32>
    %79 = arith.truncf %78 : vector<8x128xf32> to vector<8x128xbf16>
    %80 = arith.index_cast %c1_i32 : i32 to index
    %c0_20 = arith.constant 0 : index
    %c0_21 = arith.constant 0 : index
    %81 = vector.load %arg5[%80, %c0_20, %c0_21] : memref<8x8x128xbf16, #tpu.memory_space<vmem>>, vector<1x8x128xbf16>
    %82 = vector.shape_cast %81 : vector<1x8x128xbf16> to vector<8x128xbf16>
    %83 = vector.shape_cast %79 : vector<8x128xbf16> to vector<1x8x128xbf16>
    tpu.vector_store %arg5[%80, %c0_20, %c0_21], %83 {strides = array<i32>} : memref<8x8x128xbf16, #tpu.memory_space<vmem>>, vector<1x8x128xbf16>,
    %c2_i32 = arith.constant 2 : i32
    %84 = arith.index_cast %c2_i32 : i32 to index
    %c0_22 = arith.constant 0 : index
    %c0_23 = arith.constant 0 : index
    %85 = vector.load %arg2[%84, %c0_22, %c0_23] : memref<8x8x384xbf16, #tpu.memory_space<vmem>>, vector<1x8x384xbf16>
    %86 = vector.shape_cast %85 : vector<1x8x384xbf16> to vector<8x384xbf16>
    %87 = arith.extf %86 : vector<8x384xbf16> to vector<8x384xf32>
    %88 = arith.truncf %78 : vector<8x128xf32> to vector<8x128xbf16>
    %cst_24 = arith.constant dense<0.000000e+00> : vector<8x384xf32>
    %89 = tpu.matmul %88, %3, %cst_24 {dimension_numbers = #tpu.dot_dimension_numbers<[1], [0], [0], [1], [0, 0, 1, 1], [], []>} : vector<8x128xbf16>, vector<128x384xbf16>, vector<8x384xf32> -> vector<8x384xf32>
    %90 = vector.extract_strided_slice %87 {offsets = [0, 0], sizes = [8, 128], strides = [1, 1]} : vector<8x384xf32> to vector<8x128xf32>
    %91 = vector.extract_strided_slice %89 {offsets = [0, 0], sizes = [8, 128], strides = [1, 1]} : vector<8x384xf32> to vector<8x128xf32>
    %92 = arith.addf %90, %91 : vector<8x128xf32>
    %93 = arith.negf %92 : vector<8x128xf32>
    %94 = math.exp %93 : vector<8x128xf32>
    %cst_25 = arith.constant 1.000000e+00 : f32
    %95 = vector.broadcast %cst_25 : f32 to vector<8x128xf32>
    %96 = arith.addf %95, %94 : vector<8x128xf32>
    %97 = arith.divf %95, %96 : vector<8x128xf32>
    %98 = vector.extract_strided_slice %87 {offsets = [0, 128], sizes = [8, 128], strides = [1, 1]} : vector<8x384xf32> to vector<8x128xf32>
    %99 = vector.extract_strided_slice %89 {offsets = [0, 128], sizes = [8, 128], strides = [1, 1]} : vector<8x384xf32> to vector<8x128xf32>
    %100 = arith.addf %98, %99 : vector<8x128xf32>
    %101 = arith.negf %100 : vector<8x128xf32>
    %102 = math.exp %101 : vector<8x128xf32>
    %cst_26 = arith.constant 1.000000e+00 : f32
    %103 = vector.broadcast %cst_26 : f32 to vector<8x128xf32>
    %104 = arith.addf %103, %102 : vector<8x128xf32>
    %105 = arith.divf %103, %104 : vector<8x128xf32>
    %106 = vector.extract_strided_slice %87 {offsets = [0, 256], sizes = [8, 128], strides = [1, 1]} : vector<8x384xf32> to vector<8x128xf32>
    %107 = vector.extract_strided_slice %89 {offsets = [0, 256], sizes = [8, 128], strides = [1, 1]} : vector<8x384xf32> to vector<8x128xf32>
    %108 = arith.addf %107, %6 : vector<8x128xf32>
    %109 = arith.mulf %97, %108 : vector<8x128xf32>
    %110 = arith.addf %106, %109 : vector<8x128xf32>
    %111 = math.tanh %110 : vector<8x128xf32>
    %cst_27 = arith.constant 1.000000e+00 : f32
    %112 = vector.broadcast %cst_27 : f32 to vector<8x128xf32>
    %113 = arith.subf %112, %105 : vector<8x128xf32>
    %114 = arith.mulf %113, %111 : vector<8x128xf32>
    %115 = arith.mulf %105, %78 : vector<8x128xf32>
    %116 = arith.addf %114, %115 : vector<8x128xf32>
    %117 = arith.truncf %116 : vector<8x128xf32> to vector<8x128xbf16>
    %118 = arith.index_cast %c2_i32 : i32 to index
    %c0_28 = arith.constant 0 : index
    %c0_29 = arith.constant 0 : index
    %119 = vector.load %arg5[%118, %c0_28, %c0_29] : memref<8x8x128xbf16, #tpu.memory_space<vmem>>, vector<1x8x128xbf16>
    %120 = vector.shape_cast %119 : vector<1x8x128xbf16> to vector<8x128xbf16>
    %121 = vector.shape_cast %117 : vector<8x128xbf16> to vector<1x8x128xbf16>
    tpu.vector_store %arg5[%118, %c0_28, %c0_29], %121 {strides = array<i32>} : memref<8x8x128xbf16, #tpu.memory_space<vmem>>, vector<1x8x128xbf16>,
    %c3_i32 = arith.constant 3 : i32
    %122 = arith.index_cast %c3_i32 : i32 to index
    %c0_30 = arith.constant 0 : index
    %c0_31 = arith.constant 0 : index
    %123 = vector.load %arg2[%122, %c0_30, %c0_31] : memref<8x8x384xbf16, #tpu.memory_space<vmem>>, vector<1x8x384xbf16>
    %124 = vector.shape_cast %123 : vector<1x8x384xbf16> to vector<8x384xbf16>
    %125 = arith.extf %124 : vector<8x384xbf16> to vector<8x384xf32>
    %126 = arith.truncf %116 : vector<8x128xf32> to vector<8x128xbf16>
    %cst_32 = arith.constant dense<0.000000e+00> : vector<8x384xf32>
    %127 = tpu.matmul %126, %3, %cst_32 {dimension_numbers = #tpu.dot_dimension_numbers<[1], [0], [0], [1], [0, 0, 1, 1], [], []>} : vector<8x128xbf16>, vector<128x384xbf16>, vector<8x384xf32> -> vector<8x384xf32>
    %128 = vector.extract_strided_slice %125 {offsets = [0, 0], sizes = [8, 128], strides = [1, 1]} : vector<8x384xf32> to vector<8x128xf32>
    %129 = vector.extract_strided_slice %127 {offsets = [0, 0], sizes = [8, 128], strides = [1, 1]} : vector<8x384xf32> to vector<8x128xf32>
    %130 = arith.addf %128, %129 : vector<8x128xf32>
    %131 = arith.negf %130 : vector<8x128xf32>
    %132 = math.exp %131 : vector<8x128xf32>
    %cst_33 = arith.constant 1.000000e+00 : f32
    %133 = vector.broadcast %cst_33 : f32 to vector<8x128xf32>
    %134 = arith.addf %133, %132 : vector<8x128xf32>
    %135 = arith.divf %133, %134 : vector<8x128xf32>
    %136 = vector.extract_strided_slice %125 {offsets = [0, 128], sizes = [8, 128], strides = [1, 1]} : vector<8x384xf32> to vector<8x128xf32>
    %137 = vector.extract_strided_slice %127 {offsets = [0, 128], sizes = [8, 128], strides = [1, 1]} : vector<8x384xf32> to vector<8x128xf32>
    %138 = arith.addf %136, %137 : vector<8x128xf32>
    %139 = arith.negf %138 : vector<8x128xf32>
    %140 = math.exp %139 : vector<8x128xf32>
    %cst_34 = arith.constant 1.000000e+00 : f32
    %141 = vector.broadcast %cst_34 : f32 to vector<8x128xf32>
    %142 = arith.addf %141, %140 : vector<8x128xf32>
    %143 = arith.divf %141, %142 : vector<8x128xf32>
    %144 = vector.extract_strided_slice %125 {offsets = [0, 256], sizes = [8, 128], strides = [1, 1]} : vector<8x384xf32> to vector<8x128xf32>
    %145 = vector.extract_strided_slice %127 {offsets = [0, 256], sizes = [8, 128], strides = [1, 1]} : vector<8x384xf32> to vector<8x128xf32>
    %146 = arith.addf %145, %6 : vector<8x128xf32>
    %147 = arith.mulf %135, %146 : vector<8x128xf32>
    %148 = arith.addf %144, %147 : vector<8x128xf32>
    %149 = math.tanh %148 : vector<8x128xf32>
    %cst_35 = arith.constant 1.000000e+00 : f32
    %150 = vector.broadcast %cst_35 : f32 to vector<8x128xf32>
    %151 = arith.subf %150, %143 : vector<8x128xf32>
    %152 = arith.mulf %151, %149 : vector<8x128xf32>
    %153 = arith.mulf %143, %116 : vector<8x128xf32>
    %154 = arith.addf %152, %153 : vector<8x128xf32>
    %155 = arith.truncf %154 : vector<8x128xf32> to vector<8x128xbf16>
    %156 = arith.index_cast %c3_i32 : i32 to index
    %c0_36 = arith.constant 0 : index
    %c0_37 = arith.constant 0 : index
    %157 = vector.load %arg5[%156, %c0_36, %c0_37] : memref<8x8x128xbf16, #tpu.memory_space<vmem>>, vector<1x8x128xbf16>
    %158 = vector.shape_cast %157 : vector<1x8x128xbf16> to vector<8x128xbf16>
    %159 = vector.shape_cast %155 : vector<8x128xbf16> to vector<1x8x128xbf16>
    tpu.vector_store %arg5[%156, %c0_36, %c0_37], %159 {strides = array<i32>} : memref<8x8x128xbf16, #tpu.memory_space<vmem>>, vector<1x8x128xbf16>,
    %c4_i32 = arith.constant 4 : i32
    %160 = arith.index_cast %c4_i32 : i32 to index
    %c0_38 = arith.constant 0 : index
    %c0_39 = arith.constant 0 : index
    %161 = vector.load %arg2[%160, %c0_38, %c0_39] : memref<8x8x384xbf16, #tpu.memory_space<vmem>>, vector<1x8x384xbf16>
    %162 = vector.shape_cast %161 : vector<1x8x384xbf16> to vector<8x384xbf16>
    %163 = arith.extf %162 : vector<8x384xbf16> to vector<8x384xf32>
    %164 = arith.truncf %154 : vector<8x128xf32> to vector<8x128xbf16>
    %cst_40 = arith.constant dense<0.000000e+00> : vector<8x384xf32>
    %165 = tpu.matmul %164, %3, %cst_40 {dimension_numbers = #tpu.dot_dimension_numbers<[1], [0], [0], [1], [0, 0, 1, 1], [], []>} : vector<8x128xbf16>, vector<128x384xbf16>, vector<8x384xf32> -> vector<8x384xf32>
    %166 = vector.extract_strided_slice %163 {offsets = [0, 0], sizes = [8, 128], strides = [1, 1]} : vector<8x384xf32> to vector<8x128xf32>
    %167 = vector.extract_strided_slice %165 {offsets = [0, 0], sizes = [8, 128], strides = [1, 1]} : vector<8x384xf32> to vector<8x128xf32>
    %168 = arith.addf %166, %167 : vector<8x128xf32>
    %169 = arith.negf %168 : vector<8x128xf32>
    %170 = math.exp %169 : vector<8x128xf32>
    %cst_41 = arith.constant 1.000000e+00 : f32
    %171 = vector.broadcast %cst_41 : f32 to vector<8x128xf32>
    %172 = arith.addf %171, %170 : vector<8x128xf32>
    %173 = arith.divf %171, %172 : vector<8x128xf32>
    %174 = vector.extract_strided_slice %163 {offsets = [0, 128], sizes = [8, 128], strides = [1, 1]} : vector<8x384xf32> to vector<8x128xf32>
    %175 = vector.extract_strided_slice %165 {offsets = [0, 128], sizes = [8, 128], strides = [1, 1]} : vector<8x384xf32> to vector<8x128xf32>
    %176 = arith.addf %174, %175 : vector<8x128xf32>
    %177 = arith.negf %176 : vector<8x128xf32>
    %178 = math.exp %177 : vector<8x128xf32>
    %cst_42 = arith.constant 1.000000e+00 : f32
    %179 = vector.broadcast %cst_42 : f32 to vector<8x128xf32>
    %180 = arith.addf %179, %178 : vector<8x128xf32>
    %181 = arith.divf %179, %180 : vector<8x128xf32>
    %182 = vector.extract_strided_slice %163 {offsets = [0, 256], sizes = [8, 128], strides = [1, 1]} : vector<8x384xf32> to vector<8x128xf32>
    %183 = vector.extract_strided_slice %165 {offsets = [0, 256], sizes = [8, 128], strides = [1, 1]} : vector<8x384xf32> to vector<8x128xf32>
    %184 = arith.addf %183, %6 : vector<8x128xf32>
    %185 = arith.mulf %173, %184 : vector<8x128xf32>
    %186 = arith.addf %182, %185 : vector<8x128xf32>
    %187 = math.tanh %186 : vector<8x128xf32>
    %cst_43 = arith.constant 1.000000e+00 : f32
    %188 = vector.broadcast %cst_43 : f32 to vector<8x128xf32>
    %189 = arith.subf %188, %181 : vector<8x128xf32>
    %190 = arith.mulf %189, %187 : vector<8x128xf32>
    %191 = arith.mulf %181, %154 : vector<8x128xf32>
    %192 = arith.addf %190, %191 : vector<8x128xf32>
    %193 = arith.truncf %192 : vector<8x128xf32> to vector<8x128xbf16>
    %194 = arith.index_cast %c4_i32 : i32 to index
    %c0_44 = arith.constant 0 : index
    %c0_45 = arith.constant 0 : index
    %195 = vector.load %arg5[%194, %c0_44, %c0_45] : memref<8x8x128xbf16, #tpu.memory_space<vmem>>, vector<1x8x128xbf16>
    %196 = vector.shape_cast %195 : vector<1x8x128xbf16> to vector<8x128xbf16>
    %197 = vector.shape_cast %193 : vector<8x128xbf16> to vector<1x8x128xbf16>
    tpu.vector_store %arg5[%194, %c0_44, %c0_45], %197 {strides = array<i32>} : memref<8x8x128xbf16, #tpu.memory_space<vmem>>, vector<1x8x128xbf16>,
    %c5_i32 = arith.constant 5 : i32
    %198 = arith.index_cast %c5_i32 : i32 to index
    %c0_46 = arith.constant 0 : index
    %c0_47 = arith.constant 0 : index
    %199 = vector.load %arg2[%198, %c0_46, %c0_47] : memref<8x8x384xbf16, #tpu.memory_space<vmem>>, vector<1x8x384xbf16>
    %200 = vector.shape_cast %199 : vector<1x8x384xbf16> to vector<8x384xbf16>
    %201 = arith.extf %200 : vector<8x384xbf16> to vector<8x384xf32>
    %202 = arith.truncf %192 : vector<8x128xf32> to vector<8x128xbf16>
    %cst_48 = arith.constant dense<0.000000e+00> : vector<8x384xf32>
    %203 = tpu.matmul %202, %3, %cst_48 {dimension_numbers = #tpu.dot_dimension_numbers<[1], [0], [0], [1], [0, 0, 1, 1], [], []>} : vector<8x128xbf16>, vector<128x384xbf16>, vector<8x384xf32> -> vector<8x384xf32>
    %204 = vector.extract_strided_slice %201 {offsets = [0, 0], sizes = [8, 128], strides = [1, 1]} : vector<8x384xf32> to vector<8x128xf32>
    %205 = vector.extract_strided_slice %203 {offsets = [0, 0], sizes = [8, 128], strides = [1, 1]} : vector<8x384xf32> to vector<8x128xf32>
    %206 = arith.addf %204, %205 : vector<8x128xf32>
    %207 = arith.negf %206 : vector<8x128xf32>
    %208 = math.exp %207 : vector<8x128xf32>
    %cst_49 = arith.constant 1.000000e+00 : f32
    %209 = vector.broadcast %cst_49 : f32 to vector<8x128xf32>
    %210 = arith.addf %209, %208 : vector<8x128xf32>
    %211 = arith.divf %209, %210 : vector<8x128xf32>
    %212 = vector.extract_strided_slice %201 {offsets = [0, 128], sizes = [8, 128], strides = [1, 1]} : vector<8x384xf32> to vector<8x128xf32>
    %213 = vector.extract_strided_slice %203 {offsets = [0, 128], sizes = [8, 128], strides = [1, 1]} : vector<8x384xf32> to vector<8x128xf32>
    %214 = arith.addf %212, %213 : vector<8x128xf32>
    %215 = arith.negf %214 : vector<8x128xf32>
    %216 = math.exp %215 : vector<8x128xf32>
    %cst_50 = arith.constant 1.000000e+00 : f32
    %217 = vector.broadcast %cst_50 : f32 to vector<8x128xf32>
    %218 = arith.addf %217, %216 : vector<8x128xf32>
    %219 = arith.divf %217, %218 : vector<8x128xf32>
    %220 = vector.extract_strided_slice %201 {offsets = [0, 256], sizes = [8, 128], strides = [1, 1]} : vector<8x384xf32> to vector<8x128xf32>
    %221 = vector.extract_strided_slice %203 {offsets = [0, 256], sizes = [8, 128], strides = [1, 1]} : vector<8x384xf32> to vector<8x128xf32>
    %222 = arith.addf %221, %6 : vector<8x128xf32>
    %223 = arith.mulf %211, %222 : vector<8x128xf32>
    %224 = arith.addf %220, %223 : vector<8x128xf32>
    %225 = math.tanh %224 : vector<8x128xf32>
    %cst_51 = arith.constant 1.000000e+00 : f32
    %226 = vector.broadcast %cst_51 : f32 to vector<8x128xf32>
    %227 = arith.subf %226, %219 : vector<8x128xf32>
    %228 = arith.mulf %227, %225 : vector<8x128xf32>
    %229 = arith.mulf %219, %192 : vector<8x128xf32>
    %230 = arith.addf %228, %229 : vector<8x128xf32>
    %231 = arith.truncf %230 : vector<8x128xf32> to vector<8x128xbf16>
    %232 = arith.index_cast %c5_i32 : i32 to index
    %c0_52 = arith.constant 0 : index
    %c0_53 = arith.constant 0 : index
    %233 = vector.load %arg5[%232, %c0_52, %c0_53] : memref<8x8x128xbf16, #tpu.memory_space<vmem>>, vector<1x8x128xbf16>
    %234 = vector.shape_cast %233 : vector<1x8x128xbf16> to vector<8x128xbf16>
    %235 = vector.shape_cast %231 : vector<8x128xbf16> to vector<1x8x128xbf16>
    tpu.vector_store %arg5[%232, %c0_52, %c0_53], %235 {strides = array<i32>} : memref<8x8x128xbf16, #tpu.memory_space<vmem>>, vector<1x8x128xbf16>,
    %c6_i32 = arith.constant 6 : i32
    %236 = arith.index_cast %c6_i32 : i32 to index
    %c0_54 = arith.constant 0 : index
    %c0_55 = arith.constant 0 : index
    %237 = vector.load %arg2[%236, %c0_54, %c0_55] : memref<8x8x384xbf16, #tpu.memory_space<vmem>>, vector<1x8x384xbf16>
    %238 = vector.shape_cast %237 : vector<1x8x384xbf16> to vector<8x384xbf16>
    %239 = arith.extf %238 : vector<8x384xbf16> to vector<8x384xf32>
    %240 = arith.truncf %230 : vector<8x128xf32> to vector<8x128xbf16>
    %cst_56 = arith.constant dense<0.000000e+00> : vector<8x384xf32>
    %241 = tpu.matmul %240, %3, %cst_56 {dimension_numbers = #tpu.dot_dimension_numbers<[1], [0], [0], [1], [0, 0, 1, 1], [], []>} : vector<8x128xbf16>, vector<128x384xbf16>, vector<8x384xf32> -> vector<8x384xf32>
    %242 = vector.extract_strided_slice %239 {offsets = [0, 0], sizes = [8, 128], strides = [1, 1]} : vector<8x384xf32> to vector<8x128xf32>
    %243 = vector.extract_strided_slice %241 {offsets = [0, 0], sizes = [8, 128], strides = [1, 1]} : vector<8x384xf32> to vector<8x128xf32>
    %244 = arith.addf %242, %243 : vector<8x128xf32>
    %245 = arith.negf %244 : vector<8x128xf32>
    %246 = math.exp %245 : vector<8x128xf32>
    %cst_57 = arith.constant 1.000000e+00 : f32
    %247 = vector.broadcast %cst_57 : f32 to vector<8x128xf32>
    %248 = arith.addf %247, %246 : vector<8x128xf32>
    %249 = arith.divf %247, %248 : vector<8x128xf32>
    %250 = vector.extract_strided_slice %239 {offsets = [0, 128], sizes = [8, 128], strides = [1, 1]} : vector<8x384xf32> to vector<8x128xf32>
    %251 = vector.extract_strided_slice %241 {offsets = [0, 128], sizes = [8, 128], strides = [1, 1]} : vector<8x384xf32> to vector<8x128xf32>
    %252 = arith.addf %250, %251 : vector<8x128xf32>
    %253 = arith.negf %252 : vector<8x128xf32>
    %254 = math.exp %253 : vector<8x128xf32>
    %cst_58 = arith.constant 1.000000e+00 : f32
    %255 = vector.broadcast %cst_58 : f32 to vector<8x128xf32>
    %256 = arith.addf %255, %254 : vector<8x128xf32>
    %257 = arith.divf %255, %256 : vector<8x128xf32>
    %258 = vector.extract_strided_slice %239 {offsets = [0, 256], sizes = [8, 128], strides = [1, 1]} : vector<8x384xf32> to vector<8x128xf32>
    %259 = vector.extract_strided_slice %241 {offsets = [0, 256], sizes = [8, 128], strides = [1, 1]} : vector<8x384xf32> to vector<8x128xf32>
    %260 = arith.addf %259, %6 : vector<8x128xf32>
    %261 = arith.mulf %249, %260 : vector<8x128xf32>
    %262 = arith.addf %258, %261 : vector<8x128xf32>
    %263 = math.tanh %262 : vector<8x128xf32>
    %cst_59 = arith.constant 1.000000e+00 : f32
    %264 = vector.broadcast %cst_59 : f32 to vector<8x128xf32>
    %265 = arith.subf %264, %257 : vector<8x128xf32>
    %266 = arith.mulf %265, %263 : vector<8x128xf32>
    %267 = arith.mulf %257, %230 : vector<8x128xf32>
    %268 = arith.addf %266, %267 : vector<8x128xf32>
    %269 = arith.truncf %268 : vector<8x128xf32> to vector<8x128xbf16>
    %270 = arith.index_cast %c6_i32 : i32 to index
    %c0_60 = arith.constant 0 : index
    %c0_61 = arith.constant 0 : index
    %271 = vector.load %arg5[%270, %c0_60, %c0_61] : memref<8x8x128xbf16, #tpu.memory_space<vmem>>, vector<1x8x128xbf16>
    %272 = vector.shape_cast %271 : vector<1x8x128xbf16> to vector<8x128xbf16>
    %273 = vector.shape_cast %269 : vector<8x128xbf16> to vector<1x8x128xbf16>
    tpu.vector_store %arg5[%270, %c0_60, %c0_61], %273 {strides = array<i32>} : memref<8x8x128xbf16, #tpu.memory_space<vmem>>, vector<1x8x128xbf16>,
    %c7_i32 = arith.constant 7 : i32
    %274 = arith.index_cast %c7_i32 : i32 to index
    %c0_62 = arith.constant 0 : index
    %c0_63 = arith.constant 0 : index
    %275 = vector.load %arg2[%274, %c0_62, %c0_63] : memref<8x8x384xbf16, #tpu.memory_space<vmem>>, vector<1x8x384xbf16>
    %276 = vector.shape_cast %275 : vector<1x8x384xbf16> to vector<8x384xbf16>
    %277 = arith.extf %276 : vector<8x384xbf16> to vector<8x384xf32>
    %278 = arith.truncf %268 : vector<8x128xf32> to vector<8x128xbf16>
    %cst_64 = arith.constant dense<0.000000e+00> : vector<8x384xf32>
    %279 = tpu.matmul %278, %3, %cst_64 {dimension_numbers = #tpu.dot_dimension_numbers<[1], [0], [0], [1], [0, 0, 1, 1], [], []>} : vector<8x128xbf16>, vector<128x384xbf16>, vector<8x384xf32> -> vector<8x384xf32>
    %280 = vector.extract_strided_slice %277 {offsets = [0, 0], sizes = [8, 128], strides = [1, 1]} : vector<8x384xf32> to vector<8x128xf32>
    %281 = vector.extract_strided_slice %279 {offsets = [0, 0], sizes = [8, 128], strides = [1, 1]} : vector<8x384xf32> to vector<8x128xf32>
    %282 = arith.addf %280, %281 : vector<8x128xf32>
    %283 = arith.negf %282 : vector<8x128xf32>
    %284 = math.exp %283 : vector<8x128xf32>
    %cst_65 = arith.constant 1.000000e+00 : f32
    %285 = vector.broadcast %cst_65 : f32 to vector<8x128xf32>
    %286 = arith.addf %285, %284 : vector<8x128xf32>
    %287 = arith.divf %285, %286 : vector<8x128xf32>
    %288 = vector.extract_strided_slice %277 {offsets = [0, 128], sizes = [8, 128], strides = [1, 1]} : vector<8x384xf32> to vector<8x128xf32>
    %289 = vector.extract_strided_slice %279 {offsets = [0, 128], sizes = [8, 128], strides = [1, 1]} : vector<8x384xf32> to vector<8x128xf32>
    %290 = arith.addf %288, %289 : vector<8x128xf32>
    %291 = arith.negf %290 : vector<8x128xf32>
    %292 = math.exp %291 : vector<8x128xf32>
    %cst_66 = arith.constant 1.000000e+00 : f32
    %293 = vector.broadcast %cst_66 : f32 to vector<8x128xf32>
    %294 = arith.addf %293, %292 : vector<8x128xf32>
    %295 = arith.divf %293, %294 : vector<8x128xf32>
    %296 = vector.extract_strided_slice %277 {offsets = [0, 256], sizes = [8, 128], strides = [1, 1]} : vector<8x384xf32> to vector<8x128xf32>
    %297 = vector.extract_strided_slice %279 {offsets = [0, 256], sizes = [8, 128], strides = [1, 1]} : vector<8x384xf32> to vector<8x128xf32>
    %298 = arith.addf %297, %6 : vector<8x128xf32>
    %299 = arith.mulf %287, %298 : vector<8x128xf32>
    %300 = arith.addf %296, %299 : vector<8x128xf32>
    %301 = math.tanh %300 : vector<8x128xf32>
    %cst_67 = arith.constant 1.000000e+00 : f32
    %302 = vector.broadcast %cst_67 : f32 to vector<8x128xf32>
    %303 = arith.subf %302, %295 : vector<8x128xf32>
    %304 = arith.mulf %303, %301 : vector<8x128xf32>
    %305 = arith.mulf %295, %268 : vector<8x128xf32>
    %306 = arith.addf %304, %305 : vector<8x128xf32>
    %307 = arith.truncf %306 : vector<8x128xf32> to vector<8x128xbf16>
    %308 = arith.index_cast %c7_i32 : i32 to index
    %c0_68 = arith.constant 0 : index
    %c0_69 = arith.constant 0 : index
    %309 = vector.load %arg5[%308, %c0_68, %c0_69] : memref<8x8x128xbf16, #tpu.memory_space<vmem>>, vector<1x8x128xbf16>
    %310 = vector.shape_cast %309 : vector<1x8x128xbf16> to vector<8x128xbf16>
    %311 = vector.shape_cast %307 : vector<8x128xbf16> to vector<1x8x128xbf16>
    tpu.vector_store %arg5[%308, %c0_68, %c0_69], %311 {strides = array<i32>} : memref<8x8x128xbf16, #tpu.memory_space<vmem>>, vector<1x8x128xbf16>,
    %c8_i32 = arith.constant 8 : i32
    %c0_70 = arith.constant 0 : index
    %c0_71 = arith.constant 0 : index
    %312 = vector.load %arg6[%c0_70, %c0_71] : memref<8x128xf32, #tpu.memory_space<vmem>>, vector<8x128xf32>
    tpu.vector_store %arg6[%c0_70, %c0_71], %306 {strides = array<i32>} : memref<8x128xf32, #tpu.memory_space<vmem>>, vector<8x128xf32>,
    return
  }
  func.func @transform_0(%arg0: i32, %arg1: i32) -> (i32, i32, i32) {
    %c0_i32 = arith.constant 0 : i32
    %c0_i32_0 = arith.constant 0 : i32
    return %arg1, %arg0, %c0_i32 : i32, i32, i32
  }
  func.func @transform_1(%arg0: i32, %arg1: i32) -> (i32, i32) {
    %c0_i32 = arith.constant 0 : i32
    %c0_i32_0 = arith.constant 0 : i32
    %c0_i32_1 = arith.constant 0 : i32
    return %c0_i32, %c0_i32_0 : i32, i32
  }
  func.func @transform_2(%arg0: i32, %arg1: i32) -> (i32, i32) {
    %c0_i32 = arith.constant 0 : i32
    %c0_i32_0 = arith.constant 0 : i32
    %c0_i32_1 = arith.constant 0 : i32
    return %c0_i32, %c0_i32_0 : i32, i32
  }
  func.func @transform_3(%arg0: i32, %arg1: i32) -> (i32, i32, i32) {
    %c0_i32 = arith.constant 0 : i32
    %c0_i32_0 = arith.constant 0 : i32
    return %arg1, %arg0, %c0_i32 : i32, i32, i32
  }
}

module attributes {stable_mosaic.version = 11 : i64} {
  func.func @kernel(%arg0: i32, %arg1: i32, %arg2: memref<8x8x384xbf16, #tpu.memory_space<vmem>>, %arg3: memref<128x384xbf16, #tpu.memory_space<vmem>>, %arg4: memref<1x128xf32, #tpu.memory_space<vmem>>, %arg5: memref<128x128xbf16, #tpu.memory_space<vmem>>, %arg6: memref<1x128xf32, #tpu.memory_space<vmem>>, %arg7: memref<8x8x128xf32, #tpu.memory_space<vmem>>, %arg8: memref<8x128xf32, #tpu.memory_space<vmem>>, %arg9: memref<8x8x128xbf16, #tpu.memory_space<vmem>>) attributes {dimension_semantics = [#tpu.dimension_semantics<parallel>, #tpu.dimension_semantics<arbitrary>], iteration_bounds = array<i64: 1, 1>, scalar_prefetch = 0 : i64, scratch_operands = 2 : i64, tpu.core_type = #tpu.core_type<tc>, window_params = [{transform_indices = @transform_0, window_bounds = array<i64: 8, 8, 384>}, {pipeline_mode = #tpu.pipeline_mode<synchronous>, transform_indices = @transform_1, window_bounds = array<i64: 128, 384>}, {pipeline_mode = #tpu.pipeline_mode<synchronous>, transform_indices = @transform_2, window_bounds = array<i64: 1, 128>}, {pipeline_mode = #tpu.pipeline_mode<synchronous>, transform_indices = @transform_3, window_bounds = array<i64: 128, 128>}, {pipeline_mode = #tpu.pipeline_mode<synchronous>, transform_indices = @transform_4, window_bounds = array<i64: 1, 128>}, {transform_indices = @transform_5, window_bounds = array<i64: 8, 8, 128>}]} {
    %c0_i32 = arith.constant 0 : i32
    %0 = arith.cmpi eq, %arg1, %c0_i32 : i32
    %1 = arith.extui %0 : i1 to i32
    %c0_i32_0 = arith.constant 0 : i32
    %2 = arith.cmpi ne, %1, %c0_i32_0 : i32
    scf.if %2 {
      %cst_83 = arith.constant 0.000000e+00 : f32
      %331 = vector.broadcast %cst_83 : f32 to vector<8x128xf32>
      %c0_84 = arith.constant 0 : index
      %c0_85 = arith.constant 0 : index
      %332 = vector.load %arg8[%c0_84, %c0_85] : memref<8x128xf32, #tpu.memory_space<vmem>>, vector<8x128xf32>
      tpu.vector_store %arg8[%c0_84, %c0_85], %331 {strides = array<i32>} : memref<8x128xf32, #tpu.memory_space<vmem>>, vector<8x128xf32>,
    } else {
    }
    %c0 = arith.constant 0 : index
    %c0_1 = arith.constant 0 : index
    %3 = vector.load %arg3[%c0, %c0_1] : memref<128x384xbf16, #tpu.memory_space<vmem>>, vector<128x384xbf16>
    %c0_2 = arith.constant 0 : index
    %c0_3 = arith.constant 0 : index
    %4 = vector.load %arg4[%c0_2, %c0_3] : memref<1x128xf32, #tpu.memory_space<vmem>>, vector<1x128xf32>
    %5 = vector.shape_cast %4 : vector<1x128xf32> to vector<1x128xf32>
    %6 = vector.broadcast %5 : vector<1x128xf32> to vector<8x128xf32>
    %c0_4 = arith.constant 0 : index
    %c0_5 = arith.constant 0 : index
    %7 = vector.load %arg8[%c0_4, %c0_5] : memref<8x128xf32, #tpu.memory_space<vmem>>, vector<8x128xf32>
    %c0_i32_6 = arith.constant 0 : i32
    %8 = arith.index_cast %c0_i32_6 : i32 to index
    %c0_7 = arith.constant 0 : index
    %c0_8 = arith.constant 0 : index
    %9 = vector.load %arg2[%8, %c0_7, %c0_8] : memref<8x8x384xbf16, #tpu.memory_space<vmem>>, vector<1x8x384xbf16>
    %10 = vector.shape_cast %9 : vector<1x8x384xbf16> to vector<8x384xbf16>
    %11 = arith.extf %10 : vector<8x384xbf16> to vector<8x384xf32>
    %12 = arith.truncf %7 : vector<8x128xf32> to vector<8x128xbf16>
    %cst = arith.constant dense<0.000000e+00> : vector<8x384xf32>
    %13 = tpu.matmul %12, %3, %cst {dimension_numbers = #tpu.dot_dimension_numbers<[1], [0], [0], [1], [0, 0, 1, 1], [], []>} : vector<8x128xbf16>, vector<128x384xbf16>, vector<8x384xf32> -> vector<8x384xf32>
    %14 = vector.extract_strided_slice %11 {offsets = [0, 0], sizes = [8, 128], strides = [1, 1]} : vector<8x384xf32> to vector<8x128xf32>
    %15 = vector.extract_strided_slice %13 {offsets = [0, 0], sizes = [8, 128], strides = [1, 1]} : vector<8x384xf32> to vector<8x128xf32>
    %16 = arith.addf %14, %15 : vector<8x128xf32>
    %17 = arith.negf %16 : vector<8x128xf32>
    %18 = math.exp %17 : vector<8x128xf32>
    %cst_9 = arith.constant 1.000000e+00 : f32
    %19 = vector.broadcast %cst_9 : f32 to vector<8x128xf32>
    %20 = arith.addf %19, %18 : vector<8x128xf32>
    %21 = arith.divf %19, %20 : vector<8x128xf32>
    %22 = vector.extract_strided_slice %11 {offsets = [0, 128], sizes = [8, 128], strides = [1, 1]} : vector<8x384xf32> to vector<8x128xf32>
    %23 = vector.extract_strided_slice %13 {offsets = [0, 128], sizes = [8, 128], strides = [1, 1]} : vector<8x384xf32> to vector<8x128xf32>
    %24 = arith.addf %22, %23 : vector<8x128xf32>
    %25 = arith.negf %24 : vector<8x128xf32>
    %26 = math.exp %25 : vector<8x128xf32>
    %cst_10 = arith.constant 1.000000e+00 : f32
    %27 = vector.broadcast %cst_10 : f32 to vector<8x128xf32>
    %28 = arith.addf %27, %26 : vector<8x128xf32>
    %29 = arith.divf %27, %28 : vector<8x128xf32>
    %30 = vector.extract_strided_slice %11 {offsets = [0, 256], sizes = [8, 128], strides = [1, 1]} : vector<8x384xf32> to vector<8x128xf32>
    %31 = vector.extract_strided_slice %13 {offsets = [0, 256], sizes = [8, 128], strides = [1, 1]} : vector<8x384xf32> to vector<8x128xf32>
    %32 = arith.addf %31, %6 : vector<8x128xf32>
    %33 = arith.mulf %21, %32 : vector<8x128xf32>
    %34 = arith.addf %30, %33 : vector<8x128xf32>
    %35 = math.tanh %34 : vector<8x128xf32>
    %cst_11 = arith.constant 1.000000e+00 : f32
    %36 = vector.broadcast %cst_11 : f32 to vector<8x128xf32>
    %37 = arith.subf %36, %29 : vector<8x128xf32>
    %38 = arith.mulf %37, %35 : vector<8x128xf32>
    %39 = arith.mulf %29, %7 : vector<8x128xf32>
    %40 = arith.addf %38, %39 : vector<8x128xf32>
    %41 = math.tanh %40 : vector<8x128xf32>
    %42 = arith.truncf %41 : vector<8x128xf32> to vector<8x128xbf16>
    %43 = arith.index_cast %c0_i32_6 : i32 to index
    %c0_12 = arith.constant 0 : index
    %c0_13 = arith.constant 0 : index
    %44 = vector.load %arg9[%43, %c0_12, %c0_13] : memref<8x8x128xbf16, #tpu.memory_space<vmem>>, vector<1x8x128xbf16>
    %45 = vector.shape_cast %44 : vector<1x8x128xbf16> to vector<8x128xbf16>
    %46 = vector.shape_cast %42 : vector<8x128xbf16> to vector<1x8x128xbf16>
    tpu.vector_store %arg9[%43, %c0_12, %c0_13], %46 {strides = array<i32>} : memref<8x8x128xbf16, #tpu.memory_space<vmem>>, vector<1x8x128xbf16>,
    %c1_i32 = arith.constant 1 : i32
    %47 = arith.index_cast %c1_i32 : i32 to index
    %c0_14 = arith.constant 0 : index
    %c0_15 = arith.constant 0 : index
    %48 = vector.load %arg2[%47, %c0_14, %c0_15] : memref<8x8x384xbf16, #tpu.memory_space<vmem>>, vector<1x8x384xbf16>
    %49 = vector.shape_cast %48 : vector<1x8x384xbf16> to vector<8x384xbf16>
    %50 = arith.extf %49 : vector<8x384xbf16> to vector<8x384xf32>
    %51 = arith.truncf %40 : vector<8x128xf32> to vector<8x128xbf16>
    %cst_16 = arith.constant dense<0.000000e+00> : vector<8x384xf32>
    %52 = tpu.matmul %51, %3, %cst_16 {dimension_numbers = #tpu.dot_dimension_numbers<[1], [0], [0], [1], [0, 0, 1, 1], [], []>} : vector<8x128xbf16>, vector<128x384xbf16>, vector<8x384xf32> -> vector<8x384xf32>
    %53 = vector.extract_strided_slice %50 {offsets = [0, 0], sizes = [8, 128], strides = [1, 1]} : vector<8x384xf32> to vector<8x128xf32>
    %54 = vector.extract_strided_slice %52 {offsets = [0, 0], sizes = [8, 128], strides = [1, 1]} : vector<8x384xf32> to vector<8x128xf32>
    %55 = arith.addf %53, %54 : vector<8x128xf32>
    %56 = arith.negf %55 : vector<8x128xf32>
    %57 = math.exp %56 : vector<8x128xf32>
    %cst_17 = arith.constant 1.000000e+00 : f32
    %58 = vector.broadcast %cst_17 : f32 to vector<8x128xf32>
    %59 = arith.addf %58, %57 : vector<8x128xf32>
    %60 = arith.divf %58, %59 : vector<8x128xf32>
    %61 = vector.extract_strided_slice %50 {offsets = [0, 128], sizes = [8, 128], strides = [1, 1]} : vector<8x384xf32> to vector<8x128xf32>
    %62 = vector.extract_strided_slice %52 {offsets = [0, 128], sizes = [8, 128], strides = [1, 1]} : vector<8x384xf32> to vector<8x128xf32>
    %63 = arith.addf %61, %62 : vector<8x128xf32>
    %64 = arith.negf %63 : vector<8x128xf32>
    %65 = math.exp %64 : vector<8x128xf32>
    %cst_18 = arith.constant 1.000000e+00 : f32
    %66 = vector.broadcast %cst_18 : f32 to vector<8x128xf32>
    %67 = arith.addf %66, %65 : vector<8x128xf32>
    %68 = arith.divf %66, %67 : vector<8x128xf32>
    %69 = vector.extract_strided_slice %50 {offsets = [0, 256], sizes = [8, 128], strides = [1, 1]} : vector<8x384xf32> to vector<8x128xf32>
    %70 = vector.extract_strided_slice %52 {offsets = [0, 256], sizes = [8, 128], strides = [1, 1]} : vector<8x384xf32> to vector<8x128xf32>
    %71 = arith.addf %70, %6 : vector<8x128xf32>
    %72 = arith.mulf %60, %71 : vector<8x128xf32>
    %73 = arith.addf %69, %72 : vector<8x128xf32>
    %74 = math.tanh %73 : vector<8x128xf32>
    %cst_19 = arith.constant 1.000000e+00 : f32
    %75 = vector.broadcast %cst_19 : f32 to vector<8x128xf32>
    %76 = arith.subf %75, %68 : vector<8x128xf32>
    %77 = arith.mulf %76, %74 : vector<8x128xf32>
    %78 = arith.mulf %68, %40 : vector<8x128xf32>
    %79 = arith.addf %77, %78 : vector<8x128xf32>
    %80 = math.tanh %79 : vector<8x128xf32>
    %81 = arith.truncf %80 : vector<8x128xf32> to vector<8x128xbf16>
    %82 = arith.index_cast %c1_i32 : i32 to index
    %c0_20 = arith.constant 0 : index
    %c0_21 = arith.constant 0 : index
    %83 = vector.load %arg9[%82, %c0_20, %c0_21] : memref<8x8x128xbf16, #tpu.memory_space<vmem>>, vector<1x8x128xbf16>
    %84 = vector.shape_cast %83 : vector<1x8x128xbf16> to vector<8x128xbf16>
    %85 = vector.shape_cast %81 : vector<8x128xbf16> to vector<1x8x128xbf16>
    tpu.vector_store %arg9[%82, %c0_20, %c0_21], %85 {strides = array<i32>} : memref<8x8x128xbf16, #tpu.memory_space<vmem>>, vector<1x8x128xbf16>,
    %c2_i32 = arith.constant 2 : i32
    %86 = arith.index_cast %c2_i32 : i32 to index
    %c0_22 = arith.constant 0 : index
    %c0_23 = arith.constant 0 : index
    %87 = vector.load %arg2[%86, %c0_22, %c0_23] : memref<8x8x384xbf16, #tpu.memory_space<vmem>>, vector<1x8x384xbf16>
    %88 = vector.shape_cast %87 : vector<1x8x384xbf16> to vector<8x384xbf16>
    %89 = arith.extf %88 : vector<8x384xbf16> to vector<8x384xf32>
    %90 = arith.truncf %79 : vector<8x128xf32> to vector<8x128xbf16>
    %cst_24 = arith.constant dense<0.000000e+00> : vector<8x384xf32>
    %91 = tpu.matmul %90, %3, %cst_24 {dimension_numbers = #tpu.dot_dimension_numbers<[1], [0], [0], [1], [0, 0, 1, 1], [], []>} : vector<8x128xbf16>, vector<128x384xbf16>, vector<8x384xf32> -> vector<8x384xf32>
    %92 = vector.extract_strided_slice %89 {offsets = [0, 0], sizes = [8, 128], strides = [1, 1]} : vector<8x384xf32> to vector<8x128xf32>
    %93 = vector.extract_strided_slice %91 {offsets = [0, 0], sizes = [8, 128], strides = [1, 1]} : vector<8x384xf32> to vector<8x128xf32>
    %94 = arith.addf %92, %93 : vector<8x128xf32>
    %95 = arith.negf %94 : vector<8x128xf32>
    %96 = math.exp %95 : vector<8x128xf32>
    %cst_25 = arith.constant 1.000000e+00 : f32
    %97 = vector.broadcast %cst_25 : f32 to vector<8x128xf32>
    %98 = arith.addf %97, %96 : vector<8x128xf32>
    %99 = arith.divf %97, %98 : vector<8x128xf32>
    %100 = vector.extract_strided_slice %89 {offsets = [0, 128], sizes = [8, 128], strides = [1, 1]} : vector<8x384xf32> to vector<8x128xf32>
    %101 = vector.extract_strided_slice %91 {offsets = [0, 128], sizes = [8, 128], strides = [1, 1]} : vector<8x384xf32> to vector<8x128xf32>
    %102 = arith.addf %100, %101 : vector<8x128xf32>
    %103 = arith.negf %102 : vector<8x128xf32>
    %104 = math.exp %103 : vector<8x128xf32>
    %cst_26 = arith.constant 1.000000e+00 : f32
    %105 = vector.broadcast %cst_26 : f32 to vector<8x128xf32>
    %106 = arith.addf %105, %104 : vector<8x128xf32>
    %107 = arith.divf %105, %106 : vector<8x128xf32>
    %108 = vector.extract_strided_slice %89 {offsets = [0, 256], sizes = [8, 128], strides = [1, 1]} : vector<8x384xf32> to vector<8x128xf32>
    %109 = vector.extract_strided_slice %91 {offsets = [0, 256], sizes = [8, 128], strides = [1, 1]} : vector<8x384xf32> to vector<8x128xf32>
    %110 = arith.addf %109, %6 : vector<8x128xf32>
    %111 = arith.mulf %99, %110 : vector<8x128xf32>
    %112 = arith.addf %108, %111 : vector<8x128xf32>
    %113 = math.tanh %112 : vector<8x128xf32>
    %cst_27 = arith.constant 1.000000e+00 : f32
    %114 = vector.broadcast %cst_27 : f32 to vector<8x128xf32>
    %115 = arith.subf %114, %107 : vector<8x128xf32>
    %116 = arith.mulf %115, %113 : vector<8x128xf32>
    %117 = arith.mulf %107, %79 : vector<8x128xf32>
    %118 = arith.addf %116, %117 : vector<8x128xf32>
    %119 = math.tanh %118 : vector<8x128xf32>
    %120 = arith.truncf %119 : vector<8x128xf32> to vector<8x128xbf16>
    %121 = arith.index_cast %c2_i32 : i32 to index
    %c0_28 = arith.constant 0 : index
    %c0_29 = arith.constant 0 : index
    %122 = vector.load %arg9[%121, %c0_28, %c0_29] : memref<8x8x128xbf16, #tpu.memory_space<vmem>>, vector<1x8x128xbf16>
    %123 = vector.shape_cast %122 : vector<1x8x128xbf16> to vector<8x128xbf16>
    %124 = vector.shape_cast %120 : vector<8x128xbf16> to vector<1x8x128xbf16>
    tpu.vector_store %arg9[%121, %c0_28, %c0_29], %124 {strides = array<i32>} : memref<8x8x128xbf16, #tpu.memory_space<vmem>>, vector<1x8x128xbf16>,
    %c3_i32 = arith.constant 3 : i32
    %125 = arith.index_cast %c3_i32 : i32 to index
    %c0_30 = arith.constant 0 : index
    %c0_31 = arith.constant 0 : index
    %126 = vector.load %arg2[%125, %c0_30, %c0_31] : memref<8x8x384xbf16, #tpu.memory_space<vmem>>, vector<1x8x384xbf16>
    %127 = vector.shape_cast %126 : vector<1x8x384xbf16> to vector<8x384xbf16>
    %128 = arith.extf %127 : vector<8x384xbf16> to vector<8x384xf32>
    %129 = arith.truncf %118 : vector<8x128xf32> to vector<8x128xbf16>
    %cst_32 = arith.constant dense<0.000000e+00> : vector<8x384xf32>
    %130 = tpu.matmul %129, %3, %cst_32 {dimension_numbers = #tpu.dot_dimension_numbers<[1], [0], [0], [1], [0, 0, 1, 1], [], []>} : vector<8x128xbf16>, vector<128x384xbf16>, vector<8x384xf32> -> vector<8x384xf32>
    %131 = vector.extract_strided_slice %128 {offsets = [0, 0], sizes = [8, 128], strides = [1, 1]} : vector<8x384xf32> to vector<8x128xf32>
    %132 = vector.extract_strided_slice %130 {offsets = [0, 0], sizes = [8, 128], strides = [1, 1]} : vector<8x384xf32> to vector<8x128xf32>
    %133 = arith.addf %131, %132 : vector<8x128xf32>
    %134 = arith.negf %133 : vector<8x128xf32>
    %135 = math.exp %134 : vector<8x128xf32>
    %cst_33 = arith.constant 1.000000e+00 : f32
    %136 = vector.broadcast %cst_33 : f32 to vector<8x128xf32>
    %137 = arith.addf %136, %135 : vector<8x128xf32>
    %138 = arith.divf %136, %137 : vector<8x128xf32>
    %139 = vector.extract_strided_slice %128 {offsets = [0, 128], sizes = [8, 128], strides = [1, 1]} : vector<8x384xf32> to vector<8x128xf32>
    %140 = vector.extract_strided_slice %130 {offsets = [0, 128], sizes = [8, 128], strides = [1, 1]} : vector<8x384xf32> to vector<8x128xf32>
    %141 = arith.addf %139, %140 : vector<8x128xf32>
    %142 = arith.negf %141 : vector<8x128xf32>
    %143 = math.exp %142 : vector<8x128xf32>
    %cst_34 = arith.constant 1.000000e+00 : f32
    %144 = vector.broadcast %cst_34 : f32 to vector<8x128xf32>
    %145 = arith.addf %144, %143 : vector<8x128xf32>
    %146 = arith.divf %144, %145 : vector<8x128xf32>
    %147 = vector.extract_strided_slice %128 {offsets = [0, 256], sizes = [8, 128], strides = [1, 1]} : vector<8x384xf32> to vector<8x128xf32>
    %148 = vector.extract_strided_slice %130 {offsets = [0, 256], sizes = [8, 128], strides = [1, 1]} : vector<8x384xf32> to vector<8x128xf32>
    %149 = arith.addf %148, %6 : vector<8x128xf32>
    %150 = arith.mulf %138, %149 : vector<8x128xf32>
    %151 = arith.addf %147, %150 : vector<8x128xf32>
    %152 = math.tanh %151 : vector<8x128xf32>
    %cst_35 = arith.constant 1.000000e+00 : f32
    %153 = vector.broadcast %cst_35 : f32 to vector<8x128xf32>
    %154 = arith.subf %153, %146 : vector<8x128xf32>
    %155 = arith.mulf %154, %152 : vector<8x128xf32>
    %156 = arith.mulf %146, %118 : vector<8x128xf32>
    %157 = arith.addf %155, %156 : vector<8x128xf32>
    %158 = math.tanh %157 : vector<8x128xf32>
    %159 = arith.truncf %158 : vector<8x128xf32> to vector<8x128xbf16>
    %160 = arith.index_cast %c3_i32 : i32 to index
    %c0_36 = arith.constant 0 : index
    %c0_37 = arith.constant 0 : index
    %161 = vector.load %arg9[%160, %c0_36, %c0_37] : memref<8x8x128xbf16, #tpu.memory_space<vmem>>, vector<1x8x128xbf16>
    %162 = vector.shape_cast %161 : vector<1x8x128xbf16> to vector<8x128xbf16>
    %163 = vector.shape_cast %159 : vector<8x128xbf16> to vector<1x8x128xbf16>
    tpu.vector_store %arg9[%160, %c0_36, %c0_37], %163 {strides = array<i32>} : memref<8x8x128xbf16, #tpu.memory_space<vmem>>, vector<1x8x128xbf16>,
    %c4_i32 = arith.constant 4 : i32
    %164 = arith.index_cast %c4_i32 : i32 to index
    %c0_38 = arith.constant 0 : index
    %c0_39 = arith.constant 0 : index
    %165 = vector.load %arg2[%164, %c0_38, %c0_39] : memref<8x8x384xbf16, #tpu.memory_space<vmem>>, vector<1x8x384xbf16>
    %166 = vector.shape_cast %165 : vector<1x8x384xbf16> to vector<8x384xbf16>
    %167 = arith.extf %166 : vector<8x384xbf16> to vector<8x384xf32>
    %168 = arith.truncf %157 : vector<8x128xf32> to vector<8x128xbf16>
    %cst_40 = arith.constant dense<0.000000e+00> : vector<8x384xf32>
    %169 = tpu.matmul %168, %3, %cst_40 {dimension_numbers = #tpu.dot_dimension_numbers<[1], [0], [0], [1], [0, 0, 1, 1], [], []>} : vector<8x128xbf16>, vector<128x384xbf16>, vector<8x384xf32> -> vector<8x384xf32>
    %170 = vector.extract_strided_slice %167 {offsets = [0, 0], sizes = [8, 128], strides = [1, 1]} : vector<8x384xf32> to vector<8x128xf32>
    %171 = vector.extract_strided_slice %169 {offsets = [0, 0], sizes = [8, 128], strides = [1, 1]} : vector<8x384xf32> to vector<8x128xf32>
    %172 = arith.addf %170, %171 : vector<8x128xf32>
    %173 = arith.negf %172 : vector<8x128xf32>
    %174 = math.exp %173 : vector<8x128xf32>
    %cst_41 = arith.constant 1.000000e+00 : f32
    %175 = vector.broadcast %cst_41 : f32 to vector<8x128xf32>
    %176 = arith.addf %175, %174 : vector<8x128xf32>
    %177 = arith.divf %175, %176 : vector<8x128xf32>
    %178 = vector.extract_strided_slice %167 {offsets = [0, 128], sizes = [8, 128], strides = [1, 1]} : vector<8x384xf32> to vector<8x128xf32>
    %179 = vector.extract_strided_slice %169 {offsets = [0, 128], sizes = [8, 128], strides = [1, 1]} : vector<8x384xf32> to vector<8x128xf32>
    %180 = arith.addf %178, %179 : vector<8x128xf32>
    %181 = arith.negf %180 : vector<8x128xf32>
    %182 = math.exp %181 : vector<8x128xf32>
    %cst_42 = arith.constant 1.000000e+00 : f32
    %183 = vector.broadcast %cst_42 : f32 to vector<8x128xf32>
    %184 = arith.addf %183, %182 : vector<8x128xf32>
    %185 = arith.divf %183, %184 : vector<8x128xf32>
    %186 = vector.extract_strided_slice %167 {offsets = [0, 256], sizes = [8, 128], strides = [1, 1]} : vector<8x384xf32> to vector<8x128xf32>
    %187 = vector.extract_strided_slice %169 {offsets = [0, 256], sizes = [8, 128], strides = [1, 1]} : vector<8x384xf32> to vector<8x128xf32>
    %188 = arith.addf %187, %6 : vector<8x128xf32>
    %189 = arith.mulf %177, %188 : vector<8x128xf32>
    %190 = arith.addf %186, %189 : vector<8x128xf32>
    %191 = math.tanh %190 : vector<8x128xf32>
    %cst_43 = arith.constant 1.000000e+00 : f32
    %192 = vector.broadcast %cst_43 : f32 to vector<8x128xf32>
    %193 = arith.subf %192, %185 : vector<8x128xf32>
    %194 = arith.mulf %193, %191 : vector<8x128xf32>
    %195 = arith.mulf %185, %157 : vector<8x128xf32>
    %196 = arith.addf %194, %195 : vector<8x128xf32>
    %197 = math.tanh %196 : vector<8x128xf32>
    %198 = arith.truncf %197 : vector<8x128xf32> to vector<8x128xbf16>
    %199 = arith.index_cast %c4_i32 : i32 to index
    %c0_44 = arith.constant 0 : index
    %c0_45 = arith.constant 0 : index
    %200 = vector.load %arg9[%199, %c0_44, %c0_45] : memref<8x8x128xbf16, #tpu.memory_space<vmem>>, vector<1x8x128xbf16>
    %201 = vector.shape_cast %200 : vector<1x8x128xbf16> to vector<8x128xbf16>
    %202 = vector.shape_cast %198 : vector<8x128xbf16> to vector<1x8x128xbf16>
    tpu.vector_store %arg9[%199, %c0_44, %c0_45], %202 {strides = array<i32>} : memref<8x8x128xbf16, #tpu.memory_space<vmem>>, vector<1x8x128xbf16>,
    %c5_i32 = arith.constant 5 : i32
    %203 = arith.index_cast %c5_i32 : i32 to index
    %c0_46 = arith.constant 0 : index
    %c0_47 = arith.constant 0 : index
    %204 = vector.load %arg2[%203, %c0_46, %c0_47] : memref<8x8x384xbf16, #tpu.memory_space<vmem>>, vector<1x8x384xbf16>
    %205 = vector.shape_cast %204 : vector<1x8x384xbf16> to vector<8x384xbf16>
    %206 = arith.extf %205 : vector<8x384xbf16> to vector<8x384xf32>
    %207 = arith.truncf %196 : vector<8x128xf32> to vector<8x128xbf16>
    %cst_48 = arith.constant dense<0.000000e+00> : vector<8x384xf32>
    %208 = tpu.matmul %207, %3, %cst_48 {dimension_numbers = #tpu.dot_dimension_numbers<[1], [0], [0], [1], [0, 0, 1, 1], [], []>} : vector<8x128xbf16>, vector<128x384xbf16>, vector<8x384xf32> -> vector<8x384xf32>
    %209 = vector.extract_strided_slice %206 {offsets = [0, 0], sizes = [8, 128], strides = [1, 1]} : vector<8x384xf32> to vector<8x128xf32>
    %210 = vector.extract_strided_slice %208 {offsets = [0, 0], sizes = [8, 128], strides = [1, 1]} : vector<8x384xf32> to vector<8x128xf32>
    %211 = arith.addf %209, %210 : vector<8x128xf32>
    %212 = arith.negf %211 : vector<8x128xf32>
    %213 = math.exp %212 : vector<8x128xf32>
    %cst_49 = arith.constant 1.000000e+00 : f32
    %214 = vector.broadcast %cst_49 : f32 to vector<8x128xf32>
    %215 = arith.addf %214, %213 : vector<8x128xf32>
    %216 = arith.divf %214, %215 : vector<8x128xf32>
    %217 = vector.extract_strided_slice %206 {offsets = [0, 128], sizes = [8, 128], strides = [1, 1]} : vector<8x384xf32> to vector<8x128xf32>
    %218 = vector.extract_strided_slice %208 {offsets = [0, 128], sizes = [8, 128], strides = [1, 1]} : vector<8x384xf32> to vector<8x128xf32>
    %219 = arith.addf %217, %218 : vector<8x128xf32>
    %220 = arith.negf %219 : vector<8x128xf32>
    %221 = math.exp %220 : vector<8x128xf32>
    %cst_50 = arith.constant 1.000000e+00 : f32
    %222 = vector.broadcast %cst_50 : f32 to vector<8x128xf32>
    %223 = arith.addf %222, %221 : vector<8x128xf32>
    %224 = arith.divf %222, %223 : vector<8x128xf32>
    %225 = vector.extract_strided_slice %206 {offsets = [0, 256], sizes = [8, 128], strides = [1, 1]} : vector<8x384xf32> to vector<8x128xf32>
    %226 = vector.extract_strided_slice %208 {offsets = [0, 256], sizes = [8, 128], strides = [1, 1]} : vector<8x384xf32> to vector<8x128xf32>
    %227 = arith.addf %226, %6 : vector<8x128xf32>
    %228 = arith.mulf %216, %227 : vector<8x128xf32>
    %229 = arith.addf %225, %228 : vector<8x128xf32>
    %230 = math.tanh %229 : vector<8x128xf32>
    %cst_51 = arith.constant 1.000000e+00 : f32
    %231 = vector.broadcast %cst_51 : f32 to vector<8x128xf32>
    %232 = arith.subf %231, %224 : vector<8x128xf32>
    %233 = arith.mulf %232, %230 : vector<8x128xf32>
    %234 = arith.mulf %224, %196 : vector<8x128xf32>
    %235 = arith.addf %233, %234 : vector<8x128xf32>
    %236 = math.tanh %235 : vector<8x128xf32>
    %237 = arith.truncf %236 : vector<8x128xf32> to vector<8x128xbf16>
    %238 = arith.index_cast %c5_i32 : i32 to index
    %c0_52 = arith.constant 0 : index
    %c0_53 = arith.constant 0 : index
    %239 = vector.load %arg9[%238, %c0_52, %c0_53] : memref<8x8x128xbf16, #tpu.memory_space<vmem>>, vector<1x8x128xbf16>
    %240 = vector.shape_cast %239 : vector<1x8x128xbf16> to vector<8x128xbf16>
    %241 = vector.shape_cast %237 : vector<8x128xbf16> to vector<1x8x128xbf16>
    tpu.vector_store %arg9[%238, %c0_52, %c0_53], %241 {strides = array<i32>} : memref<8x8x128xbf16, #tpu.memory_space<vmem>>, vector<1x8x128xbf16>,
    %c6_i32 = arith.constant 6 : i32
    %242 = arith.index_cast %c6_i32 : i32 to index
    %c0_54 = arith.constant 0 : index
    %c0_55 = arith.constant 0 : index
    %243 = vector.load %arg2[%242, %c0_54, %c0_55] : memref<8x8x384xbf16, #tpu.memory_space<vmem>>, vector<1x8x384xbf16>
    %244 = vector.shape_cast %243 : vector<1x8x384xbf16> to vector<8x384xbf16>
    %245 = arith.extf %244 : vector<8x384xbf16> to vector<8x384xf32>
    %246 = arith.truncf %235 : vector<8x128xf32> to vector<8x128xbf16>
    %cst_56 = arith.constant dense<0.000000e+00> : vector<8x384xf32>
    %247 = tpu.matmul %246, %3, %cst_56 {dimension_numbers = #tpu.dot_dimension_numbers<[1], [0], [0], [1], [0, 0, 1, 1], [], []>} : vector<8x128xbf16>, vector<128x384xbf16>, vector<8x384xf32> -> vector<8x384xf32>
    %248 = vector.extract_strided_slice %245 {offsets = [0, 0], sizes = [8, 128], strides = [1, 1]} : vector<8x384xf32> to vector<8x128xf32>
    %249 = vector.extract_strided_slice %247 {offsets = [0, 0], sizes = [8, 128], strides = [1, 1]} : vector<8x384xf32> to vector<8x128xf32>
    %250 = arith.addf %248, %249 : vector<8x128xf32>
    %251 = arith.negf %250 : vector<8x128xf32>
    %252 = math.exp %251 : vector<8x128xf32>
    %cst_57 = arith.constant 1.000000e+00 : f32
    %253 = vector.broadcast %cst_57 : f32 to vector<8x128xf32>
    %254 = arith.addf %253, %252 : vector<8x128xf32>
    %255 = arith.divf %253, %254 : vector<8x128xf32>
    %256 = vector.extract_strided_slice %245 {offsets = [0, 128], sizes = [8, 128], strides = [1, 1]} : vector<8x384xf32> to vector<8x128xf32>
    %257 = vector.extract_strided_slice %247 {offsets = [0, 128], sizes = [8, 128], strides = [1, 1]} : vector<8x384xf32> to vector<8x128xf32>
    %258 = arith.addf %256, %257 : vector<8x128xf32>
    %259 = arith.negf %258 : vector<8x128xf32>
    %260 = math.exp %259 : vector<8x128xf32>
    %cst_58 = arith.constant 1.000000e+00 : f32
    %261 = vector.broadcast %cst_58 : f32 to vector<8x128xf32>
    %262 = arith.addf %261, %260 : vector<8x128xf32>
    %263 = arith.divf %261, %262 : vector<8x128xf32>
    %264 = vector.extract_strided_slice %245 {offsets = [0, 256], sizes = [8, 128], strides = [1, 1]} : vector<8x384xf32> to vector<8x128xf32>
    %265 = vector.extract_strided_slice %247 {offsets = [0, 256], sizes = [8, 128], strides = [1, 1]} : vector<8x384xf32> to vector<8x128xf32>
    %266 = arith.addf %265, %6 : vector<8x128xf32>
    %267 = arith.mulf %255, %266 : vector<8x128xf32>
    %268 = arith.addf %264, %267 : vector<8x128xf32>
    %269 = math.tanh %268 : vector<8x128xf32>
    %cst_59 = arith.constant 1.000000e+00 : f32
    %270 = vector.broadcast %cst_59 : f32 to vector<8x128xf32>
    %271 = arith.subf %270, %263 : vector<8x128xf32>
    %272 = arith.mulf %271, %269 : vector<8x128xf32>
    %273 = arith.mulf %263, %235 : vector<8x128xf32>
    %274 = arith.addf %272, %273 : vector<8x128xf32>
    %275 = math.tanh %274 : vector<8x128xf32>
    %276 = arith.truncf %275 : vector<8x128xf32> to vector<8x128xbf16>
    %277 = arith.index_cast %c6_i32 : i32 to index
    %c0_60 = arith.constant 0 : index
    %c0_61 = arith.constant 0 : index
    %278 = vector.load %arg9[%277, %c0_60, %c0_61] : memref<8x8x128xbf16, #tpu.memory_space<vmem>>, vector<1x8x128xbf16>
    %279 = vector.shape_cast %278 : vector<1x8x128xbf16> to vector<8x128xbf16>
    %280 = vector.shape_cast %276 : vector<8x128xbf16> to vector<1x8x128xbf16>
    tpu.vector_store %arg9[%277, %c0_60, %c0_61], %280 {strides = array<i32>} : memref<8x8x128xbf16, #tpu.memory_space<vmem>>, vector<1x8x128xbf16>,
    %c7_i32 = arith.constant 7 : i32
    %281 = arith.index_cast %c7_i32 : i32 to index
    %c0_62 = arith.constant 0 : index
    %c0_63 = arith.constant 0 : index
    %282 = vector.load %arg2[%281, %c0_62, %c0_63] : memref<8x8x384xbf16, #tpu.memory_space<vmem>>, vector<1x8x384xbf16>
    %283 = vector.shape_cast %282 : vector<1x8x384xbf16> to vector<8x384xbf16>
    %284 = arith.extf %283 : vector<8x384xbf16> to vector<8x384xf32>
    %285 = arith.truncf %274 : vector<8x128xf32> to vector<8x128xbf16>
    %cst_64 = arith.constant dense<0.000000e+00> : vector<8x384xf32>
    %286 = tpu.matmul %285, %3, %cst_64 {dimension_numbers = #tpu.dot_dimension_numbers<[1], [0], [0], [1], [0, 0, 1, 1], [], []>} : vector<8x128xbf16>, vector<128x384xbf16>, vector<8x384xf32> -> vector<8x384xf32>
    %287 = vector.extract_strided_slice %284 {offsets = [0, 0], sizes = [8, 128], strides = [1, 1]} : vector<8x384xf32> to vector<8x128xf32>
    %288 = vector.extract_strided_slice %286 {offsets = [0, 0], sizes = [8, 128], strides = [1, 1]} : vector<8x384xf32> to vector<8x128xf32>
    %289 = arith.addf %287, %288 : vector<8x128xf32>
    %290 = arith.negf %289 : vector<8x128xf32>
    %291 = math.exp %290 : vector<8x128xf32>
    %cst_65 = arith.constant 1.000000e+00 : f32
    %292 = vector.broadcast %cst_65 : f32 to vector<8x128xf32>
    %293 = arith.addf %292, %291 : vector<8x128xf32>
    %294 = arith.divf %292, %293 : vector<8x128xf32>
    %295 = vector.extract_strided_slice %284 {offsets = [0, 128], sizes = [8, 128], strides = [1, 1]} : vector<8x384xf32> to vector<8x128xf32>
    %296 = vector.extract_strided_slice %286 {offsets = [0, 128], sizes = [8, 128], strides = [1, 1]} : vector<8x384xf32> to vector<8x128xf32>
    %297 = arith.addf %295, %296 : vector<8x128xf32>
    %298 = arith.negf %297 : vector<8x128xf32>
    %299 = math.exp %298 : vector<8x128xf32>
    %cst_66 = arith.constant 1.000000e+00 : f32
    %300 = vector.broadcast %cst_66 : f32 to vector<8x128xf32>
    %301 = arith.addf %300, %299 : vector<8x128xf32>
    %302 = arith.divf %300, %301 : vector<8x128xf32>
    %303 = vector.extract_strided_slice %284 {offsets = [0, 256], sizes = [8, 128], strides = [1, 1]} : vector<8x384xf32> to vector<8x128xf32>
    %304 = vector.extract_strided_slice %286 {offsets = [0, 256], sizes = [8, 128], strides = [1, 1]} : vector<8x384xf32> to vector<8x128xf32>
    %305 = arith.addf %304, %6 : vector<8x128xf32>
    %306 = arith.mulf %294, %305 : vector<8x128xf32>
    %307 = arith.addf %303, %306 : vector<8x128xf32>
    %308 = math.tanh %307 : vector<8x128xf32>
    %cst_67 = arith.constant 1.000000e+00 : f32
    %309 = vector.broadcast %cst_67 : f32 to vector<8x128xf32>
    %310 = arith.subf %309, %302 : vector<8x128xf32>
    %311 = arith.mulf %310, %308 : vector<8x128xf32>
    %312 = arith.mulf %302, %274 : vector<8x128xf32>
    %313 = arith.addf %311, %312 : vector<8x128xf32>
    %314 = math.tanh %313 : vector<8x128xf32>
    %315 = arith.truncf %314 : vector<8x128xf32> to vector<8x128xbf16>
    %316 = arith.index_cast %c7_i32 : i32 to index
    %c0_68 = arith.constant 0 : index
    %c0_69 = arith.constant 0 : index
    %317 = vector.load %arg9[%316, %c0_68, %c0_69] : memref<8x8x128xbf16, #tpu.memory_space<vmem>>, vector<1x8x128xbf16>
    %318 = vector.shape_cast %317 : vector<1x8x128xbf16> to vector<8x128xbf16>
    %319 = vector.shape_cast %315 : vector<8x128xbf16> to vector<1x8x128xbf16>
    tpu.vector_store %arg9[%316, %c0_68, %c0_69], %319 {strides = array<i32>} : memref<8x8x128xbf16, #tpu.memory_space<vmem>>, vector<1x8x128xbf16>,
    %c8_i32 = arith.constant 8 : i32
    %c0_70 = arith.constant 0 : index
    %c0_71 = arith.constant 0 : index
    %320 = vector.load %arg8[%c0_70, %c0_71] : memref<8x128xf32, #tpu.memory_space<vmem>>, vector<8x128xf32>
    tpu.vector_store %arg8[%c0_70, %c0_71], %313 {strides = array<i32>} : memref<8x128xf32, #tpu.memory_space<vmem>>, vector<8x128xf32>,
    %c0_72 = arith.constant 0 : index
    %c0_73 = arith.constant 0 : index
    %c0_74 = arith.constant 0 : index
    %321 = vector.load %arg9[%c0_72, %c0_73, %c0_74] : memref<8x8x128xbf16, #tpu.memory_space<vmem>>, vector<8x8x128xbf16>
    %322 = vector.shape_cast %321 : vector<8x8x128xbf16> to vector<64x128xbf16>
    %c0_75 = arith.constant 0 : index
    %c0_76 = arith.constant 0 : index
    %323 = vector.load %arg5[%c0_75, %c0_76] : memref<128x128xbf16, #tpu.memory_space<vmem>>, vector<128x128xbf16>
    %cst_77 = arith.constant dense<0.000000e+00> : vector<64x128xf32>
    %324 = tpu.matmul %322, %323, %cst_77 {dimension_numbers = #tpu.dot_dimension_numbers<[1], [0], [0], [1], [0, 0, 1, 1], [], []>} : vector<64x128xbf16>, vector<128x128xbf16>, vector<64x128xf32> -> vector<64x128xf32>
    %c0_78 = arith.constant 0 : index
    %c0_79 = arith.constant 0 : index
    %325 = vector.load %arg6[%c0_78, %c0_79] : memref<1x128xf32, #tpu.memory_space<vmem>>, vector<1x128xf32>
    %326 = vector.broadcast %325 : vector<1x128xf32> to vector<64x128xf32>
    %327 = arith.addf %324, %326 : vector<64x128xf32>
    %328 = math.tanh %327 : vector<64x128xf32>
    %329 = vector.shape_cast %328 : vector<64x128xf32> to vector<8x8x128xf32>
    %c0_80 = arith.constant 0 : index
    %c0_81 = arith.constant 0 : index
    %c0_82 = arith.constant 0 : index
    %330 = vector.load %arg7[%c0_80, %c0_81, %c0_82] : memref<8x8x128xf32, #tpu.memory_space<vmem>>, vector<8x8x128xf32>
    tpu.vector_store %arg7[%c0_80, %c0_81, %c0_82], %329 {strides = array<i32>} : memref<8x8x128xf32, #tpu.memory_space<vmem>>, vector<8x8x128xf32>,
    return
  }
  func.func @transform_0(%arg0: i32, %arg1: i32) -> (i32, i32, i32) {
    %c0_i32 = arith.constant 0 : i32
    %c0_i32_0 = arith.constant 0 : i32
    return %arg1, %arg0, %c0_i32 : i32, i32, i32
  }
  func.func @transform_1(%arg0: i32, %arg1: i32) -> (i32, i32) {
    %c0_i32 = arith.constant 0 : i32
    %c0_i32_0 = arith.constant 0 : i32
    %c0_i32_1 = arith.constant 0 : i32
    return %c0_i32, %c0_i32_0 : i32, i32
  }
  func.func @transform_2(%arg0: i32, %arg1: i32) -> (i32, i32) {
    %c0_i32 = arith.constant 0 : i32
    %c0_i32_0 = arith.constant 0 : i32
    %c0_i32_1 = arith.constant 0 : i32
    return %c0_i32, %c0_i32_0 : i32, i32
  }
  func.func @transform_3(%arg0: i32, %arg1: i32) -> (i32, i32) {
    %c0_i32 = arith.constant 0 : i32
    %c0_i32_0 = arith.constant 0 : i32
    %c0_i32_1 = arith.constant 0 : i32
    return %c0_i32, %c0_i32_0 : i32, i32
  }
  func.func @transform_4(%arg0: i32, %arg1: i32) -> (i32, i32) {
    %c0_i32 = arith.constant 0 : i32
    %c0_i32_0 = arith.constant 0 : i32
    %c0_i32_1 = arith.constant 0 : i32
    return %c0_i32, %c0_i32_0 : i32, i32
  }
  func.func @transform_5(%arg0: i32, %arg1: i32) -> (i32, i32, i32) {
    %c0_i32 = arith.constant 0 : i32
    %c0_i32_0 = arith.constant 0 : i32
    return %arg1, %arg0, %c0_i32 : i32, i32, i32
  }
}

</mosaic_0001>

<bundles_post_ra>
// kernel: gru_dense_forward.6
= control target key start
LH: loop header
LB: loop body
LE: loop exit
PB: predicated region body
PF: predicated region fallthrough
CT: control target
= control target key end

     0   :  { %8 = vsyncpa [#allocation3], 0  ;;  %s531_s15 = smov [#allocation2]   ;;  %s532_s17 = smov 192   ;;  %s650_s0 = inlined_call_operand.vmem [shape: bf16[64,128], index: 0, kind: input, shape index: {}]   ;;  %s651_s1 = inlined_call_operand.hbm [shape: bf16[128,384], index: 1, kind: input, shape index: {}]   ;;  %s652_s2 = inlined_call_operand.vmem [shape: f32[1,384], index: 2, kind: input, shape index: {}]   ;;  %s653_s3 = inlined_call_operand.vmem [shape: bf16[64,384], index: 3, kind: output, shape index: {}]  }
   0x1   :  { %s15_s14 = sshll.u32 %s651_s1, 4  ;;  %s17_s16 = sshll.u32 %s531_s15, 4  ;;  %s16_s14 = int_to_ptr.hbm [resolvable:$true] %s15_s14  ;;  %s18_s16 = int_to_ptr.vmem [resolvable:$true] %s17_s16 }
   0x2   :  { %s533_s18 = smov 12  }
   0x3   :  { %23 = dma.hbm_to_vmem [thread:$0]  %s16_s14, 3072, %s18_s16, [#allocation3], %s532_s17, %s532_s17, %s533_s18  }
   0x4   :  { %529 = dma.done.wait [#allocation3], 3072  }
   0x5   :  { %530 = vsyncadd [#allocation3], 4294964224  ;;  %v456_v0 = vld [vmem:[#allocation2 + $0xa8] sm:$0xf]  ;;  %v492_v1 = vld [vmem:[#allocation2 + $0xb0] sm:$0xf0] }
   0x6   :  { %v491_v2 = vld [vmem:[#allocation2 + $0xac] sm:$0xf]  ;;  %v457_v3 = vor.u32 %v492_v1, %v456_v0  ;;  %v458_v4 = vld [vmem:[#allocation2 + $0xb4] sm:$0xf0]  ;;  %v464_v5 = vld [vmem:[#allocation2 + $0xb0] sm:$0xf] }
   0x7   :  { %v493_v6 = vld [vmem:[#allocation2 + $0xb8] sm:$0xf0]  ;;  %v461_v7 = vor.u32 %v491_v2, %v458_v4  ;;  %v444_v9 = vld [vmem:[#allocation2 + $0x90] sm:$0xf]  ;;  %v488_v11 = vld [vmem:[#allocation2 + $0x94] sm:$0xf] }
   0x8   :  { %v465_v8 = vor.u32 %v493_v6, %v464_v5  ;;  %v489_v10 = vld [vmem:[#allocation2 + $0x98] sm:$0xf0]  ;;  %230 = vmatpush.bf16.msra.mxu0 %v457_v3  ;;  %v446_v13 = vld [vmem:[#allocation2 + $0x9c] sm:$0xf0]  ;;  %v452_v14 = vld [vmem:[#allocation2 + $0x98] sm:$0xf]  ;;  %494 = vmatpush.bf16.msra.mxu3 %v457_v3 }
   0x9   :  { %v445_v12 = vor.u32 %v489_v10, %v444_v9  ;;  %v490_v15 = vld [vmem:[#allocation2 + $0xa0] sm:$0xf0]  ;;  %259 = vmatpush.bf16.msra.mxu1 %v461_v7  ;;  %v449_v16 = vor.u32 %v488_v11, %v446_v13  ;;  %v432_v18 = vld [vmem:[#allocation2 + $0x78] sm:$0xf]  ;;  %v485_v20 = vld [vmem:[#allocation2 + $0x7c] sm:$0xf] }
   0xa   :  { %288 = vmatpush.bf16.msra.mxu2 %v465_v8  ;;  %v453_v17 = vor.u32 %v490_v15, %v452_v14  ;;  %v486_v19 = vld [vmem:[#allocation2 + $0x80] sm:$0xf0]  ;;  %v434_v21 = vld [vmem:[#allocation2 + $0x84] sm:$0xf0]  ;;  %v440_v22 = vld [vmem:[#allocation2 + $0x80] sm:$0xf] }
   0xb   :  { %v487_v23 = vld [vmem:[#allocation2 + $0x88] sm:$0xf0]  ;;  %v433_v24 = vor.u32 %v486_v19, %v432_v18  ;;  %v437_v25 = vor.u32 %v485_v20, %v434_v21  ;;  %v420_v27 = vld [vmem:[#allocation2 + $0x60] sm:$0xf]  ;;  %v482_v29 = vld [vmem:[#allocation2 + $0x64] sm:$0xf] }
   0xc   :  { %231 = vmatpush.bf16.msra.mxu0 %v445_v12  ;;  %495 = vmatpush.bf16.msra.mxu3 %v445_v12  ;;  %v441_v26 = vor.u32 %v487_v23, %v440_v22  ;;  %v483_v28 = vld [vmem:[#allocation2 + $0x68] sm:$0xf0]  ;;  %v422_v30 = vld [vmem:[#allocation2 + $0x6c] sm:$0xf0]  ;;  %v428_v31 = vld [vmem:[#allocation2 + $0x68] sm:$0xf] }
   0xd   :  { %260 = vmatpush.bf16.msra.mxu1 %v449_v16  ;;  %v484_v32 = vld [vmem:[#allocation2 + $0x70] sm:$0xf0]  ;;  %v421_v33 = vor.u32 %v483_v28, %v420_v27  ;;  %v425_v34 = vor.u32 %v482_v29, %v422_v30  ;;  %v408_v36 = vld [vmem:[#allocation2 + $0x48] sm:$0xf]  ;;  %v479_v38 = vld [vmem:[#allocation2 + $0x4c] sm:$0xf] }
   0xe   :  { %289 = vmatpush.bf16.msra.mxu2 %v453_v17  ;;  %v429_v35 = vor.u32 %v484_v32, %v428_v31  ;;  %v480_v37 = vld [vmem:[#allocation2 + $0x50] sm:$0xf0]  ;;  %v410_v39 = vld [vmem:[#allocation2 + $0x54] sm:$0xf0]  ;;  %v416_v40 = vld [vmem:[#allocation2 + $0x50] sm:$0xf] }
   0xf   :  { %v481_v41 = vld [vmem:[#allocation2 + $0x58] sm:$0xf0]  ;;  %v409_v42 = vor.u32 %v480_v37, %v408_v36  ;;  %v413_v43 = vor.u32 %v479_v38, %v410_v39  ;;  %v396_v45 = vld [vmem:[#allocation2 + $0x30] sm:$0xf]  ;;  %v476_v47 = vld [vmem:[#allocation2 + $0x34] sm:$0xf] }
  0x10   :  { %232 = vmatpush.bf16.msra.mxu0 %v433_v24  ;;  %496 = vmatpush.bf16.msra.mxu3 %v433_v24  ;;  %v417_v44 = vor.u32 %v481_v41, %v416_v40  ;;  %v477_v46 = vld [vmem:[#allocation2 + $0x38] sm:$0xf0]  ;;  %v398_v48 = vld [vmem:[#allocation2 + $0x3c] sm:$0xf0]  ;;  %v404_v49 = vld [vmem:[#allocation2 + $0x38] sm:$0xf] }
  0x11   :  { %261 = vmatpush.bf16.msra.mxu1 %v437_v25  ;;  %v478_v50 = vld [vmem:[#allocation2 + $0x40] sm:$0xf0]  ;;  %v397_v51 = vor.u32 %v477_v46, %v396_v45  ;;  %v401_v52 = vor.u32 %v476_v47, %v398_v48  ;;  %v384_v54 = vld [vmem:[#allocation2 + $0x18] sm:$0xf]  ;;  %v473_v56 = vld [vmem:[#allocation2 + $0x1c] sm:$0xf] }
  0x12   :  { %290 = vmatpush.bf16.msra.mxu2 %v441_v26  ;;  %v405_v53 = vor.u32 %v478_v50, %v404_v49  ;;  %v474_v55 = vld [vmem:[#allocation2 + $0x20] sm:$0xf0]  ;;  %v386_v57 = vld [vmem:[#allocation2 + $0x24] sm:$0xf0]  ;;  %v392_v58 = vld [vmem:[#allocation2 + $0x20] sm:$0xf] }
  0x13   :  { %v475_v59 = vld [vmem:[#allocation2 + $0x28] sm:$0xf0]  ;;  %v385_v60 = vor.u32 %v474_v55, %v384_v54  ;;  %v389_v61 = vor.u32 %v473_v56, %v386_v57  ;;  %v372_v63 = vld [vmem:[#allocation2] sm:$0xf]  ;;  %v470_v1 = vld [vmem:[#allocation2 + $0x4] sm:$0xf] }
  0x14   :  { %233 = vmatpush.bf16.msra.mxu0 %v421_v33  ;;  %497 = vmatpush.bf16.msra.mxu3 %v421_v33  ;;  %v393_v62 = vor.u32 %v475_v59, %v392_v58  ;;  %v471_v0 = vld [vmem:[#allocation2 + $0x8] sm:$0xf0]  ;;  %v374_v2 = vld [vmem:[#allocation2 + $0xc] sm:$0xf0]  ;;  %v380_v3 = vld [vmem:[#allocation2 + $0x8] sm:$0xf] }
  0x15   :  { %262 = vmatpush.bf16.msra.mxu1 %v425_v34  ;;  %v472_v4 = vld [vmem:[#allocation2 + $0x10] sm:$0xf0]  ;;  %v373_v5 = vor.u32 %v471_v0, %v372_v63  ;;  %v377_v6 = vor.u32 %v470_v1, %v374_v2  ;;  %v466_v8 = vld [vmem:[%s650_s0] sm:$0xff]  ;;  %v467_v9 = vld [vmem:[%s650_s0 + $0x8] sm:$0xff] }
  0x16   :  { %291 = vmatpush.bf16.msra.mxu2 %v429_v35  ;;  %v381_v7 = vor.u32 %v472_v4, %v380_v3  ;;  %v468_v10 = vld [vmem:[%s650_s0 + $0x10] sm:$0xff]  ;;  %v469_v11 = vld [vmem:[%s650_s0 + $0x18] sm:$0xff]  ;;  %v70_v12 = vld [vmem:[%s652_s2] sm:$0x7] }
  0x17   :  { %v572_v13 = vperm.slane %v70_v12, 0  ;;  %v574_v14 = vperm.slane %v70_v12, 1  ;;  %v578_v20 = vperm.slane %v70_v12, 2 }
  0x18   :  { %234 = vmatpush.bf16.msra.mxu0 %v409_v42  ;;  %498 = vmatpush.bf16.msra.mxu3 %v409_v42 }
  0x19   :  { %263 = vmatpush.bf16.msra.mxu1 %v413_v43 }
  0x1a   :  { %292 = vmatpush.bf16.msra.mxu2 %v417_v44 }
  0x1c   :  { %235 = vmatpush.bf16.msra.mxu0 %v397_v51  ;;  %499 = vmatpush.bf16.msra.mxu3 %v397_v51 }
  0x1d   :  { %264 = vmatpush.bf16.msra.mxu1 %v401_v52 }
  0x1e   :  { %293 = vmatpush.bf16.msra.mxu2 %v405_v53 }
  0x20   :  { %236 = vmatpush.bf16.msra.mxu0 %v385_v60  ;;  %500 = vmatpush.bf16.msra.mxu3 %v385_v60 }
  0x21   :  { %265 = vmatpush.bf16.msra.mxu1 %v389_v61 }
  0x22   :  { %294 = vmatpush.bf16.msra.mxu2 %v393_v62 }
  0x24   :  { %237 = vmatpush.bf16.msra.mxu0 %v373_v5  ;;  %501 = vmatpush.bf16.msra.mxu3 %v373_v5 }
  0x25   :  { %266 = vmatpush.bf16.msra.mxu1 %v377_v6 }
  0x26   :  { %295 = vmatpush.bf16.msra.mxu2 %v381_v7 }
  0x27   :  { %238 = vmatmul.bf16.vlgmr.msra.gmra.mxu0 %v466_v8  ;;  %243 = vmatmul.bf16.vlgmr.msra.gmra.mxu3 %v467_v9 }
  0x28   :  { %267 = vmatmul.bf16.vlgmr.msra.gmra.mxu1 %v466_v8 }
  0x29   :  { %296 = vmatmul.bf16.vlgmr.msra.gmra.mxu2 %v466_v8 }
  0x37   :  { %248 = vmatmul.bf16.gmra.mxu3 %v468_v10 }
  0x38   :  { %272 = vmatmul.bf16.gmra.mxu1 %v467_v9 }
  0x39   :  { %301 = vmatmul.bf16.gmra.mxu2 %v467_v9 }
  0x47   :  { %253 = vmatmul.bf16.gmra.mxu3 %v469_v11 }
  0x48   :  { %277 = vmatmul.bf16.gmra.mxu1 %v468_v10 }
  0x49   :  { %306 = vmatmul.bf16.gmra.mxu2 %v468_v10 }
  0x58   :  { %282 = vmatmul.bf16.gmra.mxu1 %v469_v11 }
  0x59   :  { %311 = vmatmul.bf16.gmra.mxu2 %v469_v11 }
  0xa4   :  { %v239_v15 = vpop.f32.mrf.mxu0 }
  0xa5   :  { %v240_v16 = vadd.f32 %v239_v15, %v572_v13  ;;  %v268_v17 = vpop.f32.mrf.mxu1 }
  0xa6   :  { %v269_v18 = vadd.f32 %v268_v17, %v574_v14 }
  0xa8   :  { %v317_v19 = vpack.c.bf16 %v269_v18, %v240_v16 }
  0xaa   :  { %333 = vst [vmem:[%s653_s3] sm:$0xff] %v317_v19  ;;  %v244_v21 = vpop.f32.mrf.mxu3 }
  0xab   :  { %v245_v32 = vadd.f32 %v244_v21, %v572_v13 }
  0xac   :  { %v297_v22 = vpop.f32.mrf.mxu2  ;;  %v241_v24 = vpop.f32.mrf.mxu0 }
  0xad   :  { %v298_v23 = vadd.f32 %v297_v22, %v578_v20  ;;  %v242_v25 = vadd.f32 %v241_v24, %v572_v13  ;;  %v270_v26 = vpop.f32.mrf.mxu1 }
  0xae   :  { %v271_v28 = vadd.f32 %v270_v26, %v574_v14 }
  0xaf   :  { %v318_v27 = vpack.c.bf16 %v298_v23, %v298_v23 }
  0xb0   :  { %v319_v29 = vpack.c.bf16 %v271_v28, %v242_v25 }
  0xb1   :  { %334 = vst [vmem:[%s653_s3 + $0x8] sm:$0xf] %v318_v27 }
  0xb2   :  { %335 = vst [vmem:[%s653_s3 + $0xc] sm:$0xff] %v319_v29  ;;  %v246_v31 = vpop.f32.mrf.mxu3 }
  0xb3   :  { %v247_v42 = vadd.f32 %v246_v31, %v572_v13 }
  0xb4   :  { %v299_v30 = vpop.f32.mrf.mxu2 }
  0xb5   :  { %v300_v33 = vadd.f32 %v299_v30, %v578_v20  ;;  %v273_v34 = vpop.f32.mrf.mxu1 }
  0xb6   :  { %v274_v36 = vadd.f32 %v273_v34, %v574_v14 }
  0xb7   :  { %v320_v35 = vpack.c.bf16 %v300_v33, %v300_v33 }
  0xb8   :  { %v321_v37 = vpack.c.bf16 %v274_v36, %v245_v32 }
  0xb9   :  { %336 = vst [vmem:[%s653_s3 + $0x14] sm:$0xf] %v320_v35 }
  0xba   :  { %337 = vst [vmem:[%s653_s3 + $0x18] sm:$0xff] %v321_v37  ;;  %v249_v41 = vpop.f32.mrf.mxu3 }
  0xbb   :  { %v250_v47 = vadd.f32 %v249_v41, %v572_v13 }
  0xbc   :  { %v302_v38 = vpop.f32.mrf.mxu2 }
  0xbd   :  { %v303_v39 = vadd.f32 %v302_v38, %v578_v20  ;;  %v275_v40 = vpop.f32.mrf.mxu1 }
  0xbe   :  { %v276_v44 = vadd.f32 %v275_v40, %v574_v14 }
  0xbf   :  { %v322_v43 = vpack.c.bf16 %v303_v39, %v303_v39 }
  0xc0   :  { %v323_v45 = vpack.c.bf16 %v276_v44, %v247_v42 }
  0xc1   :  { %338 = vst [vmem:[%s653_s3 + $0x20] sm:$0xf] %v322_v43 }
  0xc2   :  { %339 = vst [vmem:[%s653_s3 + $0x24] sm:$0xff] %v323_v45  ;;  %v251_v52 = vpop.f32.mrf.mxu3 }
  0xc3   :  { %v252_v57 = vadd.f32 %v251_v52, %v572_v13 }
  0xc4   :  { %v304_v46 = vpop.f32.mrf.mxu2 }
  0xc5   :  { %v305_v48 = vadd.f32 %v304_v46, %v578_v20  ;;  %v278_v49 = vpop.f32.mrf.mxu1 }
  0xc6   :  { %v279_v51 = vadd.f32 %v278_v49, %v574_v14 }
  0xc7   :  { %v324_v50 = vpack.c.bf16 %v305_v48, %v305_v48 }
  0xc8   :  { %v325_v53 = vpack.c.bf16 %v279_v51, %v250_v47 }
  0xc9   :  { %340 = vst [vmem:[%s653_s3 + $0x2c] sm:$0xf] %v324_v50 }
  0xca   :  { %341 = vst [vmem:[%s653_s3 + $0x30] sm:$0xff] %v325_v53  ;;  %v254_v61 = vpop.f32.mrf.mxu3 }
  0xcb   :  { %v255_v63 = vadd.f32 %v254_v61, %v572_v13 }
  0xcc   :  { %v307_v54 = vpop.f32.mrf.mxu2 }
  0xcd   :  { %v308_v55 = vadd.f32 %v307_v54, %v578_v20  ;;  %v280_v56 = vpop.f32.mrf.mxu1 }
  0xce   :  { %v281_v59 = vadd.f32 %v280_v56, %v574_v14 }
  0xcf   :  { %v326_v58 = vpack.c.bf16 %v308_v55, %v308_v55 }
  0xd0   :  { %v327_v60 = vpack.c.bf16 %v281_v59, %v252_v57 }
  0xd1   :  { %342 = vst [vmem:[%s653_s3 + $0x38] sm:$0xf] %v326_v58 }
  0xd2   :  { %343 = vst [vmem:[%s653_s3 + $0x3c] sm:$0xff] %v327_v60  ;;  %v256_v5 = vpop.f32.mrf.mxu3 }
  0xd3   :  { %v257_v9 = vadd.f32 %v256_v5, %v572_v13 }
  0xd4   :  { %v309_v62 = vpop.f32.mrf.mxu2 }
  0xd5   :  { %v310_v0 = vadd.f32 %v309_v62, %v578_v20  ;;  %v283_v1 = vpop.f32.mrf.mxu1 }
  0xd6   :  { %v284_v3 = vadd.f32 %v283_v1, %v574_v14 }
  0xd7   :  { %v328_v2 = vpack.c.bf16 %v310_v0, %v310_v0 }
  0xd8   :  { %v329_v4 = vpack.c.bf16 %v284_v3, %v255_v63 }
  0xd9   :  { %344 = vst [vmem:[%s653_s3 + $0x44] sm:$0xf] %v328_v2 }
  0xda   :  { %345 = vst [vmem:[%s653_s3 + $0x48] sm:$0xff] %v329_v4 }
  0xdc   :  { %v312_v6 = vpop.f32.mrf.mxu2 }
  0xdd   :  { %v313_v7 = vadd.f32 %v312_v6, %v578_v20  ;;  %v285_v8 = vpop.f32.mrf.mxu1 }
  0xde   :  { %v286_v11 = vadd.f32 %v285_v8, %v574_v14 }
  0xdf   :  { %v330_v10 = vpack.c.bf16 %v313_v7, %v313_v7 }
  0xe0   :  { %v331_v12 = vpack.c.bf16 %v286_v11, %v257_v9 }
  0xe1   :  { %346 = vst [vmem:[%s653_s3 + $0x50] sm:$0xf] %v330_v10 }
  0xe2   :  { %347 = vst [vmem:[%s653_s3 + $0x54] sm:$0xff] %v331_v12 }
  0xe4   :  { %v314_v15 = vpop.f32.mrf.mxu2 }
  0xe5   :  { %v315_v16 = vadd.f32 %v314_v15, %v578_v20 }
  0xe7   :  { %v332_v17 = vpack.c.bf16 %v315_v16, %v315_v16 }
  0xe9   :  { %348 = vst [vmem:[%s653_s3 + $0x5c] sm:$0xf] %v332_v17 }
  0xea   :  { %353 = vsyncpa [#allocation3], 1 }

// kernel: gru_dense_forward.4
= control target key start
LH: loop header
LB: loop body
LE: loop exit
PB: predicated region body
PF: predicated region fallthrough
CT: control target
= control target key end

     0   :  { %vm70_vm0 = vcmask 1041408   ;;  %vm57_vm1 = vcmask 31744   ;;  %s363_s1 = inlined_call_operand.vmem [shape: bf16[4,384], index: 1, kind: input, shape index: {}]   ;;  %s364_s0 = inlined_call_operand.vmem [shape: bf16[64,4], index: 0, kind: input, shape index: {}]   ;;  %s365_s2 = inlined_call_operand.vmem [shape: f32[1,384], index: 2, kind: input, shape index: {}]   ;;  %s366_s3 = inlined_call_operand.vmem [shape: bf16[64,384], index: 3, kind: output, shape index: {}]  }
   0x1   :  { %v23_v0 = vld [vmem:[%s363_s1] sm:$0x3f]  ;;  %v229_v7 = vld [vmem:[%s364_s0 + $0x8] sm:$0xff]  ;;  %v230_v9 = vld [vmem:[%s364_s0 + $0x10] sm:$0xff] }
   0x2   :  { %53 = vst [vmem:[#allocation1] ss:$4 sm:$0xff] %v23_v0  ;;  %v228_v1 = vld [vmem:[%s364_s0] sm:$0xff]  ;;  %v231_v10 = vld [vmem:[%s364_s0 + $0x18] sm:$0xff] }
   0x3   :  { %v24_v11 = vld [vmem:[%s365_s2] sm:$0x7] }
   0x4   :  { %v285_v13 = vperm.slane %v24_v11, 1  ;;  %v287_v15 = vperm.slane %v24_v11, 0  ;;  %v289_v16 = vperm.slane %v24_v11, 2 }
   0x9   :  { %v54_v2 = vld.sshfl [vmem:[#allocation1] sm:$0xff pattern:$0x73625140]  ;;  %v55_v3 = vld.sshfl [vmem:[#allocation1 + $0x8] sm:$0xff pattern:$0x73625140] }
   0xa   :  { %v71_v4 = vsel %vm70_vm0, %v54_v2, 0  ;;  %v73_v5 = vsel %vm70_vm0, %v55_v3, 0  ;;  %v56_v6 = vld.sshfl [vmem:[#allocation1 + $0x10] sm:$0xff pattern:$0x73625140] }
   0xb   :  { %84 = vmatpush.bf16.msra.mxu0 %v71_v4  ;;  %232 = vmatpush.bf16.msra.mxu3 %v71_v4  ;;  %v75_v8 = vsel %vm70_vm0, %v56_v6, 0 }
   0xc   :  { %233 = vmatpush.bf16.msra.mxu1 %v73_v5  ;;  %234 = vmatpush.bf16.msra.mxu2 %v75_v8 }
   0xe   :  { %216 = vmatmul.msk.bf16.vlgmr.msra.gmra.mxu0 %vm57_vm1, %v228_v1  ;;  %217 = vmatmul.msk.bf16.vlgmr.msra.gmra.mxu3 %vm57_vm1, %v229_v7 }
   0xf   :  { %113 = vmatpush.bf16.msrb.mxu0 %v73_v5  ;;  %221 = vmatmul.msk.bf16.vlgmr.msra.gmra.mxu1 %vm57_vm1, %v229_v7 }
  0x10   :  { %225 = vmatmul.msk.bf16.vlgmr.msra.gmra.mxu2 %vm57_vm1, %v229_v7 }
  0x13   :  { %142 = vmatpush.bf16.msra.mxu0 %v75_v8 }
  0x1e   :  { %218 = vmatmul.msk.bf16.gmra.mxu3 %vm57_vm1, %v230_v9  ;;  %220 = vmatmul.msk.bf16.vlgmr.msrb.gmra.mxu0 %vm57_vm1, %v228_v1 }
  0x1f   :  { %222 = vmatmul.msk.bf16.gmra.mxu1 %vm57_vm1, %v230_v9 }
  0x20   :  { %226 = vmatmul.msk.bf16.gmra.mxu2 %vm57_vm1, %v230_v9 }
  0x2e   :  { %219 = vmatmul.msk.bf16.gmra.mxu3 %vm57_vm1, %v231_v10  ;;  %224 = vmatmul.msk.bf16.vlgmr.msra.gmra.mxu0 %vm57_vm1, %v228_v1 }
  0x2f   :  { %223 = vmatmul.msk.bf16.gmra.mxu1 %vm57_vm1, %v231_v10 }
  0x30   :  { %227 = vmatmul.msk.bf16.gmra.mxu2 %vm57_vm1, %v231_v10 }
  0x8b   :  { %v86_v12 = vpop.f32.mrf.mxu0 }
  0x8c   :  { %v120_v14 = vpop.f32.mrf.mxu1  ;;  %v87_v32 = vadd.f32 %v86_v12, %v287_v15 }
  0x8d   :  { %v121_v17 = vadd.f32 %v120_v14, %v285_v13 }
  0x91   :  { %v91_v18 = vpop.f32.mrf.mxu3 }
  0x92   :  { %v92_v19 = vadd.f32 %v91_v18, %v287_v15 }
  0x93   :  { %v149_v20 = vpop.f32.mrf.mxu2  ;;  %v88_v22 = vpop.f32.mrf.mxu0 }
  0x94   :  { %v150_v21 = vadd.f32 %v149_v20, %v289_v16  ;;  %v168_v23 = vpack.c.bf16 %v121_v17, %v92_v19  ;;  %v122_v24 = vpop.f32.mrf.mxu1  ;;  %v89_v44 = vadd.f32 %v88_v22, %v287_v15 }
  0x95   :  { %v123_v27 = vadd.f32 %v122_v24, %v285_v13 }
  0x96   :  { %v169_v25 = vpack.c.bf16 %v150_v21, %v150_v21  ;;  %184 = vst [vmem:[%s366_s3 + $0x18] sm:$0xff] %v168_v23 }
  0x98   :  { %185 = vst [vmem:[%s366_s3 + $0x20] sm:$0xf] %v169_v25 }
  0x99   :  { %v93_v26 = vpop.f32.mrf.mxu3 }
  0x9a   :  { %v94_v28 = vadd.f32 %v93_v26, %v287_v15 }
  0x9b   :  { %v151_v29 = vpop.f32.mrf.mxu2  ;;  %v115_v31 = vpop.f32.mrf.mxu0 }
  0x9c   :  { %v152_v30 = vadd.f32 %v151_v29, %v289_v16  ;;  %v170_v33 = vpack.c.bf16 %v123_v27, %v94_v28  ;;  %v116_v34 = vadd.f32 %v115_v31, %v285_v13  ;;  %v125_v35 = vpop.f32.mrf.mxu1 }
  0x9d   :  { %v126_v38 = vadd.f32 %v125_v35, %v285_v13 }
  0x9e   :  { %v171_v36 = vpack.c.bf16 %v152_v30, %v152_v30  ;;  %186 = vst [vmem:[%s366_s3 + $0x24] sm:$0xff] %v170_v33  ;;  %v164_v37 = vpack.c.bf16 %v116_v34, %v87_v32 }
  0xa0   :  { %187 = vst [vmem:[%s366_s3 + $0x2c] sm:$0xf] %v171_v36 }
  0xa1   :  { %180 = vst [vmem:[%s366_s3] sm:$0xff] %v164_v37  ;;  %v96_v39 = vpop.f32.mrf.mxu3 }
  0xa2   :  { %v97_v40 = vadd.f32 %v96_v39, %v287_v15 }
  0xa3   :  { %v154_v41 = vpop.f32.mrf.mxu2  ;;  %v117_v43 = vpop.f32.mrf.mxu0 }
  0xa4   :  { %v155_v42 = vadd.f32 %v154_v41, %v289_v16  ;;  %v172_v45 = vpack.c.bf16 %v126_v38, %v97_v40  ;;  %v118_v46 = vadd.f32 %v117_v43, %v285_v13  ;;  %v127_v47 = vpop.f32.mrf.mxu1 }
  0xa5   :  { %v128_v51 = vadd.f32 %v127_v47, %v285_v13 }
  0xa6   :  { %v173_v48 = vpack.c.bf16 %v155_v42, %v155_v42  ;;  %188 = vst [vmem:[%s366_s3 + $0x30] sm:$0xff] %v172_v45  ;;  %v166_v49 = vpack.c.bf16 %v118_v46, %v89_v44 }
  0xa8   :  { %189 = vst [vmem:[%s366_s3 + $0x38] sm:$0xf] %v173_v48 }
  0xa9   :  { %182 = vst [vmem:[%s366_s3 + $0xc] sm:$0xff] %v166_v49  ;;  %v98_v50 = vpop.f32.mrf.mxu3 }
  0xaa   :  { %v99_v52 = vadd.f32 %v98_v50, %v287_v15 }
  0xab   :  { %v156_v53 = vpop.f32.mrf.mxu2  ;;  %v144_v55 = vpop.f32.mrf.mxu0 }
  0xac   :  { %v157_v54 = vadd.f32 %v156_v53, %v289_v16  ;;  %v174_v56 = vpack.c.bf16 %v128_v51, %v99_v52  ;;  %v145_v57 = vadd.f32 %v144_v55, %v289_v16  ;;  %v130_v59 = vpop.f32.mrf.mxu1 }
  0xad   :  { %v131_v61 = vadd.f32 %v130_v59, %v285_v13 }
  0xae   :  { %v175_v58 = vpack.c.bf16 %v157_v54, %v157_v54  ;;  %190 = vst [vmem:[%s366_s3 + $0x3c] sm:$0xff] %v174_v56  ;;  %v165_v60 = vpack.c.bf16 %v145_v57, %v145_v57 }
  0xb0   :  { %191 = vst [vmem:[%s366_s3 + $0x44] sm:$0xf] %v175_v58 }
  0xb1   :  { %181 = vst [vmem:[%s366_s3 + $0x8] sm:$0xf] %v165_v60  ;;  %v101_v62 = vpop.f32.mrf.mxu3 }
  0xb2   :  { %v102_v63 = vadd.f32 %v101_v62, %v287_v15 }
  0xb3   :  { %v159_v0 = vpop.f32.mrf.mxu2  ;;  %v146_v2 = vpop.f32.mrf.mxu0 }
  0xb4   :  { %v160_v1 = vadd.f32 %v159_v0, %v289_v16  ;;  %v176_v3 = vpack.c.bf16 %v131_v61, %v102_v63  ;;  %v147_v4 = vadd.f32 %v146_v2, %v289_v16  ;;  %v132_v7 = vpop.f32.mrf.mxu1 }
  0xb5   :  { %v133_v9 = vadd.f32 %v132_v7, %v285_v13 }
  0xb6   :  { %v177_v5 = vpack.c.bf16 %v160_v1, %v160_v1  ;;  %192 = vst [vmem:[%s366_s3 + $0x48] sm:$0xff] %v176_v3  ;;  %v167_v6 = vpack.c.bf16 %v147_v4, %v147_v4 }
  0xb8   :  { %193 = vst [vmem:[%s366_s3 + $0x50] sm:$0xf] %v177_v5 }
  0xb9   :  { %183 = vst [vmem:[%s366_s3 + $0x14] sm:$0xf] %v167_v6  ;;  %v103_v8 = vpop.f32.mrf.mxu3 }
  0xba   :  { %v104_v10 = vadd.f32 %v103_v8, %v287_v15 }
  0xbb   :  { %v161_v11 = vpop.f32.mrf.mxu2 }
  0xbc   :  { %v162_v12 = vadd.f32 %v161_v11, %v289_v16  ;;  %v178_v14 = vpack.c.bf16 %v133_v9, %v104_v10 }
  0xbe   :  { %v179_v17 = vpack.c.bf16 %v162_v12, %v162_v12  ;;  %194 = vst [vmem:[%s366_s3 + $0x54] sm:$0xff] %v178_v14 }
  0xc0   :  { %195 = vst [vmem:[%s366_s3 + $0x5c] sm:$0xf] %v179_v17 }

// kernel: gru_dense_forward.5
= control target key start
LH: loop header
LB: loop body
LE: loop exit
PB: predicated region body
PF: predicated region fallthrough
CT: control target
= control target key end

     0   :  { %8 = vsyncpa [#allocation4], 0  ;;  %s1242_s15 = smov [#allocation3]   ;;  %s1243_s17 = smov 192   ;;  %s1631_s0 = inlined_call_operand.vmem [shape: bf16[8,8,384], index: 0, kind: input, shape index: {}]   ;;  %s1632_s1 = inlined_call_operand.hbm [shape: bf16[128,384], index: 1, kind: input, shape index: {}]   ;;  %s1633_s2 = inlined_call_operand.vmem [shape: f32[1,128], index: 2, kind: input, shape index: {}]   ;;  %s1634_s3 = inlined_call_operand.vmem [shape: bf16[8,8,128], index: 3, kind: output, shape index: {}]  }
   0x1   :  { %s15_s14 = sshll.u32 %s1632_s1, 4  ;;  %s17_s16 = sshll.u32 %s1242_s15, 4  ;;  %s16_s14 = int_to_ptr.hbm [resolvable:$true] %s15_s14  ;;  %s18_s16 = int_to_ptr.vmem [resolvable:$true] %s17_s16 }
   0x2   :  { %s1244_s18 = smov 12  }
   0x3   :  { %23 = dma.hbm_to_vmem [thread:$0]  %s16_s14, 3072, %s18_s16, [#allocation4], %s1243_s17, %s1243_s17, %s1244_s18  }
   0x4   :  { %1240 = dma.done.wait [#allocation4], 3072  }
   0x5   :  { %1241 = vsyncadd [#allocation4], 4294964224  ;;  %v1059_v0 = vld [vmem:[#allocation3 + $0xa8] sm:$0xf]  ;;  %v1128_v1 = vld [vmem:[#allocation3 + $0xb0] sm:$0xf0] }
   0x6   :  { %v1127_v2 = vld [vmem:[#allocation3 + $0xac] sm:$0xf]  ;;  %v1269_v3 = vor.u32 %v1128_v1, %v1059_v0  ;;  %v1061_v4 = vld [vmem:[#allocation3 + $0xb4] sm:$0xf0]  ;;  %v1047_v5 = vld [vmem:[#allocation3 + $0x90] sm:$0xf] }
   0x7   :  { %v1125_v6 = vld [vmem:[#allocation3 + $0x98] sm:$0xf0]  ;;  %v1271_v7 = vor.u32 %v1127_v2, %v1061_v4  ;;  %v1124_v8 = vld [vmem:[#allocation3 + $0x94] sm:$0xf]  ;;  %v1049_v9 = vld [vmem:[#allocation3 + $0x9c] sm:$0xf0] }
   0x8   :  { %206 = vmatpush.bf16.msra.mxu0 %v1269_v3  ;;  %v1274_v10 = vor.u32 %v1125_v6, %v1047_v5  ;;  %301 = vmatpush.bf16.msra.mxu3 %v1269_v3  ;;  %v1278_v11 = vor.u32 %v1124_v8, %v1049_v9  ;;  %v1035_v12 = vld [vmem:[#allocation3 + $0x78] sm:$0xf]  ;;  %v1122_v13 = vld [vmem:[#allocation3 + $0x80] sm:$0xf0]  ;;  %v1121_v14 = vld [vmem:[#allocation3 + $0x7c] sm:$0xf] }
   0x9   :  { %219 = vmatpush.bf16.msra.mxu1 %v1271_v7  ;;  %v1037_v15 = vld [vmem:[#allocation3 + $0x84] sm:$0xf0]  ;;  %v1067_v16 = vld [vmem:[#allocation3 + $0xb0] sm:$0xf]  ;;  %v1129_v17 = vld [vmem:[#allocation3 + $0xb8] sm:$0xf0]  ;;  %v1283_v19 = vor.u32 %v1122_v13, %v1035_v12 }
   0xa   :  { %v1280_v18 = vor.u32 %v1129_v17, %v1067_v16  ;;  %v1055_v20 = vld [vmem:[#allocation3 + $0x98] sm:$0xf]  ;;  %v1126_v21 = vld [vmem:[#allocation3 + $0xa0] sm:$0xf0]  ;;  %v1287_v22 = vor.u32 %v1121_v14, %v1037_v15  ;;  %v1023_v23 = vld [vmem:[#allocation3 + $0x60] sm:$0xf] }
   0xb   :  { %v1119_v24 = vld [vmem:[#allocation3 + $0x68] sm:$0xf0]  ;;  %v1118_v25 = vld [vmem:[#allocation3 + $0x64] sm:$0xf]  ;;  %v1290_v26 = vor.u32 %v1126_v21, %v1055_v20  ;;  %v1025_v27 = vld [vmem:[#allocation3 + $0x6c] sm:$0xf0] }
   0xc   :  { %207 = vmatpush.bf16.msra.mxu0 %v1274_v10  ;;  %302 = vmatpush.bf16.msra.mxu3 %v1274_v10  ;;  %v1043_v28 = vld [vmem:[#allocation3 + $0x80] sm:$0xf]  ;;  %v1123_v29 = vld [vmem:[#allocation3 + $0x88] sm:$0xf0]  ;;  %v1293_v30 = vor.u32 %v1119_v24, %v1023_v23  ;;  %v1297_v31 = vor.u32 %v1118_v25, %v1025_v27  ;;  %v1011_v32 = vld [vmem:[#allocation3 + $0x48] sm:$0xf] }
   0xd   :  { %220 = vmatpush.bf16.msra.mxu1 %v1278_v11  ;;  %232 = vmatpush.bf16.msra.mxu2 %v1280_v18  ;;  %v1116_v33 = vld [vmem:[#allocation3 + $0x50] sm:$0xf0]  ;;  %v1115_v34 = vld [vmem:[#allocation3 + $0x4c] sm:$0xf]  ;;  %v1300_v35 = vor.u32 %v1123_v29, %v1043_v28  ;;  %v1013_v36 = vld [vmem:[#allocation3 + $0x54] sm:$0xf0] }
   0xe   :  { %v1031_v37 = vld [vmem:[#allocation3 + $0x68] sm:$0xf]  ;;  %v1120_v38 = vld [vmem:[#allocation3 + $0x70] sm:$0xf0]  ;;  %v1303_v39 = vor.u32 %v1116_v33, %v1011_v32  ;;  %v999_v40 = vld [vmem:[#allocation3 + $0x30] sm:$0xf]  ;;  %v1307_v41 = vor.u32 %v1115_v34, %v1013_v36 }
   0xf   :  { %v1113_v42 = vld [vmem:[#allocation3 + $0x38] sm:$0xf0]  ;;  %v1112_v43 = vld [vmem:[#allocation3 + $0x34] sm:$0xf]  ;;  %v1310_v44 = vor.u32 %v1120_v38, %v1031_v37  ;;  %v1001_v45 = vld [vmem:[#allocation3 + $0x3c] sm:$0xf0] }
  0x10   :  { %208 = vmatpush.bf16.msra.mxu0 %v1283_v19  ;;  %303 = vmatpush.bf16.msra.mxu3 %v1283_v19  ;;  %v1019_v46 = vld [vmem:[#allocation3 + $0x50] sm:$0xf]  ;;  %v1117_v47 = vld [vmem:[#allocation3 + $0x58] sm:$0xf0]  ;;  %v1313_v48 = vor.u32 %v1113_v42, %v999_v40  ;;  %v1317_v49 = vor.u32 %v1112_v43, %v1001_v45  ;;  %v987_v50 = vld [vmem:[#allocation3 + $0x18] sm:$0xf] }
  0x11   :  { %221 = vmatpush.bf16.msra.mxu1 %v1287_v22  ;;  %233 = vmatpush.bf16.msra.mxu2 %v1290_v26  ;;  %v1110_v51 = vld [vmem:[#allocation3 + $0x20] sm:$0xf0]  ;;  %v1109_v52 = vld [vmem:[#allocation3 + $0x1c] sm:$0xf]  ;;  %v1320_v53 = vor.u32 %v1117_v47, %v1019_v46  ;;  %v989_v54 = vld [vmem:[#allocation3 + $0x24] sm:$0xf0] }
  0x12   :  { %v1007_v55 = vld [vmem:[#allocation3 + $0x38] sm:$0xf]  ;;  %v1114_v56 = vld [vmem:[#allocation3 + $0x40] sm:$0xf0]  ;;  %v1323_v57 = vor.u32 %v1110_v51, %v987_v50  ;;  %v1327_v58 = vor.u32 %v1109_v52, %v989_v54  ;;  %v975_v59 = vld [vmem:[#allocation3] sm:$0xf] }
  0x13   :  { %v1107_v60 = vld [vmem:[#allocation3 + $0x8] sm:$0xf0]  ;;  %v1106_v61 = vld [vmem:[#allocation3 + $0x4] sm:$0xf]  ;;  %v1330_v62 = vor.u32 %v1114_v56, %v1007_v55  ;;  %v977_v63 = vld [vmem:[#allocation3 + $0xc] sm:$0xf0] }
  0x14   :  { %209 = vmatpush.bf16.msra.mxu0 %v1293_v30  ;;  %304 = vmatpush.bf16.msra.mxu3 %v1293_v30  ;;  %v995_v0 = vld [vmem:[#allocation3 + $0x20] sm:$0xf]  ;;  %v1111_v1 = vld [vmem:[#allocation3 + $0x28] sm:$0xf0]  ;;  %v1333_v2 = vor.u32 %v1107_v60, %v975_v59  ;;  %v1337_v4 = vor.u32 %v1106_v61, %v977_v63  ;;  %v983_v6 = vld [vmem:[#allocation3 + $0x8] sm:$0xf] }
  0x15   :  { %222 = vmatpush.bf16.msra.mxu1 %v1297_v31  ;;  %234 = vmatpush.bf16.msra.mxu2 %v1300_v35  ;;  %v1340_v5 = vor.u32 %v1111_v1, %v995_v0  ;;  %v1108_v8 = vld [vmem:[#allocation3 + $0x10] sm:$0xf0]  ;;  %v1245_v12 = vmov 0.0|0.0   ;;  %v72_v13 = vld [vmem:[%s1631_s0] sm:$0xff]  ;;  %v73_v54 = vld [vmem:[%s1631_s0 + $0x8] sm:$0xf] }
  0x16   :  { %v1346_v9 = vor.u32 %v1108_v8, %v983_v6  ;;  %v74_v14 = vunpack.c.l.bf16 %v72_v13  ;;  %v75_v15 = vunpack.c.h.bf16 %v72_v13  ;;  %v1411_v43 = vld [vmem:[%s1633_s2] ss:$0 sm:$0xff]  ;;  %v76_v60 = vunpack.c.l.bf16 %v73_v54 }
  0x18   :  { %210 = vmatpush.bf16.msra.mxu0 %v1303_v39  ;;  %305 = vmatpush.bf16.msra.mxu3 %v1303_v39 }
  0x19   :  { %223 = vmatpush.bf16.msra.mxu1 %v1307_v41  ;;  %235 = vmatpush.bf16.msra.mxu2 %v1310_v44 }
  0x1c   :  { %211 = vmatpush.bf16.msra.mxu0 %v1313_v48  ;;  %306 = vmatpush.bf16.msra.mxu3 %v1313_v48 }
  0x1d   :  { %224 = vmatpush.bf16.msra.mxu1 %v1317_v49  ;;  %236 = vmatpush.bf16.msra.mxu2 %v1320_v53 }
  0x20   :  { %212 = vmatpush.bf16.msra.mxu0 %v1323_v57  ;;  %307 = vmatpush.bf16.msra.mxu3 %v1323_v57 }
  0x21   :  { %225 = vmatpush.bf16.msra.mxu1 %v1327_v58  ;;  %237 = vmatpush.bf16.msra.mxu2 %v1330_v62 }
  0x24   :  { %213 = vmatpush.bf16.msra.mxu0 %v1333_v2  ;;  %308 = vmatpush.bf16.msra.mxu3 %v1333_v2 }
  0x25   :  { %226 = vmatpush.bf16.msra.mxu1 %v1337_v4  ;;  %238 = vmatpush.bf16.msra.mxu2 %v1340_v5 }
  0x27   :  { %214 = vmatmul.bf16.vlgmr.msra.gmra.mxu0 %v1245_v12 }
  0x28   :  { %314 = vmatpush.bf16.msrb.mxu0 %v1271_v7  ;;  %410 = vmatpush.bf16.msrb.mxu3 %v1271_v7 }
  0x29   :  { %327 = vmatpush.bf16.msrb.mxu1 %v1280_v18  ;;  %239 = vmatpush.bf16.msra.mxu2 %v1346_v9 }
  0x2a   :  { %227 = vmatmul.bf16.vlgmr.msra.gmra.mxu1 %v1245_v12 }
  0x2c   :  { %315 = vmatpush.bf16.msrb.mxu0 %v1278_v11  ;;  %411 = vmatpush.bf16.msrb.mxu3 %v1278_v11 }
  0x2d   :  { %328 = vmatpush.bf16.msrb.mxu1 %v1290_v26  ;;  %397 = vmatpush.bf16.msrb.mxu2 %v1269_v3 }
  0x2e   :  { %240 = vmatmul.bf16.vlgmr.msra.gmra.mxu2 %v1245_v12 }
  0x30   :  { %316 = vmatpush.bf16.msrb.mxu0 %v1287_v22  ;;  %412 = vmatpush.bf16.msrb.mxu3 %v1287_v22 }
  0x31   :  { %329 = vmatpush.bf16.msrb.mxu1 %v1300_v35  ;;  %398 = vmatpush.bf16.msrb.mxu2 %v1274_v10 }
  0x34   :  { %317 = vmatpush.bf16.msrb.mxu0 %v1297_v31  ;;  %413 = vmatpush.bf16.msrb.mxu3 %v1297_v31 }
  0x35   :  { %330 = vmatpush.bf16.msrb.mxu1 %v1310_v44  ;;  %399 = vmatpush.bf16.msrb.mxu2 %v1283_v19 }
  0x38   :  { %318 = vmatpush.bf16.msrb.mxu0 %v1307_v41  ;;  %414 = vmatpush.bf16.msrb.mxu3 %v1307_v41 }
  0x39   :  { %331 = vmatpush.bf16.msrb.mxu1 %v1320_v53  ;;  %400 = vmatpush.bf16.msrb.mxu2 %v1293_v30 }
  0x3c   :  { %319 = vmatpush.bf16.msrb.mxu0 %v1317_v49  ;;  %415 = vmatpush.bf16.msrb.mxu3 %v1317_v49 }
  0x3d   :  { %332 = vmatpush.bf16.msrb.mxu1 %v1330_v62  ;;  %401 = vmatpush.bf16.msrb.mxu2 %v1303_v39 }
  0x40   :  { %320 = vmatpush.bf16.msrb.mxu0 %v1327_v58  ;;  %416 = vmatpush.bf16.msrb.mxu3 %v1327_v58 }
  0x41   :  { %333 = vmatpush.bf16.msrb.mxu1 %v1340_v5  ;;  %402 = vmatpush.bf16.msrb.mxu2 %v1313_v48 }
  0x44   :  { %321 = vmatpush.bf16.msrb.mxu0 %v1337_v4  ;;  %417 = vmatpush.bf16.msrb.mxu3 %v1337_v4 }
  0x45   :  { %334 = vmatpush.bf16.msrb.mxu1 %v1346_v9  ;;  %403 = vmatpush.bf16.msrb.mxu2 %v1323_v57 }
  0x48   :  { %423 = vmatpush.bf16.msra.mxu0 %v1280_v18 }
  0x49   :  { %493 = vmatpush.bf16.msra.mxu1 %v1269_v3  ;;  %404 = vmatpush.bf16.msrb.mxu2 %v1333_v2 }
  0x4c   :  { %424 = vmatpush.bf16.msra.mxu0 %v1290_v26 }
  0x4d   :  { %506 = vmatpush.bf16.msra.mxu2 %v1271_v7  ;;  %494 = vmatpush.bf16.msra.mxu1 %v1274_v10 }
  0x50   :  { %425 = vmatpush.bf16.msra.mxu0 %v1300_v35 }
  0x51   :  { %507 = vmatpush.bf16.msra.mxu2 %v1278_v11  ;;  %495 = vmatpush.bf16.msra.mxu1 %v1283_v19 }
  0x54   :  { %426 = vmatpush.bf16.msra.mxu0 %v1310_v44 }
  0x55   :  { %508 = vmatpush.bf16.msra.mxu2 %v1287_v22  ;;  %496 = vmatpush.bf16.msra.mxu1 %v1293_v30 }
  0x58   :  { %427 = vmatpush.bf16.msra.mxu0 %v1320_v53 }
  0x59   :  { %509 = vmatpush.bf16.msra.mxu2 %v1297_v31  ;;  %497 = vmatpush.bf16.msra.mxu1 %v1303_v39 }
  0x5c   :  { %428 = vmatpush.bf16.msra.mxu0 %v1330_v62 }
  0x5d   :  { %510 = vmatpush.bf16.msra.mxu2 %v1307_v41  ;;  %498 = vmatpush.bf16.msra.mxu1 %v1313_v48 }
  0x60   :  { %429 = vmatpush.bf16.msra.mxu0 %v1340_v5 }
  0x61   :  { %511 = vmatpush.bf16.msra.mxu2 %v1317_v49  ;;  %499 = vmatpush.bf16.msra.mxu1 %v1323_v57 }
  0x64   :  { %430 = vmatpush.bf16.msra.mxu0 %v1346_v9 }
  0x65   :  { %512 = vmatpush.bf16.msra.mxu2 %v1327_v58  ;;  %500 = vmatpush.bf16.msra.mxu1 %v1333_v2 }
  0x69   :  { %513 = vmatpush.bf16.msra.mxu2 %v1337_v4 }
  0xa4   :  { %v215_v16 = vpop.f32.mrf.mxu0 }
  0xa5   :  { %v245_v17 = vadd.f32 %v215_v16, %v74_v14 }
  0xa7   :  { %v228_v20 = vpop.f32.mrf.mxu1  ;;  %v1069_v23 = vmul.f32 -1.442695, %v245_v17 }
  0xa8   :  { %v265_v21 = vadd.f32 %v228_v20, %v75_v15 }
  0xa9   :  { %1135 = vpow2.f32 %v1069_v23 }
  0xaa   :  { %v1070_v24 = vmul.f32 -1.442695, %v265_v21 }
  0xac   :  { %1137 = vpow2.f32 %v1070_v24  ;;  %v217_v25 = vpop.f32.mrf.mxu0 }
  0xad   :  { %v1071_v25 = vld [vmem:[%s1631_s0 + $0xc] sm:$0xff] }
  0xaf   :  { %v230_v27 = vpop.f32.mrf.mxu1  ;;  %v1136_v28 = vpop.eup %1135 }
  0xb0   :  { %v249_v33 = vadd.f32 1.0, %v1136_v28  ;;  %v299_v27 = vunpack.c.h.bf16 %v1071_v25 }
  0xb1   :  { %v241_v29 = vpop.f32.mrf.mxu2 }
  0xb2   :  { %v1138_v32 = vpop.eup %1137  ;;  %1139 = vrcp.f32 %v249_v33  ;;  %v261_v47 = vand.u32 2147483648, %v249_v33  ;;  %v259_v51 = vand.u32 2147483647, %v249_v33  ;;  %vm255_vm1 = vweird.f32 %v249_v33 }
  0xb3   :  { %v269_v34 = vadd.f32 1.0, %v1138_v32  ;;  %v285_v56 = vadd.f32 %v1411_v43, %v241_v29 }
  0xb4   :  { %v262_v59 = vor.u32 1.1754944e-38, %v261_v47  ;;  %vm260_vm3 = vcmp.eq.f32.partialorder %v259_v51, 8.507059e+37 }
  0xb5   :  { %1141 = vrcp.f32 %v269_v34  ;;  %vm275_vm4 = vweird.f32 %v269_v34  ;;  %v281_v1 = vand.u32 2147483648, %v269_v34  ;;  %v279_v8 = vand.u32 2147483647, %v269_v34 }
  0xb7   :  { %v282_v14 = vor.u32 1.1754944e-38, %v281_v1  ;;  %vm280_vm7 = vcmp.eq.f32.partialorder %v279_v8, 8.507059e+37 }
  0xb8   :  { %v1140_v37 = vpop.eup %1139 }
  0xb9   :  { %v243_v36 = vpop.f32.mrf.mxu2  ;;  %v251_v40 = vmul.f32 %v1140_v37, %v249_v33  ;;  %vm256_vm0 = vweird.f32 %v1140_v37 }
  0xba   :  { %vm257_vm2 = vmor %vm255_vm1, %vm256_vm0 }
  0xbb   :  { %v1142_v38 = vpop.eup %1141  ;;  %v252_v45 = vsub.f32 1.0, %v251_v40 }
  0xbc   :  { %v271_v42 = vmul.f32 %v1142_v38, %v269_v34  ;;  %vm276_vm5 = vweird.f32 %v1142_v38  ;;  %v298_v34 = vunpack.c.l.bf16 %v1071_v25 }
  0xbd   :  { %v253_v50 = vmul.f32 %v1140_v37, %v252_v45  ;;  %vm277_vm6 = vmor %vm275_vm4, %vm276_vm5 }
  0xbe   :  { %v272_v46 = vsub.f32 1.0, %v271_v42 }
  0xbf   :  { %v254_v55 = vadd.f32 %v1140_v37, %v253_v50 }
  0xc0   :  { %v273_v52 = vmul.f32 %v1142_v38, %v272_v46 }
  0xc1   :  { %v258_v61 = vsel %vm257_vm2, %v1140_v37, %v254_v55 }
  0xc2   :  { %v263_v63 = vsel %vm260_vm3, %v262_v59, %v258_v61  ;;  %v274_v0 = vadd.f32 %v1142_v38, %v273_v52 }
  0xc3   :  { %v286_v6 = vmul.f32 %v285_v56, %v263_v63 }
  0xc4   :  { %v278_v13 = vsel %vm277_vm6, %v1142_v38, %v274_v0 }
  0xc5   :  { %v287_v12 = vadd.f32 %v286_v6, %v76_v60  ;;  %v283_v15 = vsel %vm280_vm7, %v282_v14, %v278_v13  ;;  %v1072_v6 = vld [vmem:[%s1631_s0 + $0x14] sm:$0xf] }
  0xc6   :  { %v289_v16 = vsub.f32 1.0, %v283_v15  ;;  %v291_v21 = vmul.f32 0.0, %v283_v15  ;;  %v300_v15 = vunpack.c.l.bf16 %v1072_v6 }
  0xc7   :  { %1143 = vtanh.f32 %v287_v12 }
  0xcd   :  { %v1144_v17 = vpop.eup %1143 }
  0xce   :  { %v290_v20 = vmul.f32 %v1144_v17, %v289_v16 }
  0xd0   :  { %v1417_v23 = vadd.f32 %v291_v21, %v290_v20 }
  0xd2   :  { %v293_v24 = vpack.c.bf16 %v1417_v23, %v1417_v23 }
  0xd4   :  { %294 = vst [vmem:[%s1634_s3] sm:$0xf] %v293_v24  ;;  %309 = vmatmul.bf16.vlgmr.msra.gmra.mxu3 %v293_v24  ;;  %322 = vmatmul.bf16.vlgmr.msrb.gmra.mxu0 %v293_v24 }
  0xd5   :  { %335 = vmatmul.bf16.vlgmr.msrb.gmra.mxu1 %v293_v24  ;;  %519 = vmatpush.bf16.msra.mxu3 %v1280_v18 }
  0xd6   :  { %589 = vmatpush.bf16.msrb.mxu0 %v1269_v3  ;;  %602 = vmatpush.bf16.msrb.mxu1 %v1271_v7 }
  0xd9   :  { %520 = vmatpush.bf16.msra.mxu3 %v1290_v26 }
  0xda   :  { %590 = vmatpush.bf16.msrb.mxu0 %v1274_v10  ;;  %603 = vmatpush.bf16.msrb.mxu1 %v1278_v11 }
  0xdd   :  { %521 = vmatpush.bf16.msra.mxu3 %v1300_v35 }
  0xde   :  { %591 = vmatpush.bf16.msrb.mxu0 %v1283_v19  ;;  %604 = vmatpush.bf16.msrb.mxu1 %v1287_v22 }
  0xe1   :  { %522 = vmatpush.bf16.msra.mxu3 %v1310_v44 }
  0xe2   :  { %592 = vmatpush.bf16.msrb.mxu0 %v1293_v30  ;;  %605 = vmatpush.bf16.msrb.mxu1 %v1297_v31 }
  0xe5   :  { %523 = vmatpush.bf16.msra.mxu3 %v1320_v53 }
  0xe6   :  { %593 = vmatpush.bf16.msrb.mxu0 %v1303_v39  ;;  %606 = vmatpush.bf16.msrb.mxu1 %v1307_v41 }
  0xe9   :  { %524 = vmatpush.bf16.msra.mxu3 %v1330_v62 }
  0xea   :  { %594 = vmatpush.bf16.msrb.mxu0 %v1313_v48  ;;  %607 = vmatpush.bf16.msrb.mxu1 %v1317_v49 }
  0xed   :  { %525 = vmatpush.bf16.msra.mxu3 %v1340_v5 }
  0xee   :  { %595 = vmatpush.bf16.msrb.mxu0 %v1323_v57  ;;  %608 = vmatpush.bf16.msrb.mxu1 %v1327_v58 }
  0xf1   :  { %526 = vmatpush.bf16.msra.mxu3 %v1346_v9 }
  0xf2   :  { %596 = vmatpush.bf16.msrb.mxu0 %v1333_v2  ;;  %609 = vmatpush.bf16.msrb.mxu1 %v1337_v4 }
 0x151   :  { %v323_v28 = vpop.f32.mrf.mxu0 }
 0x152   :  { %v360_v29 = vadd.f32 %v323_v28, %v299_v27  ;;  %v336_v32 = vpop.f32.mrf.mxu1 }
 0x153   :  { %v380_v13 = vadd.f32 %v1411_v43, %v336_v32 }
 0x154   :  { %v1074_v33 = vmul.f32 -1.442695, %v360_v29 }
 0x156   :  { %1145 = vpow2.f32 %v1074_v33 }
 0x157   :  { %v310_v36 = vpop.f32.mrf.mxu3 }
 0x158   :  { %v340_v37 = vadd.f32 %v310_v36, %v298_v34 }
 0x159   :  { %v325_v38 = vpop.f32.mrf.mxu0 }
 0x15a   :  { %v1073_v40 = vmul.f32 -1.442695, %v340_v37  ;;  %v338_v42 = vpop.f32.mrf.mxu1 }
 0x15c   :  { %v1146_v45 = vpop.eup %1145  ;;  %1147 = vpow2.f32 %v1073_v40 }
 0x15d   :  { %v364_v46 = vadd.f32 1.0, %v1146_v45 }
 0x15f   :  { %v312_v47 = vpop.f32.mrf.mxu3  ;;  %1149 = vrcp.f32 %v364_v46  ;;  %v376_v20 = vand.u32 2147483648, %v364_v46  ;;  %vm370_vm13 = vweird.f32 %v364_v46  ;;  %v374_v24 = vand.u32 2147483647, %v364_v46 }
 0x161   :  { %v377_v28 = vor.u32 1.1754944e-38, %v376_v20  ;;  %vm375_vm15 = vcmp.eq.f32.partialorder %v374_v24, 8.507059e+37 }
 0x162   :  { %v1148_v50 = vpop.eup %1147 }
 0x163   :  { %v344_v51 = vadd.f32 1.0, %v1148_v50 }
 0x165   :  { %1151 = vrcp.f32 %v344_v51  ;;  %v1150_v52 = vpop.eup %1149  ;;  %v356_v61 = vand.u32 2147483648, %v344_v51  ;;  %v354_v0 = vand.u32 2147483647, %v344_v51  ;;  %vm350_vm9 = vweird.f32 %v344_v51 }
 0x166   :  { %v366_v54 = vmul.f32 %v1150_v52, %v364_v46  ;;  %vm371_vm12 = vweird.f32 %v1150_v52 }
 0x167   :  { %v357_v12 = vor.u32 1.1754944e-38, %v356_v61  ;;  %vm355_vm11 = vcmp.eq.f32.partialorder %v354_v0, 8.507059e+37  ;;  %vm372_vm14 = vmor %vm370_vm13, %vm371_vm12 }
 0x168   :  { %v367_v59 = vsub.f32 1.0, %v366_v54 }
 0x16a   :  { %v368_v1 = vmul.f32 %v1150_v52, %v367_v59 }
 0x16b   :  { %v1152_v55 = vpop.eup %1151 }
 0x16c   :  { %v346_v56 = vmul.f32 %v1152_v55, %v344_v51  ;;  %vm351_vm8 = vweird.f32 %v1152_v55  ;;  %v369_v17 = vadd.f32 %v1150_v52, %v368_v1 }
 0x16d   :  { %vm352_vm10 = vmor %vm350_vm9, %vm351_vm8 }
 0x16e   :  { %v347_v60 = vsub.f32 1.0, %v346_v56  ;;  %v373_v27 = vsel %vm372_vm14, %v1150_v52, %v369_v17 }
 0x16f   :  { %v378_v29 = vsel %vm375_vm15, %v377_v28, %v373_v27 }
 0x170   :  { %v348_v63 = vmul.f32 %v1152_v55, %v347_v60  ;;  %v384_v33 = vsub.f32 1.0, %v378_v29  ;;  %v386_v36 = vmul.f32 %v378_v29, %v1417_v23  ;;  %v1076_v23 = vld [vmem:[%s1631_s0 + $0x18] sm:$0xff] }
 0x171   :  { %v394_v42 = vunpack.c.l.bf16 %v1076_v23  ;;  %v395_v45 = vunpack.c.h.bf16 %v1076_v23 }
 0x172   :  { %v349_v8 = vadd.f32 %v1152_v55, %v348_v63 }
 0x174   :  { %v353_v14 = vsel %vm352_vm10, %v1152_v55, %v349_v8 }
 0x175   :  { %v358_v16 = vsel %vm355_vm11, %v357_v12, %v353_v14 }
 0x176   :  { %v381_v21 = vmul.f32 %v380_v13, %v358_v16 }
 0x178   :  { %v382_v25 = vadd.f32 %v381_v21, %v300_v15  ;;  %v1077_v21 = vld [vmem:[%s1631_s0 + $0x20] sm:$0xf] }
 0x179   :  { %v396_v29 = vunpack.c.l.bf16 %v1077_v21 }
 0x17a   :  { %1153 = vtanh.f32 %v382_v25 }
 0x180   :  { %v1154_v34 = vpop.eup %1153 }
 0x181   :  { %v385_v32 = vmul.f32 %v1154_v34, %v384_v33 }
 0x183   :  { %v1456_v37 = vadd.f32 %v386_v36, %v385_v32 }
 0x185   :  { %v388_v38 = vpack.c.bf16 %v1456_v37, %v1456_v37 }
 0x187   :  { %1075 = vst [vmem:[%s1634_s3 + $0x4] sm:$0xf] %v388_v38  ;;  %405 = vmatmul.bf16.vlgmr.msrb.gmra.mxu2 %v388_v38  ;;  %418 = vmatmul.bf16.vlgmr.msrb.gmra.mxu3 %v388_v38 }
 0x188   :  { %431 = vmatmul.bf16.vlgmr.msra.gmra.mxu0 %v388_v38  ;;  %615 = vmatpush.bf16.msrb.mxu2 %v1280_v18 }
 0x189   :  { %685 = vmatpush.bf16.msrb.mxu3 %v1269_v3  ;;  %698 = vmatpush.bf16.msra.mxu0 %v1271_v7 }
 0x18c   :  { %616 = vmatpush.bf16.msrb.mxu2 %v1290_v26 }
 0x18d   :  { %686 = vmatpush.bf16.msrb.mxu3 %v1274_v10  ;;  %699 = vmatpush.bf16.msra.mxu0 %v1278_v11 }
 0x190   :  { %617 = vmatpush.bf16.msrb.mxu2 %v1300_v35 }
 0x191   :  { %687 = vmatpush.bf16.msrb.mxu3 %v1283_v19  ;;  %700 = vmatpush.bf16.msra.mxu0 %v1287_v22 }
 0x194   :  { %618 = vmatpush.bf16.msrb.mxu2 %v1310_v44 }
 0x195   :  { %688 = vmatpush.bf16.msrb.mxu3 %v1293_v30  ;;  %701 = vmatpush.bf16.msra.mxu0 %v1297_v31 }
 0x198   :  { %619 = vmatpush.bf16.msrb.mxu2 %v1320_v53 }
 0x199   :  { %689 = vmatpush.bf16.msrb.mxu3 %v1303_v39  ;;  %702 = vmatpush.bf16.msra.mxu0 %v1307_v41 }
 0x19c   :  { %620 = vmatpush.bf16.msrb.mxu2 %v1330_v62 }
 0x19d   :  { %690 = vmatpush.bf16.msrb.mxu3 %v1313_v48  ;;  %703 = vmatpush.bf16.msra.mxu0 %v1317_v49 }
 0x1a0   :  { %621 = vmatpush.bf16.msrb.mxu2 %v1340_v5 }
 0x1a1   :  { %691 = vmatpush.bf16.msrb.mxu3 %v1323_v57  ;;  %704 = vmatpush.bf16.msra.mxu0 %v1327_v58 }
 0x1a4   :  { %622 = vmatpush.bf16.msrb.mxu2 %v1346_v9 }
 0x1a5   :  { %692 = vmatpush.bf16.msrb.mxu3 %v1333_v2  ;;  %705 = vmatpush.bf16.msra.mxu0 %v1337_v4 }
 0x205   :  { %v432_v40 = vpop.f32.mrf.mxu0 }
 0x206   :  { %v476_v27 = vadd.f32 %v1411_v43, %v432_v40 }
 0x20a   :  { %v406_v46 = vpop.f32.mrf.mxu2  ;;  %v419_v47 = vpop.f32.mrf.mxu3 }
 0x20b   :  { %v436_v50 = vadd.f32 %v406_v46, %v394_v42  ;;  %v456_v51 = vadd.f32 %v419_v47, %v395_v45 }
 0x20d   :  { %v1078_v52 = vmul.f32 -1.442695, %v436_v50  ;;  %v1079_v54 = vmul.f32 -1.442695, %v456_v51  ;;  %v434_v55 = vpop.f32.mrf.mxu0 }
 0x20f   :  { %1155 = vpow2.f32 %v1078_v52 }
 0x210   :  { %1157 = vpow2.f32 %v1079_v54 }
 0x212   :  { %v408_v56 = vpop.f32.mrf.mxu2  ;;  %v421_v59 = vpop.f32.mrf.mxu3 }
 0x215   :  { %v1156_v60 = vpop.eup %1155 }
 0x216   :  { %v1158_v61 = vpop.eup %1157  ;;  %v440_v63 = vadd.f32 1.0, %v1156_v60 }
 0x217   :  { %v460_v0 = vadd.f32 1.0, %v1158_v61 }
 0x218   :  { %1159 = vrcp.f32 %v440_v63  ;;  %v452_v14 = vand.u32 2147483648, %v440_v63  ;;  %v450_v17 = vand.u32 2147483647, %v440_v63  ;;  %vm446_vm1 = vweird.f32 %v440_v63 }
 0x219   :  { %1161 = vrcp.f32 %v460_v0  ;;  %v472_v36 = vand.u32 2147483648, %v460_v0  ;;  %vm466_vm5 = vweird.f32 %v460_v0  ;;  %v470_v38 = vand.u32 2147483647, %v460_v0 }
 0x21a   :  { %v453_v25 = vor.u32 1.1754944e-38, %v452_v14  ;;  %vm451_vm3 = vcmp.eq.f32.partialorder %v450_v17, 8.507059e+37 }
 0x21b   :  { %v473_v45 = vor.u32 1.1754944e-38, %v472_v36  ;;  %vm471_vm7 = vcmp.eq.f32.partialorder %v470_v38, 8.507059e+37 }
 0x21e   :  { %v1160_v1 = vpop.eup %1159 }
 0x21f   :  { %v1162_v6 = vpop.eup %1161  ;;  %v442_v8 = vmul.f32 %v1160_v1, %v440_v63  ;;  %vm447_vm0 = vweird.f32 %v1160_v1 }
 0x220   :  { %v462_v12 = vmul.f32 %v1162_v6, %v460_v0  ;;  %vm448_vm2 = vmor %vm446_vm1, %vm447_vm0  ;;  %vm467_vm4 = vweird.f32 %v1162_v6 }
 0x221   :  { %v443_v13 = vsub.f32 1.0, %v442_v8  ;;  %vm468_vm6 = vmor %vm466_vm5, %vm467_vm4 }
 0x222   :  { %v463_v15 = vsub.f32 1.0, %v462_v12 }
 0x223   :  { %v444_v16 = vmul.f32 %v1160_v1, %v443_v13 }
 0x224   :  { %v464_v20 = vmul.f32 %v1162_v6, %v463_v15 }
 0x225   :  { %v445_v24 = vadd.f32 %v1160_v1, %v444_v16 }
 0x226   :  { %v465_v34 = vadd.f32 %v1162_v6, %v464_v20 }
 0x227   :  { %v449_v28 = vsel %vm448_vm2, %v1160_v1, %v445_v24 }
 0x228   :  { %v454_v33 = vsel %vm451_vm3, %v453_v25, %v449_v28  ;;  %v469_v42 = vsel %vm468_vm6, %v1162_v6, %v465_v34 }
 0x229   :  { %v477_v32 = vmul.f32 %v476_v27, %v454_v33  ;;  %v474_v46 = vsel %vm471_vm7, %v473_v45, %v469_v42  ;;  %v1082_v27 = vld [vmem:[%s1631_s0 + $0x2c] sm:$0xf] }
 0x22a   :  { %v480_v47 = vsub.f32 1.0, %v474_v46  ;;  %v482_v51 = vmul.f32 %v474_v46, %v1456_v37  ;;  %v1081_v37 = vld [vmem:[%s1631_s0 + $0x24] sm:$0xff]  ;;  %v492_v36 = vunpack.c.l.bf16 %v1082_v27 }
 0x22b   :  { %v478_v23 = vadd.f32 %v477_v32, %v396_v29  ;;  %v490_v55 = vunpack.c.l.bf16 %v1081_v37  ;;  %v491_v61 = vunpack.c.h.bf16 %v1081_v37 }
 0x22d   :  { %1163 = vtanh.f32 %v478_v23 }
 0x233   :  { %v1164_v50 = vpop.eup %1163 }
 0x234   :  { %v481_v40 = vmul.f32 %v1164_v50, %v480_v47 }
 0x236   :  { %v1495_v52 = vadd.f32 %v482_v51, %v481_v40 }
 0x238   :  { %v484_v54 = vpack.c.bf16 %v1495_v52, %v1495_v52 }
 0x23a   :  { %1080 = vst [vmem:[%s1634_s3 + $0x8] sm:$0xf] %v484_v54  ;;  %501 = vmatmul.bf16.vlgmr.msra.gmra.mxu1 %v484_v54  ;;  %514 = vmatmul.bf16.vlgmr.msra.gmra.mxu2 %v484_v54 }
 0x23b   :  { %527 = vmatmul.bf16.vlgmr.msra.gmra.mxu3 %v484_v54  ;;  %711 = vmatpush.bf16.msra.mxu1 %v1280_v18 }
 0x23c   :  { %781 = vmatpush.bf16.msra.mxu2 %v1269_v3  ;;  %794 = vmatpush.bf16.msra.mxu3 %v1271_v7 }
 0x23f   :  { %712 = vmatpush.bf16.msra.mxu1 %v1290_v26 }
 0x240   :  { %782 = vmatpush.bf16.msra.mxu2 %v1274_v10  ;;  %795 = vmatpush.bf16.msra.mxu3 %v1278_v11 }
 0x243   :  { %713 = vmatpush.bf16.msra.mxu1 %v1300_v35 }
 0x244   :  { %783 = vmatpush.bf16.msra.mxu2 %v1283_v19  ;;  %796 = vmatpush.bf16.msra.mxu3 %v1287_v22 }
 0x247   :  { %714 = vmatpush.bf16.msra.mxu1 %v1310_v44 }
 0x248   :  { %784 = vmatpush.bf16.msra.mxu2 %v1293_v30  ;;  %797 = vmatpush.bf16.msra.mxu3 %v1297_v31 }
 0x24b   :  { %715 = vmatpush.bf16.msra.mxu1 %v1320_v53 }
 0x24c   :  { %785 = vmatpush.bf16.msra.mxu2 %v1303_v39  ;;  %798 = vmatpush.bf16.msra.mxu3 %v1307_v41 }
 0x24f   :  { %716 = vmatpush.bf16.msra.mxu1 %v1330_v62 }
 0x250   :  { %786 = vmatpush.bf16.msra.mxu2 %v1313_v48  ;;  %799 = vmatpush.bf16.msra.mxu3 %v1317_v49 }
 0x253   :  { %717 = vmatpush.bf16.msra.mxu1 %v1340_v5 }
 0x254   :  { %787 = vmatpush.bf16.msra.mxu2 %v1323_v57  ;;  %800 = vmatpush.bf16.msra.mxu3 %v1327_v58 }
 0x257   :  { %718 = vmatpush.bf16.msra.mxu1 %v1346_v9 }
 0x258   :  { %788 = vmatpush.bf16.msra.mxu2 %v1333_v2  ;;  %801 = vmatpush.bf16.msra.mxu3 %v1337_v4 }
 0x2b7   :  { %v502_v56 = vpop.f32.mrf.mxu1 }
 0x2b8   :  { %v532_v59 = vadd.f32 %v502_v56, %v490_v55 }
 0x2ba   :  { %v1083_v60 = vmul.f32 -1.442695, %v532_v59 }
 0x2bc   :  { %1165 = vpow2.f32 %v1083_v60 }
 0x2bd   :  { %v515_v63 = vpop.f32.mrf.mxu2 }
 0x2be   :  { %v552_v0 = vadd.f32 %v515_v63, %v491_v61  ;;  %v528_v1 = vpop.f32.mrf.mxu3 }
 0x2bf   :  { %v504_v6 = vpop.f32.mrf.mxu1  ;;  %v572_v45 = vadd.f32 %v1411_v43, %v528_v1 }
 0x2c0   :  { %v1084_v8 = vmul.f32 -1.442695, %v552_v0 }
 0x2c2   :  { %v1166_v12 = vpop.eup %1165  ;;  %1167 = vpow2.f32 %v1084_v8 }
 0x2c3   :  { %v536_v13 = vadd.f32 1.0, %v1166_v12 }
 0x2c5   :  { %1169 = vrcp.f32 %v536_v13  ;;  %v517_v14 = vpop.f32.mrf.mxu2  ;;  %v548_v25 = vand.u32 2147483648, %v536_v13  ;;  %v546_v29 = vand.u32 2147483647, %v536_v13  ;;  %vm542_vm9 = vweird.f32 %v536_v13 }
 0x2c6   :  { %v530_v15 = vpop.f32.mrf.mxu3 }
 0x2c7   :  { %v549_v38 = vor.u32 1.1754944e-38, %v548_v25  ;;  %vm547_vm11 = vcmp.eq.f32.partialorder %v546_v29, 8.507059e+37  ;;  %v1087_v25 = vld [vmem:[%s1631_s0 + $0x38] sm:$0xf] }
 0x2c8   :  { %v1168_v16 = vpop.eup %1167  ;;  %v588_v29 = vunpack.c.l.bf16 %v1087_v25 }
 0x2c9   :  { %v556_v17 = vadd.f32 1.0, %v1168_v16 }
 0x2cb   :  { %v1170_v20 = vpop.eup %1169  ;;  %1171 = vrcp.f32 %v556_v17  ;;  %v568_v50 = vand.u32 2147483648, %v556_v17  ;;  %v566_v51 = vand.u32 2147483647, %v556_v17  ;;  %vm562_vm13 = vweird.f32 %v556_v17 }
 0x2cc   :  { %v538_v21 = vmul.f32 %v1170_v20, %v536_v13  ;;  %vm543_vm8 = vweird.f32 %v1170_v20 }
 0x2cd   :  { %vm544_vm10 = vmor %vm542_vm9, %vm543_vm8  ;;  %v569_v55 = vor.u32 1.1754944e-38, %v568_v50  ;;  %vm567_vm15 = vcmp.eq.f32.partialorder %v566_v51, 8.507059e+37 }
 0x2ce   :  { %v539_v24 = vsub.f32 1.0, %v538_v21 }
 0x2d0   :  { %v540_v28 = vmul.f32 %v1170_v20, %v539_v24 }
 0x2d1   :  { %v1172_v33 = vpop.eup %1171 }
 0x2d2   :  { %v558_v34 = vmul.f32 %v1172_v33, %v556_v17  ;;  %v541_v32 = vadd.f32 %v1170_v20, %v540_v28  ;;  %vm563_vm12 = vweird.f32 %v1172_v33 }
 0x2d3   :  { %vm564_vm14 = vmor %vm562_vm13, %vm563_vm12 }
 0x2d4   :  { %v559_v23 = vsub.f32 1.0, %v558_v34  ;;  %v545_v42 = vsel %vm544_vm10, %v1170_v20, %v541_v32 }
 0x2d5   :  { %v550_v46 = vsel %vm547_vm11, %v549_v38, %v545_v42 }
 0x2d6   :  { %v560_v47 = vmul.f32 %v1172_v33, %v559_v23  ;;  %v573_v40 = vmul.f32 %v572_v45, %v550_v46 }
 0x2d8   :  { %v574_v54 = vadd.f32 %v573_v40, %v492_v36  ;;  %v561_v37 = vadd.f32 %v1172_v33, %v560_v47 }
 0x2da   :  { %1173 = vtanh.f32 %v574_v54  ;;  %v565_v56 = vsel %vm564_vm14, %v1172_v33, %v561_v37 }
 0x2db   :  { %v570_v59 = vsel %vm567_vm15, %v569_v55, %v565_v56 }
 0x2dc   :  { %v576_v60 = vsub.f32 1.0, %v570_v59  ;;  %v578_v0 = vmul.f32 %v570_v59, %v1495_v52  ;;  %v1091_v59 = vld [vmem:[%s1631_s0 + $0x3c] sm:$0xff] }
 0x2e0   :  { %v1174_v61 = vpop.eup %1173 }
 0x2e1   :  { %v577_v63 = vmul.f32 %v1174_v61, %v576_v60  ;;  %v683_v60 = vunpack.c.h.bf16 %v1091_v59 }
 0x2e3   :  { %v1534_v1 = vadd.f32 %v578_v0, %v577_v63 }
 0x2e5   :  { %v580_v6 = vpack.c.bf16 %v1534_v1, %v1534_v1 }
 0x2e7   :  { %1085 = vst [vmem:[%s1634_s3 + $0xc] sm:$0xf] %v580_v6  ;;  %597 = vmatmul.bf16.vlgmr.msrb.gmra.mxu0 %v580_v6  ;;  %610 = vmatmul.bf16.vlgmr.msrb.gmra.mxu1 %v580_v6 }
 0x2e8   :  { %623 = vmatmul.bf16.vlgmr.msrb.gmra.mxu2 %v580_v6  ;;  %807 = vmatpush.bf16.msrb.mxu0 %v1280_v18 }
 0x2e9   :  { %877 = vmatpush.bf16.msrb.mxu1 %v1269_v3  ;;  %890 = vmatpush.bf16.msrb.mxu2 %v1271_v7  ;;  %v1086_v3 = vld [vmem:[%s1631_s0 + $0x30] sm:$0xff] }
 0x2ea   :  { %v586_v7 = vunpack.c.l.bf16 %v1086_v3 }
 0x2ec   :  { %808 = vmatpush.bf16.msrb.mxu0 %v1290_v26 }
 0x2ed   :  { %878 = vmatpush.bf16.msrb.mxu1 %v1274_v10  ;;  %891 = vmatpush.bf16.msrb.mxu2 %v1278_v11  ;;  %v587_v10 = vunpack.c.h.bf16 %v1086_v3 }
 0x2f0   :  { %809 = vmatpush.bf16.msrb.mxu0 %v1300_v35 }
 0x2f1   :  { %879 = vmatpush.bf16.msrb.mxu1 %v1283_v19  ;;  %892 = vmatpush.bf16.msrb.mxu2 %v1287_v22 }
 0x2f4   :  { %810 = vmatpush.bf16.msrb.mxu0 %v1310_v44 }
 0x2f5   :  { %880 = vmatpush.bf16.msrb.mxu1 %v1293_v30  ;;  %893 = vmatpush.bf16.msrb.mxu2 %v1297_v31 }
 0x2f8   :  { %811 = vmatpush.bf16.msrb.mxu0 %v1320_v53 }
 0x2f9   :  { %881 = vmatpush.bf16.msrb.mxu1 %v1303_v39  ;;  %894 = vmatpush.bf16.msrb.mxu2 %v1307_v41 }
 0x2fc   :  { %812 = vmatpush.bf16.msrb.mxu0 %v1330_v62 }
 0x2fd   :  { %882 = vmatpush.bf16.msrb.mxu1 %v1313_v48  ;;  %895 = vmatpush.bf16.msrb.mxu2 %v1317_v49 }
 0x300   :  { %813 = vmatpush.bf16.msrb.mxu0 %v1340_v5 }
 0x301   :  { %883 = vmatpush.bf16.msrb.mxu1 %v1323_v57  ;;  %896 = vmatpush.bf16.msrb.mxu2 %v1327_v58 }
 0x304   :  { %814 = vmatpush.bf16.msrb.mxu0 %v1346_v9 }
 0x305   :  { %884 = vmatpush.bf16.msrb.mxu1 %v1333_v2  ;;  %897 = vmatpush.bf16.msrb.mxu2 %v1337_v4 }
 0x364   :  { %v598_v11 = vpop.f32.mrf.mxu0  ;;  %v611_v19 = vpop.f32.mrf.mxu1 }
 0x365   :  { %v628_v22 = vadd.f32 %v598_v11, %v586_v7  ;;  %v648_v30 = vadd.f32 %v611_v19, %v587_v10 }
 0x367   :  { %v1088_v31 = vmul.f32 -1.442695, %v628_v22  ;;  %v1089_v39 = vmul.f32 -1.442695, %v648_v30 }
 0x369   :  { %1175 = vpow2.f32 %v1088_v31 }
 0x36a   :  { %1177 = vpow2.f32 %v1089_v39 }
 0x36b   :  { %v624_v41 = vpop.f32.mrf.mxu2 }
 0x36c   :  { %v600_v48 = vpop.f32.mrf.mxu0  ;;  %v613_v49 = vpop.f32.mrf.mxu1  ;;  %v668_v34 = vadd.f32 %v1411_v43, %v624_v41 }
 0x36f   :  { %v1176_v57 = vpop.eup %1175 }
 0x370   :  { %v1178_v58 = vpop.eup %1177  ;;  %v632_v2 = vadd.f32 1.0, %v1176_v57  ;;  %v1092_v57 = vld [vmem:[%s1631_s0 + $0x44] sm:$0xf] }
 0x371   :  { %v652_v4 = vadd.f32 1.0, %v1178_v58 }
 0x372   :  { %1179 = vrcp.f32 %v632_v2  ;;  %v644_v17 = vand.u32 2147483648, %v632_v2  ;;  %v642_v21 = vand.u32 2147483647, %v632_v2  ;;  %vm638_vm1 = vweird.f32 %v632_v2 }
 0x373   :  { %1181 = vrcp.f32 %v652_v4  ;;  %v626_v52 = vpop.f32.mrf.mxu2  ;;  %v664_v38 = vand.u32 2147483648, %v652_v4  ;;  %vm658_vm5 = vweird.f32 %v652_v4  ;;  %v662_v42 = vand.u32 2147483647, %v652_v4 }
 0x374   :  { %v645_v28 = vor.u32 1.1754944e-38, %v644_v17  ;;  %vm643_vm3 = vcmp.eq.f32.partialorder %v642_v21, 8.507059e+37 }
 0x375   :  { %v665_v47 = vor.u32 1.1754944e-38, %v664_v38  ;;  %vm663_vm7 = vcmp.eq.f32.partialorder %v662_v42, 8.507059e+37 }
 0x378   :  { %v1180_v8 = vpop.eup %1179 }
 0x379   :  { %v1182_v12 = vpop.eup %1181  ;;  %v634_v13 = vmul.f32 %v1180_v8, %v632_v2  ;;  %vm639_vm0 = vweird.f32 %v1180_v8 }
 0x37a   :  { %v654_v14 = vmul.f32 %v1182_v12, %v652_v4  ;;  %vm640_vm2 = vmor %vm638_vm1, %vm639_vm0  ;;  %vm659_vm4 = vweird.f32 %v1182_v12 }
 0x37b   :  { %v635_v15 = vsub.f32 1.0, %v634_v13  ;;  %vm660_vm6 = vmor %vm658_vm5, %vm659_vm4 }
 0x37c   :  { %v655_v16 = vsub.f32 1.0, %v654_v14 }
 0x37d   :  { %v636_v20 = vmul.f32 %v1180_v8, %v635_v15 }
 0x37e   :  { %v656_v24 = vmul.f32 %v1182_v12, %v655_v16 }
 0x37f   :  { %v637_v27 = vadd.f32 %v1180_v8, %v636_v20 }
 0x380   :  { %v657_v36 = vadd.f32 %v1182_v12, %v656_v24 }
 0x381   :  { %v641_v33 = vsel %vm640_vm2, %v1180_v8, %v637_v27  ;;  %v684_v8 = vunpack.c.l.bf16 %v1092_v57 }
 0x382   :  { %v646_v32 = vsel %vm643_vm3, %v645_v28, %v641_v33  ;;  %v661_v46 = vsel %vm660_vm6, %v1182_v12, %v657_v36 }
 0x383   :  { %v669_v23 = vmul.f32 %v668_v34, %v646_v32  ;;  %v666_v50 = vsel %vm663_vm7, %v665_v47, %v661_v46  ;;  %v1096_v32 = vld [vmem:[%s1631_s0 + $0x48] sm:$0xff] }
 0x384   :  { %v672_v40 = vsub.f32 1.0, %v666_v50  ;;  %v674_v37 = vmul.f32 %v666_v50, %v1534_v1  ;;  %v778_v38 = vunpack.c.l.bf16 %v1096_v32 }
 0x385   :  { %v670_v45 = vadd.f32 %v669_v23, %v588_v29  ;;  %v779_v23 = vunpack.c.h.bf16 %v1096_v32 }
 0x387   :  { %1183 = vtanh.f32 %v670_v45 }
 0x38d   :  { %v1184_v51 = vpop.eup %1183 }
 0x38e   :  { %v673_v54 = vmul.f32 %v1184_v51, %v672_v40 }
 0x390   :  { %v1573_v55 = vadd.f32 %v674_v37, %v673_v54 }
 0x392   :  { %v676_v56 = vpack.c.bf16 %v1573_v55, %v1573_v55 }
 0x394   :  { %1090 = vst [vmem:[%s1634_s3 + $0x10] sm:$0xf] %v676_v56  ;;  %693 = vmatmul.bf16.vlgmr.msrb.gmra.mxu3 %v676_v56  ;;  %706 = vmatmul.bf16.vlgmr.msra.gmra.mxu0 %v676_v56 }
 0x395   :  { %719 = vmatmul.bf16.vlgmr.msra.gmra.mxu1 %v676_v56  ;;  %903 = vmatpush.bf16.msrb.mxu3 %v1280_v18 }
 0x399   :  { %904 = vmatpush.bf16.msrb.mxu3 %v1290_v26 }
 0x39d   :  { %905 = vmatpush.bf16.msrb.mxu3 %v1300_v35  ;;  %v682_v35 = vunpack.c.l.bf16 %v1091_v59 }
 0x3a1   :  { %906 = vmatpush.bf16.msrb.mxu3 %v1310_v44 }
 0x3a5   :  { %907 = vmatpush.bf16.msrb.mxu3 %v1320_v53 }
 0x3a9   :  { %908 = vmatpush.bf16.msrb.mxu3 %v1330_v62 }
 0x3ad   :  { %909 = vmatpush.bf16.msrb.mxu3 %v1340_v5 }
 0x3b1   :  { %910 = vmatpush.bf16.msrb.mxu3 %v1346_v9 }
 0x411   :  { %v707_v18 = vpop.f32.mrf.mxu0 }
 0x412   :  { %v744_v61 = vadd.f32 %v707_v18, %v683_v60  ;;  %v720_v26 = vpop.f32.mrf.mxu1 }
 0x413   :  { %v764_v4 = vadd.f32 %v1411_v43, %v720_v26 }
 0x414   :  { %v1094_v63 = vmul.f32 -1.442695, %v744_v61 }
 0x416   :  { %1185 = vpow2.f32 %v1094_v63 }
 0x417   :  { %v694_v44 = vpop.f32.mrf.mxu3 }
 0x418   :  { %v724_v0 = vadd.f32 %v694_v44, %v682_v35 }
 0x419   :  { %v709_v53 = vpop.f32.mrf.mxu0 }
 0x41a   :  { %v1093_v1 = vmul.f32 -1.442695, %v724_v0  ;;  %v722_v62 = vpop.f32.mrf.mxu1 }
 0x41c   :  { %v1186_v6 = vpop.eup %1185  ;;  %1187 = vpow2.f32 %v1093_v1 }
 0x41d   :  { %v748_v5 = vadd.f32 1.0, %v1186_v6  ;;  %v1097_v6 = vld [vmem:[%s1631_s0 + $0x50] sm:$0xf] }
 0x41f   :  { %v696_v9 = vpop.f32.mrf.mxu3  ;;  %1189 = vrcp.f32 %v748_v5  ;;  %v760_v14 = vand.u32 2147483648, %v748_v5  ;;  %vm754_vm13 = vweird.f32 %v748_v5  ;;  %v758_v16 = vand.u32 2147483647, %v748_v5 }
 0x421   :  { %v761_v21 = vor.u32 1.1754944e-38, %v760_v14  ;;  %vm759_vm15 = vcmp.eq.f32.partialorder %v758_v16, 8.507059e+37 }
 0x422   :  { %v1188_v3 = vpop.eup %1187 }
 0x423   :  { %v728_v7 = vadd.f32 1.0, %v1188_v3 }
 0x425   :  { %1191 = vrcp.f32 %v728_v7  ;;  %v1190_v10 = vpop.eup %1189  ;;  %v740_v39 = vand.u32 2147483648, %v728_v7  ;;  %v738_v48 = vand.u32 2147483647, %v728_v7  ;;  %vm734_vm9 = vweird.f32 %v728_v7 }
 0x426   :  { %v750_v11 = vmul.f32 %v1190_v10, %v748_v5  ;;  %vm755_vm12 = vweird.f32 %v1190_v10 }
 0x427   :  { %v741_v2 = vor.u32 1.1754944e-38, %v740_v39  ;;  %vm739_vm11 = vcmp.eq.f32.partialorder %v738_v48, 8.507059e+37  ;;  %vm756_vm14 = vmor %vm754_vm13, %vm755_vm12 }
 0x428   :  { %v751_v30 = vsub.f32 1.0, %v750_v11 }
 0x42a   :  { %v752_v49 = vmul.f32 %v1190_v10, %v751_v30 }
 0x42b   :  { %v1192_v19 = vpop.eup %1191 }
 0x42c   :  { %v730_v22 = vmul.f32 %v1192_v19, %v728_v7  ;;  %vm735_vm8 = vweird.f32 %v1192_v19  ;;  %v753_v13 = vadd.f32 %v1190_v10, %v752_v49 }
 0x42d   :  { %vm736_vm10 = vmor %vm734_vm9, %vm735_vm8 }
 0x42e   :  { %v731_v31 = vsub.f32 1.0, %v730_v22  ;;  %v757_v20 = vsel %vm756_vm14, %v1190_v10, %v753_v13  ;;  %v780_v10 = vunpack.c.l.bf16 %v1097_v6 }
 0x42f   :  { %v762_v24 = vsel %vm759_vm15, %v761_v21, %v757_v20 }
 0x430   :  { %v732_v41 = vmul.f32 %v1192_v19, %v731_v31  ;;  %v768_v25 = vsub.f32 1.0, %v762_v24  ;;  %v770_v29 = vmul.f32 %v762_v24, %v1573_v55 }
 0x432   :  { %v733_v58 = vadd.f32 %v1192_v19, %v732_v41 }
 0x434   :  { %v737_v52 = vsel %vm736_vm10, %v1192_v19, %v733_v58 }
 0x435   :  { %v742_v12 = vsel %vm739_vm11, %v741_v2, %v737_v52 }
 0x436   :  { %v765_v15 = vmul.f32 %v764_v4, %v742_v12 }
 0x438   :  { %v766_v17 = vadd.f32 %v765_v15, %v684_v8  ;;  %v1101_v8 = vld [vmem:[%s1631_s0 + $0x54] sm:$0xff] }
 0x439   :  { %v874_v12 = vunpack.c.l.bf16 %v1101_v8  ;;  %v875_v16 = vunpack.c.h.bf16 %v1101_v8 }
 0x43a   :  { %1193 = vtanh.f32 %v766_v17 }
 0x440   :  { %v1194_v27 = vpop.eup %1193 }
 0x441   :  { %v769_v28 = vmul.f32 %v1194_v27, %v768_v25 }
 0x443   :  { %v1596_v33 = vadd.f32 %v770_v29, %v769_v28 }
 0x445   :  { %v772_v34 = vpack.c.bf16 %v1596_v33, %v1596_v33 }
 0x447   :  { %1095 = vst [vmem:[%s1634_s3 + $0x14] sm:$0xf] %v772_v34  ;;  %789 = vmatmul.bf16.vlgmr.msra.gmra.mxu2 %v772_v34  ;;  %802 = vmatmul.bf16.vlgmr.msra.gmra.mxu3 %v772_v34 }
 0x448   :  { %815 = vmatmul.bf16.vlgmr.msrb.gmra.mxu0 %v772_v34 }
 0x4c5   :  { %v816_v36 = vpop.f32.mrf.mxu0 }
 0x4c6   :  { %v860_v3 = vadd.f32 %v1411_v43, %v816_v36 }
 0x4ca   :  { %v790_v42 = vpop.f32.mrf.mxu2  ;;  %v803_v45 = vpop.f32.mrf.mxu3 }
 0x4cb   :  { %v820_v46 = vadd.f32 %v790_v42, %v778_v38  ;;  %v840_v47 = vadd.f32 %v803_v45, %v779_v23  ;;  %v1102_v45 = vld [vmem:[%s1631_s0 + $0x5c] sm:$0xf] }
 0x4cd   :  { %v1098_v50 = vmul.f32 -1.442695, %v820_v46  ;;  %v1099_v40 = vmul.f32 -1.442695, %v840_v47  ;;  %v818_v51 = vpop.f32.mrf.mxu0 }
 0x4cf   :  { %1195 = vpow2.f32 %v1098_v50 }
 0x4d0   :  { %1197 = vpow2.f32 %v1099_v40 }
 0x4d2   :  { %v792_v54 = vpop.f32.mrf.mxu2  ;;  %v805_v37 = vpop.f32.mrf.mxu3 }
 0x4d3   :  { %v876_v54 = vunpack.c.l.bf16 %v1102_v45 }
 0x4d5   :  { %v1196_v55 = vpop.eup %1195 }
 0x4d6   :  { %v1198_v56 = vpop.eup %1197  ;;  %v824_v59 = vadd.f32 1.0, %v1196_v55 }
 0x4d7   :  { %v844_v60 = vadd.f32 1.0, %v1198_v56 }
 0x4d8   :  { %1199 = vrcp.f32 %v824_v59  ;;  %v836_v44 = vand.u32 2147483648, %v824_v59  ;;  %v834_v1 = vand.u32 2147483647, %v824_v59  ;;  %vm830_vm1 = vweird.f32 %v824_v59 }
 0x4d9   :  { %1201 = vrcp.f32 %v844_v60  ;;  %v856_v30 = vand.u32 2147483648, %v844_v60  ;;  %vm850_vm5 = vweird.f32 %v844_v60  ;;  %v854_v31 = vand.u32 2147483647, %v844_v60 }
 0x4da   :  { %v837_v9 = vor.u32 1.1754944e-38, %v836_v44  ;;  %vm835_vm3 = vcmp.eq.f32.partialorder %v834_v1, 8.507059e+37 }
 0x4db   :  { %v857_v48 = vor.u32 1.1754944e-38, %v856_v30  ;;  %vm855_vm7 = vcmp.eq.f32.partialorder %v854_v31, 8.507059e+37 }
 0x4de   :  { %v1200_v18 = vpop.eup %1199 }
 0x4df   :  { %v1202_v61 = vpop.eup %1201  ;;  %v826_v26 = vmul.f32 %v1200_v18, %v824_v59  ;;  %vm831_vm0 = vweird.f32 %v1200_v18  ;;  %v1215_v59 = vld [vmem:[%s1633_s2] ss:$0 sm:$0xff] }
 0x4e0   :  { %v846_v63 = vmul.f32 %v1202_v61, %v844_v60  ;;  %vm832_vm2 = vmor %vm830_vm1, %vm831_vm0  ;;  %vm851_vm4 = vweird.f32 %v1202_v61 }
 0x4e1   :  { %v827_v35 = vsub.f32 1.0, %v826_v26  ;;  %vm852_vm6 = vmor %vm850_vm5, %vm851_vm4 }
 0x4e2   :  { %v847_v0 = vsub.f32 1.0, %v846_v63 }
 0x4e3   :  { %v828_v53 = vmul.f32 %v1200_v18, %v827_v35 }
 0x4e4   :  { %v848_v62 = vmul.f32 %v1202_v61, %v847_v0 }
 0x4e5   :  { %v829_v5 = vadd.f32 %v1200_v18, %v828_v53 }
 0x4e6   :  { %v849_v19 = vadd.f32 %v1202_v61, %v848_v62 }
 0x4e7   :  { %v833_v7 = vsel %vm832_vm2, %v1200_v18, %v829_v5 }
 0x4e8   :  { %v838_v11 = vsel %vm835_vm3, %v837_v9, %v833_v7  ;;  %v853_v41 = vsel %vm852_vm6, %v1202_v61, %v849_v19 }
 0x4e9   :  { %v861_v22 = vmul.f32 %v860_v3, %v838_v11  ;;  %v858_v49 = vsel %vm855_vm7, %v857_v48, %v853_v41 }
 0x4ea   :  { %v864_v57 = vsub.f32 1.0, %v858_v49  ;;  %v866_v2 = vmul.f32 %v858_v49, %v1596_v33 }
 0x4eb   :  { %v862_v39 = vadd.f32 %v861_v22, %v780_v10 }
 0x4ed   :  { %1203 = vtanh.f32 %v862_v39 }
 0x4f3   :  { %v1204_v58 = vpop.eup %1203 }
 0x4f4   :  { %v865_v43 = vmul.f32 %v1204_v58, %v864_v57 }
 0x4f6   :  { %v1611_v4 = vadd.f32 %v866_v2, %v865_v43 }
 0x4f8   :  { %v868_v52 = vpack.c.bf16 %v1611_v4, %v1611_v4 }
 0x4fa   :  { %1100 = vst [vmem:[%s1634_s3 + $0x18] sm:$0xf] %v868_v52  ;;  %885 = vmatmul.bf16.vlgmr.msrb.gmra.mxu1 %v868_v52  ;;  %898 = vmatmul.bf16.vlgmr.msrb.gmra.mxu2 %v868_v52 }
 0x4fb   :  { %911 = vmatmul.bf16.vlgmr.msrb.gmra.mxu3 %v868_v52 }
 0x577   :  { %v886_v13 = vpop.f32.mrf.mxu1 }
 0x578   :  { %v916_v14 = vadd.f32 %v886_v13, %v874_v12 }
 0x57a   :  { %v1103_v15 = vmul.f32 -1.442695, %v916_v14 }
 0x57c   :  { %1205 = vpow2.f32 %v1103_v15 }
 0x57d   :  { %v899_v17 = vpop.f32.mrf.mxu2 }
 0x57e   :  { %v936_v20 = vadd.f32 %v899_v17, %v875_v16  ;;  %v912_v21 = vpop.f32.mrf.mxu3 }
 0x57f   :  { %v888_v24 = vpop.f32.mrf.mxu1  ;;  %v956_v60 = vadd.f32 %v1215_v59, %v912_v21 }
 0x580   :  { %v1104_v25 = vmul.f32 -1.442695, %v936_v20 }
 0x582   :  { %v1206_v27 = vpop.eup %1205  ;;  %1207 = vpow2.f32 %v1104_v25 }
 0x583   :  { %v920_v28 = vadd.f32 1.0, %v1206_v27 }
 0x585   :  { %1209 = vrcp.f32 %v920_v28  ;;  %v901_v29 = vpop.f32.mrf.mxu2  ;;  %v932_v42 = vand.u32 2147483648, %v920_v28  ;;  %v930_v47 = vand.u32 2147483647, %v920_v28  ;;  %vm926_vm9 = vweird.f32 %v920_v28 }
 0x586   :  { %v914_v33 = vpop.f32.mrf.mxu3 }
 0x587   :  { %v933_v37 = vor.u32 1.1754944e-38, %v932_v42  ;;  %vm931_vm11 = vcmp.eq.f32.partialorder %v930_v47, 8.507059e+37 }
 0x588   :  { %v1208_v34 = vpop.eup %1207 }
 0x589   :  { %v940_v32 = vadd.f32 1.0, %v1208_v34 }
 0x58b   :  { %v1210_v36 = vpop.eup %1209  ;;  %1211 = vrcp.f32 %v940_v32  ;;  %v952_v26 = vand.u32 2147483648, %v940_v32  ;;  %v950_v35 = vand.u32 2147483647, %v940_v32  ;;  %vm946_vm13 = vweird.f32 %v940_v32 }
 0x58c   :  { %v922_v38 = vmul.f32 %v1210_v36, %v920_v28  ;;  %vm927_vm8 = vweird.f32 %v1210_v36 }
 0x58d   :  { %vm928_vm10 = vmor %vm926_vm9, %vm927_vm8  ;;  %v953_v53 = vor.u32 1.1754944e-38, %v952_v26  ;;  %vm951_vm15 = vcmp.eq.f32.partialorder %v950_v35, 8.507059e+37 }
 0x58e   :  { %v923_v23 = vsub.f32 1.0, %v922_v38 }
 0x590   :  { %v924_v46 = vmul.f32 %v1210_v36, %v923_v23 }
 0x591   :  { %v1212_v50 = vpop.eup %1211 }
 0x592   :  { %v942_v40 = vmul.f32 %v1212_v50, %v940_v32  ;;  %v925_v51 = vadd.f32 %v1210_v36, %v924_v46  ;;  %vm947_vm12 = vweird.f32 %v1212_v50 }
 0x593   :  { %vm948_vm14 = vmor %vm946_vm13, %vm947_vm12 }
 0x594   :  { %v943_v55 = vsub.f32 1.0, %v942_v40  ;;  %v929_v56 = vsel %vm928_vm10, %v1210_v36, %v925_v51 }
 0x595   :  { %v934_v18 = vsel %vm931_vm11, %v933_v37, %v929_v56 }
 0x596   :  { %v944_v61 = vmul.f32 %v1212_v50, %v943_v55  ;;  %v957_v63 = vmul.f32 %v956_v60, %v934_v18 }
 0x598   :  { %v945_v44 = vadd.f32 %v1212_v50, %v944_v61  ;;  %v958_v0 = vadd.f32 %v957_v63, %v876_v54 }
 0x59a   :  { %v949_v1 = vsel %vm948_vm14, %v1212_v50, %v945_v44  ;;  %1213 = vtanh.f32 %v958_v0 }
 0x59b   :  { %v954_v62 = vsel %vm951_vm15, %v953_v53, %v949_v1 }
 0x59c   :  { %v960_v6 = vsub.f32 1.0, %v954_v62  ;;  %v962_v3 = vmul.f32 %v954_v62, %v1611_v4 }
 0x5a0   :  { %v1214_v5 = vpop.eup %1213 }
 0x5a1   :  { %v961_v9 = vmul.f32 %v1214_v5, %v960_v6 }
 0x5a3   :  { %v963_v7 = vadd.f32 %v962_v3, %v961_v9 }
 0x5a5   :  { %v964_v10 = vpack.c.bf16 %v963_v7, %v963_v7 }
 0x5a7   :  { %1105 = vst [vmem:[%s1634_s3 + $0x1c] sm:$0xf] %v964_v10 }
 0x5a8   :  { %972 = vsyncpa [#allocation4], 1 }

// kernel: gru_dense_forward.7
= control target key start
LH: loop header
LB: loop body
LE: loop exit
PB: predicated region body
PF: predicated region fallthrough
CT: control target
= control target key end

     0   :  { %10 = vsyncpa [#allocation5], 0  ;;  %s1494_s21 = smov [#allocation4]   ;;  %s1495_s23 = smov 192   ;;  %s1940_s0 = inlined_call_operand.vmem [shape: bf16[8,8,384], index: 0, kind: input, shape index: {}]   ;;  %s1941_s1 = inlined_call_operand.hbm [shape: bf16[128,384], index: 1, kind: input, shape index: {}]   ;;  %s1942_s2 = inlined_call_operand.vmem [shape: f32[1,128], index: 2, kind: input, shape index: {}]   ;;  %s1943_s3 = inlined_call_operand.vmem [shape: bf16[128,128], index: 3, kind: input, shape index: {}]   ;;  %s1944_s4 = inlined_call_operand.vmem [shape: f32[1,128], index: 4, kind: input, shape index: {}]   ;;  %s1945_s5 = inlined_call_operand.vmem [shape: f32[8,8,128], index: 5, kind: output, shape index: {}]  }
   0x1   :  { %s17_s20 = sshll.u32 %s1941_s1, 4  ;;  %s19_s22 = sshll.u32 %s1494_s21, 4  ;;  %s18_s20 = int_to_ptr.hbm [resolvable:$true] %s17_s20  ;;  %s20_s22 = int_to_ptr.vmem [resolvable:$true] %s19_s22 }
   0x2   :  { %s1496_s24 = smov 12  }
   0x3   :  { %25 = dma.hbm_to_vmem [thread:$0]  %s18_s20, 3072, %s20_s22, [#allocation5], %s1495_s23, %s1495_s23, %s1496_s24  }
   0x4   :  { %1492 = dma.done.wait [#allocation5], 3072  }
   0x5   :  { %1493 = vsyncadd [#allocation5], 4294964224  ;;  %v1225_v0 = vld [vmem:[#allocation4 + $0xa8] sm:$0xf]  ;;  %v1335_v1 = vld [vmem:[#allocation4 + $0xb0] sm:$0xf0] }
   0x6   :  { %v1213_v2 = vld [vmem:[#allocation4 + $0x90] sm:$0xf]  ;;  %v1531_v3 = vor.u32 %v1335_v1, %v1225_v0  ;;  %v1332_v4 = vld [vmem:[#allocation4 + $0x98] sm:$0xf0]  ;;  %v1201_v6 = vld [vmem:[#allocation4 + $0x78] sm:$0xf] }
   0x7   :  { %v1534_v5 = vor.u32 %v1332_v4, %v1213_v2  ;;  %v1329_v7 = vld [vmem:[#allocation4 + $0x80] sm:$0xf0]  ;;  %v1233_v8 = vld [vmem:[#allocation4 + $0xb0] sm:$0xf]  ;;  %v1336_v9 = vld [vmem:[#allocation4 + $0xb8] sm:$0xf0] }
   0x8   :  { %212 = vmatpush.bf16.msra.mxu1 %v1531_v3  ;;  %309 = vmatpush.bf16.msra.mxu3 %v1531_v3  ;;  %v1537_v10 = vor.u32 %v1336_v9, %v1233_v8  ;;  %v1221_v11 = vld [vmem:[#allocation4 + $0x98] sm:$0xf]  ;;  %v1333_v12 = vld [vmem:[#allocation4 + $0xa0] sm:$0xf0]  ;;  %v1540_v13 = vor.u32 %v1329_v7, %v1201_v6  ;;  %v1189_v14 = vld [vmem:[#allocation4 + $0x60] sm:$0xf] }
   0x9   :  { %v1543_v15 = vor.u32 %v1333_v12, %v1221_v11  ;;  %v1326_v16 = vld [vmem:[#allocation4 + $0x68] sm:$0xf0]  ;;  %v1209_v17 = vld [vmem:[#allocation4 + $0x80] sm:$0xf]  ;;  %v1177_v20 = vld [vmem:[#allocation4 + $0x48] sm:$0xf] }
   0xa   :  { %238 = vmatpush.bf16.msra.mxu2 %v1537_v10  ;;  %v1330_v18 = vld [vmem:[#allocation4 + $0x88] sm:$0xf0]  ;;  %433 = vmatpush.bf16.msra.mxu0 %v1537_v10  ;;  %v1548_v19 = vor.u32 %v1326_v16, %v1189_v14  ;;  %v1323_v22 = vld [vmem:[#allocation4 + $0x50] sm:$0xf0]  ;;  %v1197_v23 = vld [vmem:[#allocation4 + $0x68] sm:$0xf] }
   0xb   :  { %v1551_v21 = vor.u32 %v1330_v18, %v1209_v17  ;;  %v1327_v24 = vld [vmem:[#allocation4 + $0x70] sm:$0xf0]  ;;  %v1556_v25 = vor.u32 %v1323_v22, %v1177_v20  ;;  %v1165_v26 = vld [vmem:[#allocation4 + $0x30] sm:$0xf]  ;;  %v1320_v28 = vld [vmem:[#allocation4 + $0x38] sm:$0xf0] }
   0xc   :  { %213 = vmatpush.bf16.msra.mxu1 %v1534_v5  ;;  %310 = vmatpush.bf16.msra.mxu3 %v1534_v5  ;;  %v1559_v27 = vor.u32 %v1327_v24, %v1197_v23  ;;  %v1185_v29 = vld [vmem:[#allocation4 + $0x50] sm:$0xf]  ;;  %v1324_v30 = vld [vmem:[#allocation4 + $0x58] sm:$0xf0]  ;;  %v1564_v31 = vor.u32 %v1320_v28, %v1165_v26  ;;  %v1153_v32 = vld [vmem:[#allocation4 + $0x18] sm:$0xf] }
   0xd   :  { %v1567_v33 = vor.u32 %v1324_v30, %v1185_v29  ;;  %v1317_v34 = vld [vmem:[#allocation4 + $0x20] sm:$0xf0]  ;;  %v1173_v35 = vld [vmem:[#allocation4 + $0x38] sm:$0xf]  ;;  %v1141_v38 = vld [vmem:[#allocation4] sm:$0xf] }
   0xe   :  { %239 = vmatpush.bf16.msra.mxu2 %v1543_v15  ;;  %434 = vmatpush.bf16.msra.mxu0 %v1543_v15  ;;  %v1321_v36 = vld [vmem:[#allocation4 + $0x40] sm:$0xf0]  ;;  %v1572_v37 = vor.u32 %v1317_v34, %v1153_v32  ;;  %v1314_v40 = vld [vmem:[#allocation4 + $0x8] sm:$0xf0]  ;;  %v1161_v41 = vld [vmem:[#allocation4 + $0x20] sm:$0xf] }
   0xf   :  { %v1575_v39 = vor.u32 %v1321_v36, %v1173_v35  ;;  %v1318_v42 = vld [vmem:[#allocation4 + $0x28] sm:$0xf0]  ;;  %v1227_v44 = vld [vmem:[#allocation4 + $0xb4] sm:$0xf0]  ;;  %v1580_v45 = vor.u32 %v1314_v40, %v1141_v38  ;;  %v1149_v48 = vld [vmem:[#allocation4 + $0x8] sm:$0xf] }
  0x10   :  { %214 = vmatpush.bf16.msra.mxu1 %v1540_v13  ;;  %311 = vmatpush.bf16.msra.mxu3 %v1540_v13  ;;  %v1334_v43 = vld [vmem:[#allocation4 + $0xac] sm:$0xf]  ;;  %v1583_v46 = vor.u32 %v1318_v42, %v1161_v41  ;;  %v1315_v49 = vld [vmem:[#allocation4 + $0x10] sm:$0xf0]  ;;  %v1215_v51 = vld [vmem:[#allocation4 + $0x9c] sm:$0xf0] }
  0x11   :  { %v1585_v47 = vor.u32 %v1334_v43, %v1227_v44  ;;  %v1331_v50 = vld [vmem:[#allocation4 + $0x94] sm:$0xf]  ;;  %v1591_v52 = vor.u32 %v1315_v49, %v1149_v48  ;;  %v1328_v54 = vld [vmem:[#allocation4 + $0x7c] sm:$0xf]  ;;  %v1203_v55 = vld [vmem:[#allocation4 + $0x84] sm:$0xf0] }
  0x12   :  { %240 = vmatpush.bf16.msra.mxu2 %v1551_v21  ;;  %435 = vmatpush.bf16.msra.mxu0 %v1551_v21  ;;  %v1594_v53 = vor.u32 %v1331_v50, %v1215_v51  ;;  %v1497_v56 = vmov 0.0|0.0   ;;  %v1601_v57 = vor.u32 %v1328_v54, %v1203_v55  ;;  %v1325_v58 = vld [vmem:[#allocation4 + $0x64] sm:$0xf]  ;;  %v1191_v59 = vld [vmem:[#allocation4 + $0x6c] sm:$0xf0] }
  0x13   :  { %v1608_v60 = vor.u32 %v1325_v58, %v1191_v59  ;;  %v1322_v61 = vld [vmem:[#allocation4 + $0x4c] sm:$0xf]  ;;  %v1179_v62 = vld [vmem:[#allocation4 + $0x54] sm:$0xf0]  ;;  %v1319_v0 = vld [vmem:[#allocation4 + $0x34] sm:$0xf] }
  0x14   :  { %215 = vmatpush.bf16.msra.mxu1 %v1548_v19  ;;  %312 = vmatpush.bf16.msra.mxu3 %v1548_v19  ;;  %v1614_v63 = vor.u32 %v1322_v61, %v1179_v62  ;;  %v1167_v1 = vld [vmem:[#allocation4 + $0x3c] sm:$0xf0]  ;;  %v1316_v4 = vld [vmem:[#allocation4 + $0x1c] sm:$0xf]  ;;  %v1155_v6 = vld [vmem:[#allocation4 + $0x24] sm:$0xf0] }
  0x15   :  { %v1620_v2 = vor.u32 %v1319_v0, %v1167_v1  ;;  %v1626_v7 = vor.u32 %v1316_v4, %v1155_v6  ;;  %v1313_v8 = vld [vmem:[#allocation4 + $0x4] sm:$0xf]  ;;  %v1143_v9 = vld [vmem:[#allocation4 + $0xc] sm:$0xf0]  ;;  %v1673_v44 = vld [vmem:[%s1942_s2] ss:$0 sm:$0xff] }
  0x16   :  { %241 = vmatpush.bf16.msra.mxu2 %v1559_v27  ;;  %436 = vmatpush.bf16.msra.mxu0 %v1559_v27  ;;  %v1632_v11 = vor.u32 %v1313_v8, %v1143_v9  ;;  %v78_v12 = vld [vmem:[%s1940_s0] sm:$0xff]  ;;  %v79_v55 = vld [vmem:[%s1940_s0 + $0x8] sm:$0xf] }
  0x17   :  { %v80_v14 = vunpack.c.l.bf16 %v78_v12  ;;  %v81_v30 = vunpack.c.h.bf16 %v78_v12  ;;  %v82_v58 = vunpack.c.l.bf16 %v79_v55 }
  0x18   :  { %216 = vmatpush.bf16.msra.mxu1 %v1556_v25  ;;  %313 = vmatpush.bf16.msra.mxu3 %v1556_v25 }
  0x1a   :  { %242 = vmatpush.bf16.msra.mxu2 %v1567_v33  ;;  %437 = vmatpush.bf16.msra.mxu0 %v1567_v33 }
  0x1c   :  { %217 = vmatpush.bf16.msra.mxu1 %v1564_v31  ;;  %314 = vmatpush.bf16.msra.mxu3 %v1564_v31 }
  0x1e   :  { %243 = vmatpush.bf16.msra.mxu2 %v1575_v39  ;;  %438 = vmatpush.bf16.msra.mxu0 %v1575_v39 }
  0x20   :  { %218 = vmatpush.bf16.msra.mxu1 %v1572_v37  ;;  %315 = vmatpush.bf16.msra.mxu3 %v1572_v37 }
  0x22   :  { %244 = vmatpush.bf16.msra.mxu2 %v1583_v46  ;;  %439 = vmatpush.bf16.msra.mxu0 %v1583_v46 }
  0x24   :  { %219 = vmatpush.bf16.msra.mxu1 %v1580_v45  ;;  %316 = vmatpush.bf16.msra.mxu3 %v1580_v45 }
  0x26   :  { %245 = vmatpush.bf16.msra.mxu2 %v1591_v52  ;;  %440 = vmatpush.bf16.msra.mxu0 %v1591_v52 }
  0x27   :  { %220 = vmatmul.bf16.vlgmr.msra.gmra.mxu1 %v1497_v56 }
  0x28   :  { %225 = vmatpush.bf16.msrb.mxu1 %v1585_v47  ;;  %420 = vmatpush.bf16.msrb.mxu3 %v1585_v47 }
  0x29   :  { %246 = vmatmul.bf16.vlgmr.msra.gmra.mxu2 %v1497_v56 }
  0x2a   :  { %322 = vmatpush.bf16.msrb.mxu2 %v1585_v47  ;;  %603 = vmatpush.bf16.msrb.mxu0 %v1531_v3 }
  0x2c   :  { %226 = vmatpush.bf16.msrb.mxu1 %v1594_v53  ;;  %421 = vmatpush.bf16.msrb.mxu3 %v1594_v53 }
  0x2e   :  { %323 = vmatpush.bf16.msrb.mxu2 %v1594_v53  ;;  %604 = vmatpush.bf16.msrb.mxu0 %v1534_v5 }
  0x30   :  { %227 = vmatpush.bf16.msrb.mxu1 %v1601_v57  ;;  %422 = vmatpush.bf16.msrb.mxu3 %v1601_v57 }
  0x32   :  { %324 = vmatpush.bf16.msrb.mxu2 %v1601_v57  ;;  %605 = vmatpush.bf16.msrb.mxu0 %v1540_v13 }
  0x34   :  { %228 = vmatpush.bf16.msrb.mxu1 %v1608_v60  ;;  %423 = vmatpush.bf16.msrb.mxu3 %v1608_v60 }
  0x36   :  { %325 = vmatpush.bf16.msrb.mxu2 %v1608_v60  ;;  %606 = vmatpush.bf16.msrb.mxu0 %v1548_v19 }
  0x38   :  { %229 = vmatpush.bf16.msrb.mxu1 %v1614_v63  ;;  %424 = vmatpush.bf16.msrb.mxu3 %v1614_v63 }
  0x3a   :  { %326 = vmatpush.bf16.msrb.mxu2 %v1614_v63  ;;  %607 = vmatpush.bf16.msrb.mxu0 %v1556_v25 }
  0x3c   :  { %230 = vmatpush.bf16.msrb.mxu1 %v1620_v2  ;;  %425 = vmatpush.bf16.msrb.mxu3 %v1620_v2 }
  0x3e   :  { %327 = vmatpush.bf16.msrb.mxu2 %v1620_v2  ;;  %608 = vmatpush.bf16.msrb.mxu0 %v1564_v31 }
  0x40   :  { %231 = vmatpush.bf16.msrb.mxu1 %v1626_v7  ;;  %426 = vmatpush.bf16.msrb.mxu3 %v1626_v7 }
  0x42   :  { %328 = vmatpush.bf16.msrb.mxu2 %v1626_v7  ;;  %609 = vmatpush.bf16.msrb.mxu0 %v1572_v37 }
  0x44   :  { %232 = vmatpush.bf16.msrb.mxu1 %v1632_v11  ;;  %427 = vmatpush.bf16.msrb.mxu3 %v1632_v11 }
  0x46   :  { %329 = vmatpush.bf16.msrb.mxu2 %v1632_v11  ;;  %610 = vmatpush.bf16.msrb.mxu0 %v1580_v45 }
  0x47   :  { %233 = vmatmul.bf16.vlgmr.msrb.gmra.mxu1 %v1497_v56 }
  0x48   :  { %335 = vmatpush.bf16.msra.mxu1 %v1537_v10 }
  0x4a   :  { %407 = vmatpush.bf16.msra.mxu2 %v1531_v3 }
  0x4c   :  { %336 = vmatpush.bf16.msra.mxu1 %v1543_v15 }
  0x4e   :  { %408 = vmatpush.bf16.msra.mxu2 %v1534_v5 }
  0x50   :  { %337 = vmatpush.bf16.msra.mxu1 %v1551_v21 }
  0x52   :  { %409 = vmatpush.bf16.msra.mxu2 %v1540_v13 }
  0x54   :  { %338 = vmatpush.bf16.msra.mxu1 %v1559_v27 }
  0x56   :  { %410 = vmatpush.bf16.msra.mxu2 %v1548_v19 }
  0x58   :  { %339 = vmatpush.bf16.msra.mxu1 %v1567_v33 }
  0x5a   :  { %411 = vmatpush.bf16.msra.mxu2 %v1556_v25 }
  0x5c   :  { %340 = vmatpush.bf16.msra.mxu1 %v1575_v39 }
  0x5e   :  { %412 = vmatpush.bf16.msra.mxu2 %v1564_v31 }
  0x60   :  { %341 = vmatpush.bf16.msra.mxu1 %v1583_v46 }
  0x62   :  { %413 = vmatpush.bf16.msra.mxu2 %v1572_v37 }
  0x64   :  { %342 = vmatpush.bf16.msra.mxu1 %v1591_v52 }
  0x66   :  { %414 = vmatpush.bf16.msra.mxu2 %v1580_v45 }
  0x68   :  { %505 = vmatpush.bf16.msrb.mxu1 %v1531_v3 }
  0x6c   :  { %506 = vmatpush.bf16.msrb.mxu1 %v1534_v5 }
  0x70   :  { %507 = vmatpush.bf16.msrb.mxu1 %v1540_v13 }
  0x74   :  { %508 = vmatpush.bf16.msrb.mxu1 %v1548_v19 }
  0x78   :  { %509 = vmatpush.bf16.msrb.mxu1 %v1556_v25 }
  0x7c   :  { %510 = vmatpush.bf16.msrb.mxu1 %v1564_v31 }
  0x80   :  { %511 = vmatpush.bf16.msrb.mxu1 %v1572_v37 }
  0x84   :  { %512 = vmatpush.bf16.msrb.mxu1 %v1580_v45 }
  0xa4   :  { %v221_v16 = vpop.f32.mrf.mxu1 }
  0xa5   :  { %v251_v17 = vadd.f32 %v221_v16, %v80_v14 }
  0xa7   :  { %v1235_v18 = vmul.f32 -1.442695, %v251_v17 }
  0xa9   :  { %1355 = vpow2.f32 %v1235_v18 }
  0xac   :  { %v223_v20 = vpop.f32.mrf.mxu1  ;;  %v247_v22 = vpop.f32.mrf.mxu2 }
  0xad   :  { %v291_v54 = vadd.f32 %v1673_v44, %v247_v22 }
  0xaf   :  { %v1356_v23 = vpop.eup %1355 }
  0xb0   :  { %v255_v24 = vadd.f32 1.0, %v1356_v23 }
  0xb2   :  { %1357 = vrcp.f32 %v255_v24  ;;  %vm261_vm0 = vweird.f32 %v255_v24  ;;  %v267_v40 = vand.u32 2147483648, %v255_v24  ;;  %v265_v42 = vand.u32 2147483647, %v255_v24 }
  0xb4   :  { %v249_v26 = vpop.f32.mrf.mxu2  ;;  %v268_v49 = vor.u32 1.1754944e-38, %v267_v40  ;;  %vm266_vm3 = vcmp.eq.f32.partialorder %v265_v42, 8.507059e+37 }
  0xb8   :  { %v1358_v28 = vpop.eup %1357 }
  0xb9   :  { %v257_v29 = vmul.f32 %v1358_v28, %v255_v24  ;;  %vm262_vm1 = vweird.f32 %v1358_v28 }
  0xba   :  { %vm263_vm2 = vmor %vm261_vm0, %vm262_vm1 }
  0xbb   :  { %v258_v32 = vsub.f32 1.0, %v257_v29  ;;  %v1237_v29 = vld [vmem:[%s1940_s0 + $0xc] sm:$0xff] }
  0xbd   :  { %v259_v38 = vmul.f32 %v1358_v28, %v258_v32  ;;  %v305_v32 = vunpack.c.l.bf16 %v1237_v29 }
  0xbf   :  { %v260_v41 = vadd.f32 %v1358_v28, %v259_v38 }
  0xc1   :  { %v264_v50 = vsel %vm263_vm2, %v1358_v28, %v260_v41 }
  0xc2   :  { %v269_v56 = vsel %vm266_vm3, %v268_v49, %v264_v50 }
  0xc3   :  { %v292_v59 = vmul.f32 %v291_v54, %v269_v56 }
  0xc4   :  { %v234_v34 = vpop.f32.mrf.mxu1 }
  0xc5   :  { %v271_v35 = vadd.f32 %v234_v34, %v81_v30  ;;  %v293_v0 = vadd.f32 %v292_v59, %v82_v58  ;;  %v306_v34 = vunpack.c.h.bf16 %v1237_v29 }
  0xc7   :  { %v1236_v36 = vmul.f32 -1.442695, %v271_v35 }
  0xc9   :  { %1359 = vpow2.f32 %v1236_v36 }
  0xcc   :  { %v236_v43 = vpop.f32.mrf.mxu1 }
  0xcf   :  { %v1360_v48 = vpop.eup %1359 }
  0xd0   :  { %v275_v51 = vadd.f32 1.0, %v1360_v48 }
  0xd2   :  { %1361 = vrcp.f32 %v275_v51  ;;  %v287_v4 = vand.u32 2147483648, %v275_v51  ;;  %v285_v8 = vand.u32 2147483647, %v275_v51  ;;  %vm281_vm5 = vweird.f32 %v275_v51 }
  0xd3   :  { %1363 = vtanh.f32 %v293_v0 }
  0xd4   :  { %v288_v12 = vor.u32 1.1754944e-38, %v287_v4  ;;  %vm286_vm7 = vcmp.eq.f32.partialorder %v285_v8, 8.507059e+37 }
  0xd8   :  { %v1362_v61 = vpop.eup %1361 }
  0xd9   :  { %v277_v62 = vmul.f32 %v1362_v61, %v275_v51  ;;  %vm282_vm4 = vweird.f32 %v1362_v61  ;;  %v1364_v18 = vpop.eup %1363 }
  0xda   :  { %vm283_vm6 = vmor %vm281_vm5, %vm282_vm4 }
  0xdb   :  { %v278_v1 = vsub.f32 1.0, %v277_v62 }
  0xdd   :  { %v279_v6 = vmul.f32 %v1362_v61, %v278_v1 }
  0xdf   :  { %v280_v9 = vadd.f32 %v1362_v61, %v279_v6 }
  0xe1   :  { %v284_v14 = vsel %vm283_vm6, %v1362_v61, %v280_v9  ;;  %v1238_v9 = vld [vmem:[%s1940_s0 + $0x14] sm:$0xf] }
  0xe2   :  { %v289_v16 = vsel %vm286_vm7, %v288_v12, %v284_v14 }
  0xe3   :  { %v295_v17 = vsub.f32 1.0, %v289_v16  ;;  %v297_v22 = vmul.f32 0.0, %v289_v16 }
  0xe5   :  { %v296_v20 = vmul.f32 %v1364_v18, %v295_v17  ;;  %v307_v18 = vunpack.c.l.bf16 %v1238_v9 }
  0xe7   :  { %v1679_v23 = vadd.f32 %v297_v22, %v296_v20 }
  0xe9   :  { %1365 = vtanh.f32 %v1679_v23  ;;  %v308_v24 = vpack.c.bf16 %v1679_v23, %v1679_v23 }
  0xeb   :  { %317 = vmatmul.bf16.vlgmr.msra.gmra.mxu3 %v308_v24  ;;  %330 = vmatmul.bf16.vlgmr.msrb.gmra.mxu2 %v308_v24 }
  0xec   :  { %343 = vmatmul.bf16.vlgmr.msra.gmra.mxu1 %v308_v24  ;;  %518 = vmatpush.bf16.msrb.mxu2 %v1585_v47 }
  0xed   :  { %531 = vmatpush.bf16.msra.mxu3 %v1537_v10  ;;  %616 = vmatpush.bf16.msra.mxu1 %v1585_v47 }
  0xef   :  { %v1366_v26 = vpop.eup %1365 }
  0xf0   :  { %v300_v28 = vpack.c.bf16 %v1366_v26, %v1366_v26  ;;  %519 = vmatpush.bf16.msrb.mxu2 %v1594_v53 }
  0xf1   :  { %532 = vmatpush.bf16.msra.mxu3 %v1543_v15  ;;  %617 = vmatpush.bf16.msra.mxu1 %v1594_v53 }
  0xf2   :  { %301 = vst [vmem:[#allocation3] sm:$0xf] %v300_v28 }
  0xf4   :  { %520 = vmatpush.bf16.msrb.mxu2 %v1601_v57 }
  0xf5   :  { %533 = vmatpush.bf16.msra.mxu3 %v1551_v21  ;;  %618 = vmatpush.bf16.msra.mxu1 %v1601_v57 }
  0xf8   :  { %521 = vmatpush.bf16.msrb.mxu2 %v1608_v60 }
  0xf9   :  { %534 = vmatpush.bf16.msra.mxu3 %v1559_v27  ;;  %619 = vmatpush.bf16.msra.mxu1 %v1608_v60 }
  0xfc   :  { %522 = vmatpush.bf16.msrb.mxu2 %v1614_v63 }
  0xfd   :  { %535 = vmatpush.bf16.msra.mxu3 %v1567_v33  ;;  %620 = vmatpush.bf16.msra.mxu1 %v1614_v63 }
 0x100   :  { %523 = vmatpush.bf16.msrb.mxu2 %v1620_v2 }
 0x101   :  { %536 = vmatpush.bf16.msra.mxu3 %v1575_v39  ;;  %621 = vmatpush.bf16.msra.mxu1 %v1620_v2 }
 0x104   :  { %524 = vmatpush.bf16.msrb.mxu2 %v1626_v7 }
 0x105   :  { %537 = vmatpush.bf16.msra.mxu3 %v1583_v46  ;;  %622 = vmatpush.bf16.msra.mxu1 %v1626_v7 }
 0x108   :  { %525 = vmatpush.bf16.msrb.mxu2 %v1632_v11 }
 0x109   :  { %538 = vmatpush.bf16.msra.mxu3 %v1591_v52  ;;  %623 = vmatpush.bf16.msra.mxu1 %v1632_v11 }
 0x169   :  { %v344_v30 = vpop.f32.mrf.mxu1 }
 0x16a   :  { %v388_v16 = vadd.f32 %v1673_v44, %v344_v30 }
 0x16e   :  { %v318_v35 = vpop.f32.mrf.mxu3  ;;  %v331_v36 = vpop.f32.mrf.mxu2 }
 0x16f   :  { %v348_v38 = vadd.f32 %v318_v35, %v305_v32  ;;  %v368_v40 = vadd.f32 %v331_v36, %v306_v34 }
 0x171   :  { %v1239_v41 = vmul.f32 -1.442695, %v348_v38  ;;  %v1240_v42 = vmul.f32 -1.442695, %v368_v40  ;;  %v346_v43 = vpop.f32.mrf.mxu1 }
 0x173   :  { %1367 = vpow2.f32 %v1239_v41 }
 0x174   :  { %1369 = vpow2.f32 %v1240_v42 }
 0x176   :  { %v320_v48 = vpop.f32.mrf.mxu3  ;;  %v333_v49 = vpop.f32.mrf.mxu2 }
 0x179   :  { %v1368_v50 = vpop.eup %1367 }
 0x17a   :  { %v1370_v51 = vpop.eup %1369  ;;  %v352_v54 = vadd.f32 1.0, %v1368_v50 }
 0x17b   :  { %v372_v55 = vadd.f32 1.0, %v1370_v51 }
 0x17c   :  { %1371 = vrcp.f32 %v352_v54  ;;  %v364_v0 = vand.u32 2147483648, %v352_v54  ;;  %v362_v6 = vand.u32 2147483647, %v352_v54  ;;  %vm358_vm9 = vweird.f32 %v352_v54 }
 0x17d   :  { %1373 = vrcp.f32 %v372_v55  ;;  %v384_v26 = vand.u32 2147483648, %v372_v55  ;;  %vm378_vm13 = vweird.f32 %v372_v55  ;;  %v382_v28 = vand.u32 2147483647, %v372_v55 }
 0x17e   :  { %v365_v14 = vor.u32 1.1754944e-38, %v364_v0  ;;  %vm363_vm11 = vcmp.eq.f32.partialorder %v362_v6, 8.507059e+37 }
 0x17f   :  { %v385_v34 = vor.u32 1.1754944e-38, %v384_v26  ;;  %vm383_vm15 = vcmp.eq.f32.partialorder %v382_v28, 8.507059e+37 }
 0x182   :  { %v1372_v56 = vpop.eup %1371 }
 0x183   :  { %v1374_v58 = vpop.eup %1373  ;;  %v354_v59 = vmul.f32 %v1372_v56, %v352_v54  ;;  %vm359_vm8 = vweird.f32 %v1372_v56 }
 0x184   :  { %v374_v61 = vmul.f32 %v1374_v58, %v372_v55  ;;  %vm360_vm10 = vmor %vm358_vm9, %vm359_vm8  ;;  %vm379_vm12 = vweird.f32 %v1374_v58 }
 0x185   :  { %v355_v62 = vsub.f32 1.0, %v354_v59  ;;  %vm380_vm14 = vmor %vm378_vm13, %vm379_vm12 }
 0x186   :  { %v375_v1 = vsub.f32 1.0, %v374_v61 }
 0x187   :  { %v356_v4 = vmul.f32 %v1372_v56, %v355_v62 }
 0x188   :  { %v376_v8 = vmul.f32 %v1374_v58, %v375_v1 }
 0x189   :  { %v357_v12 = vadd.f32 %v1372_v56, %v356_v4 }
 0x18a   :  { %v377_v22 = vadd.f32 %v1374_v58, %v376_v8 }
 0x18b   :  { %v361_v17 = vsel %vm360_vm10, %v1372_v56, %v357_v12 }
 0x18c   :  { %v366_v20 = vsel %vm363_vm11, %v365_v14, %v361_v17  ;;  %v381_v32 = vsel %vm380_vm14, %v1374_v58, %v377_v22 }
 0x18d   :  { %v389_v24 = vmul.f32 %v388_v16, %v366_v20  ;;  %v386_v35 = vsel %vm383_vm15, %v385_v34, %v381_v32 }
 0x18e   :  { %v392_v36 = vsub.f32 1.0, %v386_v35  ;;  %v394_v40 = vmul.f32 %v386_v35, %v1679_v23  ;;  %v1241_v23 = vld [vmem:[%s1940_s0 + $0x18] sm:$0xff] }
 0x18f   :  { %v390_v29 = vadd.f32 %v389_v24, %v307_v18  ;;  %v403_v50 = vunpack.c.l.bf16 %v1241_v23  ;;  %v404_v51 = vunpack.c.h.bf16 %v1241_v23 }
 0x191   :  { %1375 = vtanh.f32 %v390_v29  ;;  %v1242_v29 = vld [vmem:[%s1940_s0 + $0x20] sm:$0xf] }
 0x197   :  { %v1376_v38 = vpop.eup %1375 }
 0x198   :  { %v393_v30 = vmul.f32 %v1376_v38, %v392_v36  ;;  %v405_v38 = vunpack.c.l.bf16 %v1242_v29 }
 0x19a   :  { %v1716_v41 = vadd.f32 %v394_v40, %v393_v30 }
 0x19c   :  { %1377 = vtanh.f32 %v1716_v41  ;;  %v406_v42 = vpack.c.bf16 %v1716_v41, %v1716_v41 }
 0x19e   :  { %415 = vmatmul.bf16.vlgmr.msra.gmra.mxu2 %v406_v42  ;;  %428 = vmatmul.bf16.vlgmr.msrb.gmra.mxu3 %v406_v42 }
 0x19f   :  { %441 = vmatmul.bf16.vlgmr.msra.gmra.mxu0 %v406_v42  ;;  %629 = vmatpush.bf16.msra.mxu2 %v1537_v10 }
 0x1a0   :  { %701 = vmatpush.bf16.msrb.mxu3 %v1531_v3  ;;  %714 = vmatpush.bf16.msra.mxu0 %v1585_v47 }
 0x1a2   :  { %v1378_v43 = vpop.eup %1377 }
 0x1a3   :  { %v397_v48 = vpack.c.bf16 %v1378_v43, %v1378_v43  ;;  %630 = vmatpush.bf16.msra.mxu2 %v1543_v15 }
 0x1a4   :  { %702 = vmatpush.bf16.msrb.mxu3 %v1534_v5  ;;  %715 = vmatpush.bf16.msra.mxu0 %v1594_v53 }
 0x1a5   :  { %399 = vst [vmem:[#allocation3 + $0x4] sm:$0xf] %v397_v48 }
 0x1a7   :  { %631 = vmatpush.bf16.msra.mxu2 %v1551_v21 }
 0x1a8   :  { %703 = vmatpush.bf16.msrb.mxu3 %v1540_v13  ;;  %716 = vmatpush.bf16.msra.mxu0 %v1601_v57 }
 0x1ab   :  { %632 = vmatpush.bf16.msra.mxu2 %v1559_v27 }
 0x1ac   :  { %704 = vmatpush.bf16.msrb.mxu3 %v1548_v19  ;;  %717 = vmatpush.bf16.msra.mxu0 %v1608_v60 }
 0x1af   :  { %633 = vmatpush.bf16.msra.mxu2 %v1567_v33 }
 0x1b0   :  { %705 = vmatpush.bf16.msrb.mxu3 %v1556_v25  ;;  %718 = vmatpush.bf16.msra.mxu0 %v1614_v63 }
 0x1b3   :  { %634 = vmatpush.bf16.msra.mxu2 %v1575_v39 }
 0x1b4   :  { %706 = vmatpush.bf16.msrb.mxu3 %v1564_v31  ;;  %719 = vmatpush.bf16.msra.mxu0 %v1620_v2 }
 0x1b7   :  { %635 = vmatpush.bf16.msra.mxu2 %v1583_v46 }
 0x1b8   :  { %707 = vmatpush.bf16.msrb.mxu3 %v1572_v37  ;;  %720 = vmatpush.bf16.msra.mxu0 %v1626_v7 }
 0x1bb   :  { %636 = vmatpush.bf16.msra.mxu2 %v1591_v52 }
 0x1bc   :  { %708 = vmatpush.bf16.msrb.mxu3 %v1580_v45  ;;  %721 = vmatpush.bf16.msra.mxu0 %v1632_v11 }
 0x21c   :  { %v442_v49 = vpop.f32.mrf.mxu0 }
 0x21d   :  { %v486_v35 = vadd.f32 %v1673_v44, %v442_v49 }
 0x221   :  { %v416_v54 = vpop.f32.mrf.mxu2  ;;  %v429_v55 = vpop.f32.mrf.mxu3 }
 0x222   :  { %v446_v56 = vadd.f32 %v416_v54, %v403_v50  ;;  %v466_v58 = vadd.f32 %v429_v55, %v404_v51 }
 0x224   :  { %v1243_v59 = vmul.f32 -1.442695, %v446_v56  ;;  %v1244_v61 = vmul.f32 -1.442695, %v466_v58  ;;  %v444_v62 = vpop.f32.mrf.mxu0 }
 0x226   :  { %1379 = vpow2.f32 %v1243_v59 }
 0x227   :  { %1381 = vpow2.f32 %v1244_v61 }
 0x229   :  { %v418_v0 = vpop.f32.mrf.mxu2  ;;  %v431_v1 = vpop.f32.mrf.mxu3 }
 0x22c   :  { %v1380_v4 = vpop.eup %1379 }
 0x22d   :  { %v1382_v6 = vpop.eup %1381  ;;  %v450_v8 = vadd.f32 1.0, %v1380_v4 }
 0x22e   :  { %v470_v9 = vadd.f32 1.0, %v1382_v6 }
 0x22f   :  { %1383 = vrcp.f32 %v450_v8  ;;  %v462_v20 = vand.u32 2147483648, %v450_v8  ;;  %v460_v26 = vand.u32 2147483647, %v450_v8  ;;  %vm456_vm1 = vweird.f32 %v450_v8 }
 0x230   :  { %1385 = vrcp.f32 %v470_v9  ;;  %v482_v43 = vand.u32 2147483648, %v470_v9  ;;  %vm476_vm5 = vweird.f32 %v470_v9  ;;  %v480_v48 = vand.u32 2147483647, %v470_v9 }
 0x231   :  { %v463_v34 = vor.u32 1.1754944e-38, %v462_v20  ;;  %vm461_vm3 = vcmp.eq.f32.partialorder %v460_v26, 8.507059e+37 }
 0x232   :  { %v483_v51 = vor.u32 1.1754944e-38, %v482_v43  ;;  %vm481_vm7 = vcmp.eq.f32.partialorder %v480_v48, 8.507059e+37 }
 0x235   :  { %v1384_v12 = vpop.eup %1383 }
 0x236   :  { %v1386_v14 = vpop.eup %1385  ;;  %v452_v16 = vmul.f32 %v1384_v12, %v450_v8  ;;  %vm457_vm0 = vweird.f32 %v1384_v12 }
 0x237   :  { %v472_v17 = vmul.f32 %v1386_v14, %v470_v9  ;;  %vm458_vm2 = vmor %vm456_vm1, %vm457_vm0  ;;  %vm477_vm4 = vweird.f32 %v1386_v14 }
 0x238   :  { %v453_v18 = vsub.f32 1.0, %v452_v16  ;;  %vm478_vm6 = vmor %vm476_vm5, %vm477_vm4 }
 0x239   :  { %v473_v22 = vsub.f32 1.0, %v472_v17 }
 0x23a   :  { %v454_v24 = vmul.f32 %v1384_v12, %v453_v18 }
 0x23b   :  { %v474_v28 = vmul.f32 %v1386_v14, %v473_v22 }
 0x23c   :  { %v455_v32 = vadd.f32 %v1384_v12, %v454_v24 }
 0x23d   :  { %v475_v40 = vadd.f32 %v1386_v14, %v474_v28 }
 0x23e   :  { %v459_v36 = vsel %vm458_vm2, %v1384_v12, %v455_v32 }
 0x23f   :  { %v464_v30 = vsel %vm461_vm3, %v463_v34, %v459_v36  ;;  %v479_v50 = vsel %vm478_vm6, %v1386_v14, %v475_v40 }
 0x240   :  { %v487_v42 = vmul.f32 %v486_v35, %v464_v30  ;;  %v484_v54 = vsel %vm481_vm7, %v483_v51, %v479_v50 }
 0x241   :  { %v490_v55 = vsub.f32 1.0, %v484_v54  ;;  %v492_v58 = vmul.f32 %v484_v54, %v1716_v41  ;;  %v1245_v41 = vld [vmem:[%s1940_s0 + $0x24] sm:$0xff] }
 0x242   :  { %v488_v23 = vadd.f32 %v487_v42, %v405_v38  ;;  %v501_v1 = vunpack.c.l.bf16 %v1245_v41  ;;  %v502_v9 = vunpack.c.h.bf16 %v1245_v41  ;;  %v1246_v38 = vld [vmem:[%s1940_s0 + $0x2c] sm:$0xf] }
 0x244   :  { %1387 = vtanh.f32 %v488_v23  ;;  %v503_v23 = vunpack.c.l.bf16 %v1246_v38 }
 0x24a   :  { %v1388_v56 = vpop.eup %1387 }
 0x24b   :  { %v491_v49 = vmul.f32 %v1388_v56, %v490_v55 }
 0x24d   :  { %v1753_v59 = vadd.f32 %v492_v58, %v491_v49 }
 0x24f   :  { %1389 = vtanh.f32 %v1753_v59  ;;  %v504_v61 = vpack.c.bf16 %v1753_v59, %v1753_v59 }
 0x251   :  { %513 = vmatmul.bf16.vlgmr.msrb.gmra.mxu1 %v504_v61  ;;  %526 = vmatmul.bf16.vlgmr.msrb.gmra.mxu2 %v504_v61 }
 0x252   :  { %539 = vmatmul.bf16.vlgmr.msra.gmra.mxu3 %v504_v61  ;;  %727 = vmatpush.bf16.msrb.mxu1 %v1537_v10 }
 0x253   :  { %799 = vmatpush.bf16.msrb.mxu2 %v1531_v3  ;;  %812 = vmatpush.bf16.msra.mxu3 %v1585_v47 }
 0x255   :  { %v1390_v62 = vpop.eup %1389 }
 0x256   :  { %v495_v0 = vpack.c.bf16 %v1390_v62, %v1390_v62  ;;  %728 = vmatpush.bf16.msrb.mxu1 %v1543_v15 }
 0x257   :  { %800 = vmatpush.bf16.msrb.mxu2 %v1534_v5  ;;  %813 = vmatpush.bf16.msra.mxu3 %v1594_v53 }
 0x258   :  { %497 = vst [vmem:[#allocation3 + $0x8] sm:$0xf] %v495_v0 }
 0x25a   :  { %729 = vmatpush.bf16.msrb.mxu1 %v1551_v21 }
 0x25b   :  { %801 = vmatpush.bf16.msrb.mxu2 %v1540_v13  ;;  %814 = vmatpush.bf16.msra.mxu3 %v1601_v57 }
 0x25e   :  { %730 = vmatpush.bf16.msrb.mxu1 %v1559_v27 }
 0x25f   :  { %802 = vmatpush.bf16.msrb.mxu2 %v1548_v19  ;;  %815 = vmatpush.bf16.msra.mxu3 %v1608_v60 }
 0x262   :  { %731 = vmatpush.bf16.msrb.mxu1 %v1567_v33 }
 0x263   :  { %803 = vmatpush.bf16.msrb.mxu2 %v1556_v25  ;;  %816 = vmatpush.bf16.msra.mxu3 %v1614_v63 }
 0x266   :  { %732 = vmatpush.bf16.msrb.mxu1 %v1575_v39 }
 0x267   :  { %804 = vmatpush.bf16.msrb.mxu2 %v1564_v31  ;;  %817 = vmatpush.bf16.msra.mxu3 %v1620_v2 }
 0x26a   :  { %733 = vmatpush.bf16.msrb.mxu1 %v1583_v46 }
 0x26b   :  { %805 = vmatpush.bf16.msrb.mxu2 %v1572_v37  ;;  %818 = vmatpush.bf16.msra.mxu3 %v1626_v7 }
 0x26e   :  { %734 = vmatpush.bf16.msrb.mxu1 %v1591_v52 }
 0x26f   :  { %806 = vmatpush.bf16.msrb.mxu2 %v1580_v45  ;;  %819 = vmatpush.bf16.msra.mxu3 %v1632_v11 }
 0x2ce   :  { %v514_v4 = vpop.f32.mrf.mxu1 }
 0x2cf   :  { %v544_v6 = vadd.f32 %v514_v4, %v501_v1 }
 0x2d1   :  { %v1247_v8 = vmul.f32 -1.442695, %v544_v6 }
 0x2d3   :  { %1391 = vpow2.f32 %v1247_v8 }
 0x2d4   :  { %v527_v12 = vpop.f32.mrf.mxu2 }
 0x2d5   :  { %v564_v14 = vadd.f32 %v527_v12, %v502_v9  ;;  %v540_v16 = vpop.f32.mrf.mxu3 }
 0x2d6   :  { %v516_v17 = vpop.f32.mrf.mxu1  ;;  %v584_v55 = vadd.f32 %v1673_v44, %v540_v16 }
 0x2d7   :  { %v1248_v18 = vmul.f32 -1.442695, %v564_v14 }
 0x2d9   :  { %v1392_v20 = vpop.eup %1391  ;;  %1393 = vpow2.f32 %v1248_v18 }
 0x2da   :  { %v548_v22 = vadd.f32 1.0, %v1392_v20 }
 0x2dc   :  { %1395 = vrcp.f32 %v548_v22  ;;  %v529_v24 = vpop.f32.mrf.mxu2  ;;  %v560_v36 = vand.u32 2147483648, %v548_v22  ;;  %v558_v40 = vand.u32 2147483647, %v548_v22  ;;  %vm554_vm9 = vweird.f32 %v548_v22 }
 0x2dd   :  { %v542_v26 = vpop.f32.mrf.mxu3 }
 0x2de   :  { %v561_v50 = vor.u32 1.1754944e-38, %v560_v36  ;;  %vm559_vm11 = vcmp.eq.f32.partialorder %v558_v40, 8.507059e+37 }
 0x2df   :  { %v1394_v28 = vpop.eup %1393 }
 0x2e0   :  { %v568_v29 = vadd.f32 1.0, %v1394_v28 }
 0x2e2   :  { %v1396_v32 = vpop.eup %1395  ;;  %1397 = vrcp.f32 %v568_v29  ;;  %v580_v58 = vand.u32 2147483648, %v568_v29  ;;  %v578_v62 = vand.u32 2147483647, %v568_v29  ;;  %vm574_vm13 = vweird.f32 %v568_v29 }
 0x2e3   :  { %v550_v34 = vmul.f32 %v1396_v32, %v548_v22  ;;  %vm555_vm8 = vweird.f32 %v1396_v32 }
 0x2e4   :  { %vm556_vm10 = vmor %vm554_vm9, %vm555_vm8  ;;  %v581_v4 = vor.u32 1.1754944e-38, %v580_v58  ;;  %vm579_vm15 = vcmp.eq.f32.partialorder %v578_v62, 8.507059e+37 }
 0x2e5   :  { %v551_v35 = vsub.f32 1.0, %v550_v34 }
 0x2e7   :  { %v552_v30 = vmul.f32 %v1396_v32, %v551_v35 }
 0x2e8   :  { %v1398_v42 = vpop.eup %1397 }
 0x2e9   :  { %v570_v43 = vmul.f32 %v1398_v42, %v568_v29  ;;  %v553_v48 = vadd.f32 %v1396_v32, %v552_v30  ;;  %vm575_vm12 = vweird.f32 %v1398_v42  ;;  %v1250_v30 = vld [vmem:[%s1940_s0 + $0x38] sm:$0xf] }
 0x2ea   :  { %vm576_vm14 = vmor %vm574_vm13, %vm575_vm12 }
 0x2eb   :  { %v571_v51 = vsub.f32 1.0, %v570_v43  ;;  %v557_v54 = vsel %vm556_vm10, %v1396_v32, %v553_v48  ;;  %v601_v43 = vunpack.c.l.bf16 %v1250_v30 }
 0x2ec   :  { %v562_v56 = vsel %vm559_vm11, %v561_v50, %v557_v54 }
 0x2ed   :  { %v572_v49 = vmul.f32 %v1398_v42, %v571_v51  ;;  %v585_v61 = vmul.f32 %v584_v55, %v562_v56 }
 0x2ef   :  { %v586_v0 = vadd.f32 %v585_v61, %v503_v23  ;;  %v573_v41 = vadd.f32 %v1398_v42, %v572_v49 }
 0x2f1   :  { %1399 = vtanh.f32 %v586_v0  ;;  %v577_v1 = vsel %vm576_vm14, %v1398_v42, %v573_v41 }
 0x2f2   :  { %v582_v6 = vsel %vm579_vm15, %v581_v4, %v577_v1 }
 0x2f3   :  { %v588_v8 = vsub.f32 1.0, %v582_v6  ;;  %v590_v14 = vmul.f32 %v582_v6, %v1753_v59 }
 0x2f7   :  { %v1400_v9 = vpop.eup %1399 }
 0x2f8   :  { %v589_v12 = vmul.f32 %v1400_v9, %v588_v8 }
 0x2fa   :  { %v1790_v16 = vadd.f32 %v590_v14, %v589_v12 }
 0x2fc   :  { %1401 = vtanh.f32 %v1790_v16  ;;  %v602_v17 = vpack.c.bf16 %v1790_v16, %v1790_v16 }
 0x2fe   :  { %611 = vmatmul.bf16.vlgmr.msrb.gmra.mxu0 %v602_v17  ;;  %624 = vmatmul.bf16.vlgmr.msra.gmra.mxu1 %v602_v17 }
 0x2ff   :  { %637 = vmatmul.bf16.vlgmr.msra.gmra.mxu2 %v602_v17  ;;  %825 = vmatpush.bf16.msrb.mxu0 %v1537_v10 }
 0x300   :  { %897 = vmatpush.bf16.msra.mxu1 %v1531_v3  ;;  %910 = vmatpush.bf16.msra.mxu2 %v1585_v47  ;;  %v1249_v3 = vld [vmem:[%s1940_s0 + $0x30] sm:$0xff] }
 0x302   :  { %v1402_v18 = vpop.eup %1401 }
 0x303   :  { %v593_v20 = vpack.c.bf16 %v1402_v18, %v1402_v18  ;;  %826 = vmatpush.bf16.msrb.mxu0 %v1543_v15 }
 0x304   :  { %898 = vmatpush.bf16.msra.mxu1 %v1534_v5  ;;  %911 = vmatpush.bf16.msra.mxu2 %v1594_v53  ;;  %v599_v5 = vunpack.c.l.bf16 %v1249_v3 }
 0x305   :  { %595 = vst [vmem:[#allocation3 + $0xc] sm:$0xf] %v593_v20 }
 0x307   :  { %827 = vmatpush.bf16.msrb.mxu0 %v1551_v21 }
 0x308   :  { %899 = vmatpush.bf16.msra.mxu1 %v1540_v13  ;;  %912 = vmatpush.bf16.msra.mxu2 %v1601_v57  ;;  %v600_v13 = vunpack.c.h.bf16 %v1249_v3 }
 0x30b   :  { %828 = vmatpush.bf16.msrb.mxu0 %v1559_v27 }
 0x30c   :  { %900 = vmatpush.bf16.msra.mxu1 %v1548_v19  ;;  %913 = vmatpush.bf16.msra.mxu2 %v1608_v60 }
 0x30f   :  { %829 = vmatpush.bf16.msrb.mxu0 %v1567_v33 }
 0x310   :  { %901 = vmatpush.bf16.msra.mxu1 %v1556_v25  ;;  %914 = vmatpush.bf16.msra.mxu2 %v1614_v63 }
 0x313   :  { %830 = vmatpush.bf16.msrb.mxu0 %v1575_v39 }
 0x314   :  { %902 = vmatpush.bf16.msra.mxu1 %v1564_v31  ;;  %915 = vmatpush.bf16.msra.mxu2 %v1620_v2 }
 0x317   :  { %831 = vmatpush.bf16.msrb.mxu0 %v1583_v46 }
 0x318   :  { %903 = vmatpush.bf16.msra.mxu1 %v1572_v37  ;;  %916 = vmatpush.bf16.msra.mxu2 %v1626_v7 }
 0x31b   :  { %832 = vmatpush.bf16.msrb.mxu0 %v1591_v52 }
 0x31c   :  { %904 = vmatpush.bf16.msra.mxu1 %v1580_v45  ;;  %917 = vmatpush.bf16.msra.mxu2 %v1632_v11 }
 0x37b   :  { %v612_v19 = vpop.f32.mrf.mxu0  ;;  %v625_v25 = vpop.f32.mrf.mxu1 }
 0x37c   :  { %v642_v31 = vadd.f32 %v612_v19, %v599_v5  ;;  %v662_v47 = vadd.f32 %v625_v25, %v600_v13  ;;  %v1346_v13 = vld [vmem:[%s1943_s3 + $0x28] sm:$0xff] }
 0x37e   :  { %v1251_v53 = vmul.f32 -1.442695, %v642_v31  ;;  %v1252_v37 = vmul.f32 -1.442695, %v662_v47  ;;  %v1345_v31 = vld [vmem:[%s1943_s3 + $0x20] sm:$0xff] }
 0x380   :  { %1403 = vpow2.f32 %v1251_v53 }
 0x381   :  { %1405 = vpow2.f32 %v1252_v37 }
 0x382   :  { %v638_v57 = vpop.f32.mrf.mxu2 }
 0x383   :  { %v614_v60 = vpop.f32.mrf.mxu0  ;;  %v627_v63 = vpop.f32.mrf.mxu1  ;;  %v682_v23 = vadd.f32 %v1673_v44, %v638_v57  ;;  %v1344_v57 = vld [vmem:[%s1943_s3 + $0x18] sm:$0xff] }
 0x386   :  { %v1404_v45 = vpop.eup %1403 }
 0x387   :  { %v1406_v2 = vpop.eup %1405  ;;  %v646_v7 = vadd.f32 1.0, %v1404_v45  ;;  %v1343_v45 = vld [vmem:[%s1943_s3 + $0x10] sm:$0xff] }
 0x388   :  { %v666_v11 = vadd.f32 1.0, %v1406_v2 }
 0x389   :  { %1407 = vrcp.f32 %v646_v7  ;;  %v658_v34 = vand.u32 2147483648, %v646_v7  ;;  %v656_v36 = vand.u32 2147483647, %v646_v7  ;;  %vm652_vm1 = vweird.f32 %v646_v7 }
 0x38a   :  { %1409 = vrcp.f32 %v666_v11  ;;  %v640_v59 = vpop.f32.mrf.mxu2  ;;  %v678_v54 = vand.u32 2147483648, %v666_v11  ;;  %vm672_vm5 = vweird.f32 %v666_v11  ;;  %v676_v56 = vand.u32 2147483647, %v666_v11 }
 0x38b   :  { %v659_v42 = vor.u32 1.1754944e-38, %v658_v34  ;;  %vm657_vm3 = vcmp.eq.f32.partialorder %v656_v36, 8.507059e+37  ;;  %v1342_v59 = vld [vmem:[%s1943_s3 + $0x8] sm:$0xff] }
 0x38c   :  { %v679_v61 = vor.u32 1.1754944e-38, %v678_v54  ;;  %vm677_vm7 = vcmp.eq.f32.partialorder %v676_v56, 8.507059e+37 }
 0x38f   :  { %v1408_v22 = vpop.eup %1407 }
 0x390   :  { %v1410_v24 = vpop.eup %1409  ;;  %v648_v26 = vmul.f32 %v1408_v22, %v646_v7  ;;  %vm653_vm0 = vweird.f32 %v1408_v22 }
 0x391   :  { %v668_v28 = vmul.f32 %v1410_v24, %v666_v11  ;;  %vm654_vm2 = vmor %vm652_vm1, %vm653_vm0  ;;  %vm673_vm4 = vweird.f32 %v1410_v24 }
 0x392   :  { %v649_v29 = vsub.f32 1.0, %v648_v26  ;;  %vm674_vm6 = vmor %vm672_vm5, %vm673_vm4 }
 0x393   :  { %v669_v32 = vsub.f32 1.0, %v668_v28 }
 0x394   :  { %v650_v35 = vmul.f32 %v1408_v22, %v649_v29  ;;  %v1254_v29 = vld [vmem:[%s1940_s0 + $0x44] sm:$0xf] }
 0x395   :  { %v670_v38 = vmul.f32 %v1410_v24, %v669_v32  ;;  %v1341_v32 = vld [vmem:[%s1943_s3] sm:$0xff]  ;;  %v699_v30 = vunpack.c.l.bf16 %v1254_v29 }
 0x396   :  { %v651_v40 = vadd.f32 %v1408_v22, %v650_v35 }
 0x397   :  { %v671_v50 = vadd.f32 %v1410_v24, %v670_v38 }
 0x398   :  { %v655_v48 = vsel %vm654_vm2, %v1408_v22, %v651_v40 }
 0x399   :  { %v660_v51 = vsel %vm657_vm3, %v659_v42, %v655_v48  ;;  %v675_v58 = vsel %vm674_vm6, %v1410_v24, %v671_v50 }
 0x39a   :  { %v683_v55 = vmul.f32 %v682_v23, %v660_v51  ;;  %v680_v62 = vsel %vm677_vm7, %v679_v61, %v675_v58 }
 0x39b   :  { %v686_v0 = vsub.f32 1.0, %v680_v62  ;;  %v688_v4 = vmul.f32 %v680_v62, %v1790_v16 }
 0x39c   :  { %v684_v49 = vadd.f32 %v683_v55, %v601_v43 }
 0x39e   :  { %1411 = vtanh.f32 %v684_v49 }
 0x3a4   :  { %v1412_v41 = vpop.eup %1411 }
 0x3a5   :  { %v687_v1 = vmul.f32 %v1412_v41, %v686_v0 }
 0x3a7   :  { %v1827_v6 = vadd.f32 %v688_v4, %v687_v1  ;;  %v1337_v1 = vld [vmem:[#allocation3] sm:$0xff]  ;;  %v1338_v4 = vld [vmem:[#allocation3 + $0x8] sm:$0xff] }
 0x3a9   :  { %1413 = vtanh.f32 %v1827_v6  ;;  %v700_v8 = vpack.c.bf16 %v1827_v6, %v1827_v6 }
 0x3ab   :  { %709 = vmatmul.bf16.vlgmr.msrb.gmra.mxu3 %v700_v8  ;;  %722 = vmatmul.bf16.vlgmr.msra.gmra.mxu0 %v700_v8 }
 0x3ac   :  { %735 = vmatmul.bf16.vlgmr.msrb.gmra.mxu1 %v700_v8  ;;  %923 = vmatpush.bf16.msrb.mxu3 %v1537_v10  ;;  %v1253_v10 = vld [vmem:[%s1940_s0 + $0x3c] sm:$0xff] }
 0x3ad   :  { %v698_v14 = vunpack.c.h.bf16 %v1253_v10 }
 0x3af   :  { %v1414_v9 = vpop.eup %1413 }
 0x3b0   :  { %v691_v12 = vpack.c.bf16 %v1414_v9, %v1414_v9  ;;  %924 = vmatpush.bf16.msrb.mxu3 %v1543_v15 }
 0x3b2   :  { %693 = vst [vmem:[#allocation3 + $0x10] sm:$0xf] %v691_v12 }
 0x3b4   :  { %925 = vmatpush.bf16.msrb.mxu3 %v1551_v21  ;;  %v697_v21 = vunpack.c.l.bf16 %v1253_v10 }
 0x3b8   :  { %926 = vmatpush.bf16.msrb.mxu3 %v1559_v27  ;;  %v1348_v27 = vld [vmem:[%s1943_s3 + $0x38] sm:$0xff] }
 0x3b9   :  { %1089 = vmatpush.bf16.msra.mxu0 %v1348_v27 }
 0x3bc   :  { %927 = vmatpush.bf16.msrb.mxu3 %v1567_v33 }
 0x3c0   :  { %928 = vmatpush.bf16.msrb.mxu3 %v1575_v39 }
 0x3c4   :  { %929 = vmatpush.bf16.msrb.mxu3 %v1583_v46  ;;  %v1347_v46 = vld [vmem:[%s1943_s3 + $0x30] sm:$0xff] }
 0x3c5   :  { %1090 = vmatpush.bf16.msra.mxu0 %v1347_v46  ;;  %v1883_v46 = vld [vmem:[%s1944_s4] ss:$0 sm:$0xff] }
 0x3c8   :  { %930 = vmatpush.bf16.msrb.mxu3 %v1591_v52 }
 0x3c9   :  { %1091 = vmatpush.bf16.msra.mxu0 %v1346_v13 }
 0x3cd   :  { %1092 = vmatpush.bf16.msra.mxu0 %v1345_v31 }
 0x3d1   :  { %1093 = vmatpush.bf16.msra.mxu0 %v1344_v57 }
 0x3d5   :  { %1094 = vmatpush.bf16.msra.mxu0 %v1343_v45 }
 0x3d9   :  { %1095 = vmatpush.bf16.msra.mxu0 %v1342_v59 }
 0x3dd   :  { %1096 = vmatpush.bf16.msra.mxu0 %v1341_v32 }
 0x428   :  { %v723_v16 = vpop.f32.mrf.mxu0 }
 0x429   :  { %v760_v15 = vadd.f32 %v723_v16, %v698_v14  ;;  %v736_v17 = vpop.f32.mrf.mxu1 }
 0x42a   :  { %v780_v36 = vadd.f32 %v1673_v44, %v736_v17 }
 0x42b   :  { %v1256_v18 = vmul.f32 -1.442695, %v760_v15 }
 0x42d   :  { %1415 = vpow2.f32 %v1256_v18 }
 0x42e   :  { %v710_v33 = vpop.f32.mrf.mxu3 }
 0x42f   :  { %v740_v39 = vadd.f32 %v710_v33, %v697_v21 }
 0x430   :  { %v725_v52 = vpop.f32.mrf.mxu0 }
 0x431   :  { %v1255_v20 = vmul.f32 -1.442695, %v740_v39  ;;  %v738_v3 = vpop.f32.mrf.mxu1 }
 0x433   :  { %v1416_v5 = vpop.eup %1415  ;;  %1417 = vpow2.f32 %v1255_v20 }
 0x434   :  { %v764_v19 = vadd.f32 1.0, %v1416_v5 }
 0x436   :  { %v712_v25 = vpop.f32.mrf.mxu3  ;;  %1419 = vrcp.f32 %v764_v19  ;;  %v776_v43 = vand.u32 2147483648, %v764_v19  ;;  %vm770_vm13 = vweird.f32 %v764_v19  ;;  %v774_v23 = vand.u32 2147483647, %v764_v19 }
 0x438   :  { %v777_v54 = vor.u32 1.1754944e-38, %v776_v43  ;;  %vm775_vm15 = vcmp.eq.f32.partialorder %v774_v23, 8.507059e+37 }
 0x439   :  { %v1418_v47 = vpop.eup %1417 }
 0x43a   :  { %v744_v53 = vadd.f32 1.0, %v1418_v47 }
 0x43c   :  { %1421 = vrcp.f32 %v744_v53  ;;  %v1420_v37 = vpop.eup %1419  ;;  %v756_v22 = vand.u32 2147483648, %v744_v53  ;;  %v754_v26 = vand.u32 2147483647, %v744_v53  ;;  %vm750_vm9 = vweird.f32 %v744_v53 }
 0x43d   :  { %v766_v60 = vmul.f32 %v1420_v37, %v764_v19  ;;  %vm771_vm12 = vweird.f32 %v1420_v37 }
 0x43e   :  { %v757_v35 = vor.u32 1.1754944e-38, %v756_v22  ;;  %vm755_vm11 = vcmp.eq.f32.partialorder %v754_v26, 8.507059e+37  ;;  %vm772_vm14 = vmor %vm770_vm13, %vm771_vm12  ;;  %v1258_v22 = vld [vmem:[%s1940_s0 + $0x50] sm:$0xf] }
 0x43f   :  { %v767_v7 = vsub.f32 1.0, %v766_v60 }
 0x441   :  { %v768_v28 = vmul.f32 %v1420_v37, %v767_v7 }
 0x442   :  { %v1422_v63 = vpop.eup %1421 }
 0x443   :  { %v746_v2 = vmul.f32 %v1422_v63, %v744_v53  ;;  %vm751_vm8 = vweird.f32 %v1422_v63  ;;  %v769_v40 = vadd.f32 %v1420_v37, %v768_v28 }
 0x444   :  { %vm752_vm10 = vmor %vm750_vm9, %vm751_vm8 }
 0x445   :  { %v747_v11 = vsub.f32 1.0, %v746_v2  ;;  %v773_v51 = vsel %vm772_vm14, %v1420_v37, %v769_v40 }
 0x446   :  { %v778_v55 = vsel %vm775_vm15, %v777_v54, %v773_v51 }
 0x447   :  { %v748_v24 = vmul.f32 %v1422_v63, %v747_v11  ;;  %v784_v56 = vsub.f32 1.0, %v778_v55  ;;  %v786_v58 = vmul.f32 %v778_v55, %v1827_v6  ;;  %v1257_v6 = vld [vmem:[%s1940_s0 + $0x48] sm:$0xff] }
 0x448   :  { %v795_v12 = vunpack.c.l.bf16 %v1257_v6  ;;  %v796_v10 = vunpack.c.h.bf16 %v1257_v6 }
 0x449   :  { %v749_v34 = vadd.f32 %v1422_v63, %v748_v24 }
 0x44b   :  { %v753_v38 = vsel %vm752_vm10, %v1422_v63, %v749_v34  ;;  %v1897_v34 = vld [vmem:[%s1942_s2] ss:$0 sm:$0xff] }
 0x44c   :  { %v758_v42 = vsel %vm755_vm11, %v757_v35, %v753_v38  ;;  %v797_v38 = vunpack.c.l.bf16 %v1258_v22 }
 0x44d   :  { %v781_v48 = vmul.f32 %v780_v36, %v758_v42 }
 0x44f   :  { %v782_v50 = vadd.f32 %v781_v48, %v699_v30 }
 0x451   :  { %1423 = vtanh.f32 %v782_v50 }
 0x457   :  { %v1424_v44 = vpop.eup %1423 }
 0x458   :  { %v785_v49 = vmul.f32 %v1424_v44, %v784_v56 }
 0x45a   :  { %v1872_v61 = vadd.f32 %v786_v58, %v785_v49 }
 0x45c   :  { %1425 = vtanh.f32 %v1872_v61  ;;  %v798_v62 = vpack.c.bf16 %v1872_v61, %v1872_v61 }
 0x45e   :  { %807 = vmatmul.bf16.vlgmr.msrb.gmra.mxu2 %v798_v62  ;;  %820 = vmatmul.bf16.vlgmr.msra.gmra.mxu3 %v798_v62 }
 0x45f   :  { %833 = vmatmul.bf16.vlgmr.msrb.gmra.mxu0 %v798_v62 }
 0x462   :  { %v1426_v0 = vpop.eup %1425 }
 0x463   :  { %v789_v41 = vpack.c.bf16 %v1426_v0, %v1426_v0 }
 0x465   :  { %791 = vst [vmem:[#allocation3 + $0x14] sm:$0xf] %v789_v41 }
 0x46c   :  { %v1339_v8 = vld [vmem:[#allocation3 + $0x10] sm:$0xff] }
 0x46f   :  { %1097 = vmatmul.bf16.vlgmr.msra.gmra.mxu0 %v1337_v1 }
 0x47f   :  { %1102 = vmatmul.bf16.gmra.mxu0 %v1338_v4 }
 0x48f   :  { %1107 = vmatmul.bf16.gmra.mxu0 %v1339_v8 }
 0x4dc   :  { %v834_v9 = vpop.f32.mrf.mxu0 }
 0x4dd   :  { %v878_v35 = vadd.f32 %v1897_v34, %v834_v9 }
 0x4e1   :  { %v808_v14 = vpop.f32.mrf.mxu2  ;;  %v821_v16 = vpop.f32.mrf.mxu3 }
 0x4e2   :  { %v838_v15 = vadd.f32 %v808_v14, %v795_v12  ;;  %v858_v17 = vadd.f32 %v821_v16, %v796_v10 }
 0x4e4   :  { %v1259_v18 = vmul.f32 -1.442695, %v838_v15  ;;  %v1260_v21 = vmul.f32 -1.442695, %v858_v17  ;;  %v836_v27 = vpop.f32.mrf.mxu0  ;;  %v1261_v15 = vld [vmem:[%s1940_s0 + $0x54] sm:$0xff] }
 0x4e5   :  { %v893_v17 = vunpack.c.l.bf16 %v1261_v15 }
 0x4e6   :  { %1427 = vpow2.f32 %v1259_v18 }
 0x4e7   :  { %1429 = vpow2.f32 %v1260_v21 }
 0x4e9   :  { %v810_v33 = vpop.f32.mrf.mxu2  ;;  %v823_v39 = vpop.f32.mrf.mxu3 }
 0x4ea   :  { %v894_v33 = vunpack.c.h.bf16 %v1261_v15 }
 0x4ec   :  { %v1428_v52 = vpop.eup %1427  ;;  %v1098_v20 = vpop.f32.mrf.mxu0 }
 0x4ed   :  { %v1430_v3 = vpop.eup %1429  ;;  %v842_v5 = vadd.f32 1.0, %v1428_v52  ;;  %v1099_v13 = vadd.f32 %v1883_v46, %v1098_v20 }
 0x4ee   :  { %v862_v19 = vadd.f32 1.0, %v1430_v3 }
 0x4ef   :  { %1431 = vrcp.f32 %v842_v5  ;;  %v854_v45 = vand.u32 2147483648, %v842_v5  ;;  %v852_v11 = vand.u32 2147483647, %v842_v5  ;;  %vm848_vm1 = vweird.f32 %v842_v5 }
 0x4f0   :  { %1433 = vrcp.f32 %v862_v19  ;;  %v874_v43 = vand.u32 2147483648, %v862_v19  ;;  %vm868_vm5 = vweird.f32 %v862_v19  ;;  %v872_v48 = vand.u32 2147483647, %v862_v19 }
 0x4f1   :  { %1435 = vtanh.f32 %v1099_v13  ;;  %v855_v29 = vor.u32 1.1754944e-38, %v854_v45  ;;  %vm853_vm3 = vcmp.eq.f32.partialorder %v852_v11, 8.507059e+37  ;;  %v1262_v45 = vld [vmem:[%s1940_s0 + $0x5c] sm:$0xf] }
 0x4f2   :  { %v875_v51 = vor.u32 1.1754944e-38, %v874_v43  ;;  %vm873_vm7 = vcmp.eq.f32.partialorder %v872_v48, 8.507059e+37 }
 0x4f4   :  { %v1100_v25 = vpop.f32.mrf.mxu0 }
 0x4f5   :  { %v1432_v31 = vpop.eup %1431  ;;  %v1101_v47 = vadd.f32 %v1883_v46, %v1100_v25 }
 0x4f6   :  { %v1434_v53 = vpop.eup %1433  ;;  %v844_v37 = vmul.f32 %v1432_v31, %v842_v5  ;;  %vm849_vm0 = vweird.f32 %v1432_v31 }
 0x4f7   :  { %v1436_v57 = vpop.eup %1435  ;;  %v864_v60 = vmul.f32 %v1434_v53, %v862_v19  ;;  %1437 = vtanh.f32 %v1101_v47  ;;  %vm850_vm2 = vmor %vm848_vm1, %vm849_vm0  ;;  %vm869_vm4 = vweird.f32 %v1434_v53 }
 0x4f8   :  { %v845_v63 = vsub.f32 1.0, %v844_v37  ;;  %1126 = vst [vmem:[%s1945_s5] sm:$0xff] %v1436_v57  ;;  %vm870_vm6 = vmor %vm868_vm5, %vm869_vm4 }
 0x4f9   :  { %v865_v2 = vsub.f32 1.0, %v864_v60 }
 0x4fa   :  { %v846_v7 = vmul.f32 %v1432_v31, %v845_v63 }
 0x4fb   :  { %v866_v59 = vmul.f32 %v1434_v53, %v865_v2 }
 0x4fc   :  { %v847_v24 = vadd.f32 %v1432_v31, %v846_v7  ;;  %v1103_v26 = vpop.f32.mrf.mxu0 }
 0x4fd   :  { %v1438_v28 = vpop.eup %1437  ;;  %v1104_v32 = vadd.f32 %v1883_v46, %v1103_v26  ;;  %v867_v40 = vadd.f32 %v1434_v53, %v866_v59 }
 0x4fe   :  { %v851_v36 = vsel %vm850_vm2, %v1432_v31, %v847_v24  ;;  %1127 = vst [vmem:[%s1945_s5 + $0x8] sm:$0xff] %v1438_v28  ;;  %v895_v24 = vunpack.c.l.bf16 %v1262_v45 }
 0x4ff   :  { %v856_v30 = vsel %vm853_vm3, %v855_v29, %v851_v36  ;;  %1439 = vtanh.f32 %v1104_v32  ;;  %v871_v50 = vsel %vm870_vm6, %v1434_v53, %v867_v40 }
 0x500   :  { %v879_v42 = vmul.f32 %v878_v35, %v856_v30  ;;  %v876_v44 = vsel %vm873_vm7, %v875_v51, %v871_v50 }
 0x501   :  { %v882_v49 = vsub.f32 1.0, %v876_v44  ;;  %v884_v0 = vmul.f32 %v876_v44, %v1872_v61 }
 0x502   :  { %v880_v23 = vadd.f32 %v879_v42, %v797_v38 }
 0x504   :  { %v1105_v54 = vpop.f32.mrf.mxu0  ;;  %1441 = vtanh.f32 %v880_v23 }
 0x505   :  { %v1440_v55 = vpop.eup %1439  ;;  %v1106_v56 = vadd.f32 %v1883_v46, %v1105_v54 }
 0x506   :  { %1128 = vst [vmem:[%s1945_s5 + $0x10] sm:$0xff] %v1440_v55 }
 0x507   :  { %1443 = vtanh.f32 %v1106_v56 }
 0x50a   :  { %v1442_v58 = vpop.eup %1441 }
 0x50b   :  { %v883_v62 = vmul.f32 %v1442_v58, %v882_v49 }
 0x50c   :  { %v1108_v41 = vpop.f32.mrf.mxu0 }
 0x50d   :  { %v1444_v1 = vpop.eup %1443  ;;  %v1109_v4 = vadd.f32 %v1883_v46, %v1108_v41  ;;  %v1909_v8 = vadd.f32 %v884_v0, %v883_v62 }
 0x50e   :  { %1129 = vst [vmem:[%s1945_s5 + $0x18] sm:$0xff] %v1444_v1 }
 0x50f   :  { %1445 = vtanh.f32 %v1109_v4  ;;  %v896_v6 = vpack.c.bf16 %v1909_v8, %v1909_v8 }
 0x510   :  { %1447 = vtanh.f32 %v1909_v8 }
 0x511   :  { %905 = vmatmul.bf16.vlgmr.msra.gmra.mxu1 %v896_v6  ;;  %918 = vmatmul.bf16.vlgmr.msra.gmra.mxu2 %v896_v6 }
 0x512   :  { %931 = vmatmul.bf16.vlgmr.msrb.gmra.mxu3 %v896_v6 }
 0x514   :  { %v1110_v61 = vpop.f32.mrf.mxu0 }
 0x515   :  { %v1446_v9 = vpop.eup %1445  ;;  %v1111_v12 = vadd.f32 %v1883_v46, %v1110_v61 }
 0x516   :  { %v1448_v10 = vpop.eup %1447  ;;  %1130 = vst [vmem:[%s1945_s5 + $0x20] sm:$0xff] %v1446_v9 }
 0x517   :  { %v887_v14 = vpack.c.bf16 %v1448_v10, %v1448_v10  ;;  %1449 = vtanh.f32 %v1111_v12 }
 0x519   :  { %889 = vst [vmem:[#allocation3 + $0x18] sm:$0xf] %v887_v14 }
 0x51d   :  { %v1450_v16 = vpop.eup %1449 }
 0x51e   :  { %1131 = vst [vmem:[%s1945_s5 + $0x28] sm:$0xff] %v1450_v16 }
 0x58e   :  { %v906_v18 = vpop.f32.mrf.mxu1 }
 0x58f   :  { %v936_v21 = vadd.f32 %v906_v18, %v893_v17 }
 0x591   :  { %v1263_v27 = vmul.f32 -1.442695, %v936_v21 }
 0x593   :  { %1451 = vpow2.f32 %v1263_v27 }
 0x594   :  { %v919_v39 = vpop.f32.mrf.mxu2 }
 0x595   :  { %v956_v52 = vadd.f32 %v919_v39, %v894_v33  ;;  %v932_v20 = vpop.f32.mrf.mxu3 }
 0x596   :  { %v908_v3 = vpop.f32.mrf.mxu1  ;;  %v976_v32 = vadd.f32 %v1897_v34, %v932_v20 }
 0x597   :  { %v1264_v5 = vmul.f32 -1.442695, %v956_v52 }
 0x599   :  { %v1452_v13 = vpop.eup %1451  ;;  %1453 = vpow2.f32 %v1264_v5 }
 0x59a   :  { %v940_v19 = vadd.f32 1.0, %v1452_v13 }
 0x59c   :  { %1455 = vrcp.f32 %v940_v19  ;;  %v921_v25 = vpop.f32.mrf.mxu2  ;;  %v952_v63 = vand.u32 2147483648, %v940_v19  ;;  %v950_v7 = vand.u32 2147483647, %v940_v19  ;;  %vm946_vm9 = vweird.f32 %v940_v19 }
 0x59d   :  { %v934_v31 = vpop.f32.mrf.mxu3 }
 0x59e   :  { %v953_v26 = vor.u32 1.1754944e-38, %v952_v63  ;;  %vm951_vm11 = vcmp.eq.f32.partialorder %v950_v7, 8.507059e+37 }
 0x59f   :  { %v1454_v47 = vpop.eup %1453 }
 0x5a0   :  { %v960_v53 = vadd.f32 1.0, %v1454_v47 }
 0x5a2   :  { %v1456_v37 = vpop.eup %1455  ;;  %1457 = vrcp.f32 %v960_v53  ;;  %v972_v38 = vand.u32 2147483648, %v960_v53  ;;  %v970_v40 = vand.u32 2147483647, %v960_v53  ;;  %vm966_vm13 = vweird.f32 %v960_v53 }
 0x5a3   :  { %v942_v57 = vmul.f32 %v1456_v37, %v940_v19  ;;  %vm947_vm8 = vweird.f32 %v1456_v37 }
 0x5a4   :  { %vm948_vm10 = vmor %vm946_vm9, %vm947_vm8  ;;  %v973_v48 = vor.u32 1.1754944e-38, %v972_v38  ;;  %vm971_vm15 = vcmp.eq.f32.partialorder %v970_v40, 8.507059e+37 }
 0x5a5   :  { %v943_v60 = vsub.f32 1.0, %v942_v57 }
 0x5a7   :  { %v944_v2 = vmul.f32 %v1456_v37, %v943_v60 }
 0x5a8   :  { %v1458_v11 = vpop.eup %1457 }
 0x5a9   :  { %v962_v59 = vmul.f32 %v1458_v11, %v960_v53  ;;  %v945_v22 = vadd.f32 %v1456_v37, %v944_v2  ;;  %vm967_vm12 = vweird.f32 %v1458_v11 }
 0x5aa   :  { %vm968_vm14 = vmor %vm966_vm13, %vm967_vm12 }
 0x5ab   :  { %v963_v28 = vsub.f32 1.0, %v962_v59  ;;  %v949_v29 = vsel %vm948_vm10, %v1456_v37, %v945_v22 }
 0x5ac   :  { %v954_v35 = vsel %vm951_vm11, %v953_v26, %v949_v29 }
 0x5ad   :  { %v964_v36 = vmul.f32 %v1458_v11, %v963_v28  ;;  %v977_v30 = vmul.f32 %v976_v32, %v954_v35 }
 0x5af   :  { %v965_v42 = vadd.f32 %v1458_v11, %v964_v36  ;;  %v978_v43 = vadd.f32 %v977_v30, %v895_v24 }
 0x5b1   :  { %v969_v23 = vsel %vm968_vm14, %v1458_v11, %v965_v42  ;;  %1459 = vtanh.f32 %v978_v43 }
 0x5b2   :  { %v974_v50 = vsel %vm971_vm15, %v973_v48, %v969_v23 }
 0x5b3   :  { %v980_v51 = vsub.f32 1.0, %v974_v50  ;;  %v982_v34 = vmul.f32 %v974_v50, %v1909_v8 }
 0x5b7   :  { %v1460_v54 = vpop.eup %1459 }
 0x5b8   :  { %v981_v55 = vmul.f32 %v1460_v54, %v980_v51 }
 0x5ba   :  { %v983_v56 = vadd.f32 %v982_v34, %v981_v55 }
 0x5bc   :  { %1461 = vtanh.f32 %v983_v56 }
 0x5c2   :  { %v1462_v44 = vpop.eup %1461 }
 0x5c3   :  { %v985_v49 = vpack.c.bf16 %v1462_v44, %v1462_v44 }
 0x5c5   :  { %987 = vst [vmem:[#allocation3 + $0x1c] sm:$0xf] %v985_v49 }
 0x5cc   :  { %v1340_v58 = vld [vmem:[#allocation3 + $0x18] sm:$0xff] }
 0x5cd   :  { %1112 = vmatmul.bf16.gmra.mxu0 %v1340_v58 }
 0x64a   :  { %v1113_v62 = vpop.f32.mrf.mxu0 }
 0x64b   :  { %v1114_v0 = vadd.f32 %v1883_v46, %v1113_v62 }
 0x64d   :  { %1463 = vtanh.f32 %v1114_v0 }
 0x652   :  { %v1115_v41 = vpop.f32.mrf.mxu0 }
 0x653   :  { %v1464_v1 = vpop.eup %1463  ;;  %v1116_v4 = vadd.f32 %v1883_v46, %v1115_v41 }
 0x654   :  { %1132 = vst [vmem:[%s1945_s5 + $0x30] sm:$0xff] %v1464_v1 }
 0x655   :  { %1465 = vtanh.f32 %v1116_v4 }
 0x65b   :  { %v1466_v8 = vpop.eup %1465 }
 0x65c   :  { %1133 = vst [vmem:[%s1945_s5 + $0x38] sm:$0xff] %v1466_v8 }
 0x65d   :  { %1138 = vsyncpa [#allocation5], 1 }

</bundles_post_ra>
